<compile_context>
chip_gen: v5e
topology: v5e:2x2
jax: 0.10.0
libtpu: 0.0.40
codegen_flags: <defaults>
</compile_context>

<pallas_src>
from functools import partial

import jax
import jax.numpy as jnp
from jax.experimental import pallas as pl
from jax.experimental.pallas import tpu as pltpu


def convlstm_kernel(x_ref, w_ref, wp_ref, out_ref, xh_ref, c_ref,
                    *, cin, cin_pad, cout):
    """One (pixel-tile, batch) slice: full time recurrence in-kernel.

    Lane-dense layout (pixels on lanes, channels on sublanes):
      x_ref  : (T, Cin, HWt)           bf16
      w_ref  : (4*Cout, Cin_pad+Cout)  bf16   fused [Wx | 0 | bias | Wh]
      wp_ref : (3*Cout, HWt)           bf16   rows = [W_ci ; W_cf ; W_co]
      out_ref: (Cout, T, HWt)          f32    final layout (no wrapper transpose)
      xh_ref : (Cin_pad+Cout, HWt)     bf16   fused matmul operand [x ; 0 ; 1 ; h]
      c_ref  : (Cout, HWt)             f32    cell state
    """
    seq_len = x_ref.shape[0]
    hwt = x_ref.shape[-1]

    # ---- per-grid-step init (h0 = 0, zero pad rows, ones row for the bias) ----
    row_idx = jax.lax.broadcasted_iota(jnp.int32, (cin_pad + cout, hwt), 0)
    xh_ref[...] = jnp.where(row_idx == cin_pad - 1, 1.0, 0.0).astype(xh_ref.dtype)
    c_ref[...] = jnp.zeros_like(c_ref)

    # Hoisted peephole upcasts (bf16 in HBM/VMEM, f32 gate math).
    w_ci = wp_ref[0 * cout:1 * cout, :].astype(jnp.float32)
    w_cf = wp_ref[1 * cout:2 * cout, :].astype(jnp.float32)
    w_co = wp_ref[2 * cout:3 * cout, :].astype(jnp.float32)

    def sigmoid(v):
        # One EUP transcendental (tanh) instead of exp + reciprocal.
        return 0.5 * jnp.tanh(0.5 * v) + 0.5

    # Static (fully unrolled) time loop: all out_ref indices are compile-time
    # constants, so every store is a static-offset, lane-dense vst.
    # TODO(synk): for long sequences (T >> 16) chunk this loop (bounded unroll)
    # to limit straight-line code size and live temporaries.
    for t in range(seq_len):
        xh_ref[0:cin, :] = x_ref[t]                        # refresh x rows (bf16)

        # Fused 1x1 conv: one MXU matmul covers Wx@x + Wh@h + bias.
        conv = jnp.dot(w_ref[...], xh_ref[...],
                       preferred_element_type=jnp.float32)  # (4*Cout, HWt) f32

        c = c_ref[...]
        i_c = conv[0 * cout:1 * cout, :]                    # sublane-aligned slices
        f_c = conv[1 * cout:2 * cout, :]
        c_c = conv[2 * cout:3 * cout, :]
        o_c = conv[3 * cout:4 * cout, :]

        ig = sigmoid(i_c + w_ci * c)
        fg = sigmoid(f_c + w_cf * c)
        c_new = fg * c + ig * jnp.maximum(c_c, 0.0)         # default activation: relu
        og = sigmoid(o_c + w_co * c_new)
        h_new = og * jnp.maximum(c_new, 0.0)

        c_ref[...] = c_new
        xh_ref[cin_pad:cin_pad + cout, :] = h_new.astype(xh_ref.dtype)  # h rows
        out_ref[:, t, :] = h_new                            # final-layout store


def _round_up(x, m):
    return ((x + m - 1) // m) * m


def _pick_hw_tile(hw128, seq_len, cin, cin_pad, cout, batch, budget_bytes):
    """Largest multiple-of-128 lane tile whose VMEM footprint fits the budget."""
    per_lane = (2 * seq_len * cin * 2            # x block (bf16), double-buffered
                + 2 * seq_len * cout * 4         # out block (f32), double-buffered
                + 2 * 3 * cout * 2               # peephole block (bf16), double-buffered
                + (cin_pad + cout) * 2           # xh scratch (bf16)
                + cout * 4                       # cell state (f32)
                + 3 * cout * 4                   # hoisted f32 peepholes
                + 6 * cout * 4)                  # conv result + gate temporaries
    fixed = 2 * (4 * cout) * (cin_pad + cout) * 2   # fused weights (double-buffered)
    tile = hw128
    while tile > 128 and tile * per_lane + fixed > budget_bytes:
        tile = _round_up(tile // 2, 128)
    # v7x has 2 TensorCores: with batch == 1, force >= 2 pixel tiles so both
    # cores get work (costs only a slightly smaller tile on single-TC chips).
    if batch == 1 and hw128 // tile < 2 and hw128 >= 256:
        tile = _round_up(hw128 // 2, 128)
    return max(tile, 128)


def yolo_convlstm(X, Wconv, bconv, W_ci, W_cf, W_co, *, hw_tile=None):
    """X: (B, Cin, T, H, W) f32. Returns (B, Cout, T, H, W) f32."""
    B, Cin, T, H, W = X.shape
    Cout4, CinCout, kh, kw = Wconv.shape
    assert kh == 1 and kw == 1, "this kernel implements the 1x1-conv ConvLSTM cell"
    Cout = Cout4 // 4
    assert CinCout == Cin + Cout
    HW = H * W

    # One constant-one row fused into the matmul operand carries the bias; pad
    # the x rows to a 16-row (bf16-vreg) boundary so the h rows are vreg-aligned.
    Cin_pad = _round_up(Cin + 1, 16)

    # ---- generation-aware VMEM budgeting (v7x: 64 MiB, v5e/v6e: 128 MiB) ----
    try:
        vmem_cap = int(pltpu.get_tpu_info().vmem_capacity_bytes)
    except Exception:
        vmem_cap = 64 * 1024 * 1024            # conservative fallback
    if vmem_cap >= 100 * 1024 * 1024:
        vmem_limit, budget = 64 * 1024 * 1024, 40 * 1024 * 1024
    else:
        vmem_limit, budget = 28 * 1024 * 1024, 18 * 1024 * 1024

    hw128 = _round_up(HW, 128)
    if hw_tile is None:
        hw_tile = _pick_hw_tile(hw128, T, Cin, Cin_pad, Cout, B, budget)
    n_hw = -(-HW // hw_tile)                   # cdiv
    HW_pad = n_hw * hw_tile                    # pad pixels to a whole lane tile

    # ---- lane-dense layout glue (plain JAX) ----
    x_seq = jnp.transpose(X, (0, 2, 1, 3, 4)).reshape(B, T, Cin, HW)
    x_seq = jnp.pad(x_seq, ((0, 0), (0, 0), (0, 0), (0, HW_pad - HW)))
    x_seq = x_seq.astype(jnp.bfloat16)         # bf16 MXU operand / half HBM stream

    Wmat = Wconv.reshape(Cout4, CinCout).astype(jnp.float32)
    W_fused = jnp.zeros((Cout4, Cin_pad + Cout), jnp.float32)
    W_fused = W_fused.at[:, :Cin].set(Wmat[:, :Cin])          # Wx
    W_fused = W_fused.at[:, Cin_pad - 1].set(bconv)           # bias column (ones row)
    W_fused = W_fused.at[:, Cin_pad:].set(Wmat[:, Cin:])      # Wh
    W_fused = W_fused.astype(jnp.bfloat16)

    # Peepholes: (Cout, H, W) -> (3*Cout, HW_pad) bf16, NOT tiled over batch.
    Wp = jnp.concatenate([W_ci.reshape(Cout, HW),
                          W_cf.reshape(Cout, HW),
                          W_co.reshape(Cout, HW)], axis=0)
    Wp = jnp.pad(Wp, ((0, 0), (0, HW_pad - HW))).astype(jnp.bfloat16)

    out = pl.pallas_call(
        partial(convlstm_kernel, cin=Cin, cin_pad=Cin_pad, cout=Cout),
        out_shape=jax.ShapeDtypeStruct((B, Cout, T, HW_pad), jnp.float32),
        grid_spec=pltpu.PrefetchScalarGridSpec(
            num_scalar_prefetch=0,
            # (pixel-tile, batch): batch innermost so the peephole block index
            # is constant across consecutive grid steps (its re-DMA is skipped).
            grid=(n_hw, B),
            in_specs=[
                pl.BlockSpec((pl.Squeezed(), T, Cin, hw_tile),
                             lambda p, bi: (bi, 0, 0, p)),
                pl.BlockSpec((Cout4, Cin_pad + Cout), lambda p, bi: (0, 0)),
                pl.BlockSpec((3 * Cout, hw_tile), lambda p, bi: (0, p)),
            ],
            out_specs=pl.BlockSpec((pl.Squeezed(), Cout, T, hw_tile),
                                   lambda p, bi: (bi, 0, 0, p)),
            scratch_shapes=[
                pltpu.VMEM((Cin_pad + Cout, hw_tile), jnp.bfloat16),  # [x; 1; h]
                pltpu.VMEM((Cout, hw_tile), jnp.float32),             # cell state
            ],
        ),
        compiler_params=pltpu.CompilerParams(
            dimension_semantics=("parallel", "parallel"),   # megacore-friendly
            vmem_limit_bytes=vmem_limit,
        ),
    )(x_seq, W_fused, Wp)

    # Output already in final (B, Cout, T, HW) layout: drop padded pixels only.
    if HW_pad != HW:
        out = out[:, :, :, :HW]
    return out.reshape(B, Cout, T, H, W)


def ref_forward(X, Wconv, bconv, W_ci, W_cf, W_co):
    """Pure-JAX f32 reference mirroring the (intended) PyTorch semantics."""
    B, Cin, T, H, W = X.shape
    Cout = Wconv.shape[0] // 4
    Wmat = Wconv.reshape(4 * Cout, Cin + Cout)               # 1x1 conv
    h = jnp.zeros((B, Cout, H, W), jnp.float32)
    c = jnp.zeros((B, Cout, H, W), jnp.float32)
    outs = []
    for t in range(T):
        x = X[:, :, t]
        xh = jnp.concatenate([x, h], axis=1)
        conv = jnp.einsum('oc,bchw->bohw', Wmat, xh) + bconv[None, :, None, None]
        i_c, f_c, c_c, o_c = jnp.split(conv, 4, axis=1)
        ig = jax.nn.sigmoid(i_c + W_ci[None] * c)
        fg = jax.nn.sigmoid(f_c + W_cf[None] * c)
        c = fg * c + ig * jnp.maximum(c_c, 0.0)
        og = jax.nn.sigmoid(o_c + W_co[None] * c)
        h = og * jnp.maximum(c, 0.0)
        outs.append(h)
    return jnp.stack(outs, axis=2)


if __name__ == "__main__":
    B, Cin, Cout, T, H, W = 2, 4, 32, 8, 16, 16              # frame_size = (16, 16)

    key = jax.random.PRNGKey(0)
    kx, kw, kb, kci, kcf, kco = jax.random.split(key, 6)

    X = jax.random.normal(kx, (B, Cin, T, H, W), jnp.float32)
    Wconv = jax.random.normal(kw, (4 * Cout, Cin + Cout, 1, 1), jnp.float32) * 0.1
    bconv = jax.random.normal(kb, (4 * Cout,), jnp.float32) * 0.1
    W_ci = jax.random.normal(kci, (Cout, H, W), jnp.float32) * 0.1
    W_cf = jax.random.normal(kcf, (Cout, H, W), jnp.float32) * 0.1
    W_co = jax.random.normal(kco, (Cout, H, W), jnp.float32) * 0.1

    out = yolo_convlstm(X, Wconv, bconv, W_ci, W_cf, W_co)
    out = jax.block_until_ready(out)

    ref = ref_forward(X, Wconv, bconv, W_ci, W_cf, W_co)
    assert out.shape == (B, Cout, T, H, W)
    err = float(jnp.max(jnp.abs(out - ref)))
    # bf16 matmul operands / bias / peepholes (f32 accumulate + gate math).
    assert err < 5e-2, f"mismatch vs reference: {err}"
    print("KERNEL_OK")
</pallas_src>

<mosaic_0001>
module attributes {stable_mosaic.version = 11 : i64} {
  func.func @convlstm_kernel(%arg0: i32, %arg1: i32, %arg2: memref<1x8x4x256xbf16, #tpu.memory_space<vmem>>, %arg3: memref<128x48xbf16, #tpu.memory_space<vmem>>, %arg4: memref<96x256xbf16, #tpu.memory_space<vmem>>, %arg5: memref<1x32x8x256xf32, #tpu.memory_space<vmem>>, %arg6: memref<48x256xbf16, #tpu.memory_space<vmem>>, %arg7: memref<32x256xf32, #tpu.memory_space<vmem>>) attributes {dimension_semantics = [#tpu.dimension_semantics<parallel>, #tpu.dimension_semantics<parallel>], iteration_bounds = array<i64: 1, 2>, scalar_prefetch = 0 : i64, scratch_operands = 2 : i64, tpu.core_type = #tpu.core_type<tc>, window_params = [{transform_indices = @transform_0, window_bounds = array<i64: 1, 8, 4, 256>}, {pipeline_mode = #tpu.pipeline_mode<synchronous>, transform_indices = @transform_1, window_bounds = array<i64: 128, 48>}, {transform_indices = @transform_2, window_bounds = array<i64: 96, 256>}, {transform_indices = @transform_3, window_bounds = array<i64: 1, 32, 8, 256>}]} {
    %0 = tpu.iota {dimensions = array<i32: 0>} : vector<48x256xi32>
    %c15_i32 = arith.constant 15 : i32
    %1 = vector.broadcast %c15_i32 : i32 to vector<48x256xi32>
    %2 = arith.cmpi eq, %0, %1 : vector<48x256xi32>
    %cst = arith.constant 1.000000e+00 : f32
    %cst_0 = arith.constant 0.000000e+00 : f32
    %3 = vector.broadcast %cst : f32 to vector<48x256xf32>
    %4 = vector.broadcast %cst_0 : f32 to vector<48x256xf32>
    %5 = arith.select %2, %3, %4 : vector<48x256xi1>, vector<48x256xf32>
    %6 = arith.truncf %5 : vector<48x256xf32> to vector<48x256xbf16>
    %c0 = arith.constant 0 : index
    %c0_1 = arith.constant 0 : index
    %7 = vector.load %arg6[%c0, %c0_1] : memref<48x256xbf16, #tpu.memory_space<vmem>>, vector<48x256xbf16>
    tpu.vector_store %arg6[%c0, %c0_1], %6 {strides = array<i32>} : memref<48x256xbf16, #tpu.memory_space<vmem>>, vector<48x256xbf16>,
    %cst_2 = arith.constant 0.000000e+00 : f32
    %8 = vector.broadcast %cst_2 : f32 to vector<32x256xf32>
    %c0_3 = arith.constant 0 : index
    %c0_4 = arith.constant 0 : index
    %9 = vector.load %arg7[%c0_3, %c0_4] : memref<32x256xf32, #tpu.memory_space<vmem>>, vector<32x256xf32>
    tpu.vector_store %arg7[%c0_3, %c0_4], %8 {strides = array<i32>} : memref<32x256xf32, #tpu.memory_space<vmem>>, vector<32x256xf32>,
    %c0_5 = arith.constant 0 : index
    %c0_6 = arith.constant 0 : index
    %10 = vector.load %arg4[%c0_5, %c0_6] : memref<96x256xbf16, #tpu.memory_space<vmem>>, vector<32x256xbf16>
    %11 = arith.extf %10 : vector<32x256xbf16> to vector<32x256xf32>
    %c32 = arith.constant 32 : index
    %c0_7 = arith.constant 0 : index
    %12 = vector.load %arg4[%c32, %c0_7] : memref<96x256xbf16, #tpu.memory_space<vmem>>, vector<32x256xbf16>
    %13 = arith.extf %12 : vector<32x256xbf16> to vector<32x256xf32>
    %c64 = arith.constant 64 : index
    %c0_8 = arith.constant 0 : index
    %14 = vector.load %arg4[%c64, %c0_8] : memref<96x256xbf16, #tpu.memory_space<vmem>>, vector<32x256xbf16>
    %15 = arith.extf %14 : vector<32x256xbf16> to vector<32x256xf32>
    %c0_9 = arith.constant 0 : index
    %c0_10 = arith.constant 0 : index
    %c0_11 = arith.constant 0 : index
    %c0_12 = arith.constant 0 : index
    %16 = vector.load %arg2[%c0_9, %c0_10, %c0_11, %c0_12] : memref<1x8x4x256xbf16, #tpu.memory_space<vmem>>, vector<1x1x4x256xbf16>
    %17 = vector.shape_cast %16 : vector<1x1x4x256xbf16> to vector<4x256xbf16>
    %c0_13 = arith.constant 0 : index
    %c0_14 = arith.constant 0 : index
    %18 = vector.load %arg6[%c0_13, %c0_14] : memref<48x256xbf16, #tpu.memory_space<vmem>>, vector<4x256xbf16>
    tpu.vector_store %arg6[%c0_13, %c0_14], %17 {strides = array<i32>} : memref<48x256xbf16, #tpu.memory_space<vmem>>, vector<4x256xbf16>,
    %c0_15 = arith.constant 0 : index
    %c0_16 = arith.constant 0 : index
    %19 = vector.load %arg3[%c0_15, %c0_16] : memref<128x48xbf16, #tpu.memory_space<vmem>>, vector<128x48xbf16>
    %c0_17 = arith.constant 0 : index
    %c0_18 = arith.constant 0 : index
    %20 = vector.load %arg6[%c0_17, %c0_18] : memref<48x256xbf16, #tpu.memory_space<vmem>>, vector<48x256xbf16>
    %cst_19 = arith.constant dense<0.000000e+00> : vector<128x256xf32>
    %21 = tpu.matmul %19, %20, %cst_19 {dimension_numbers = #tpu.dot_dimension_numbers<[1], [0], [0], [1], [0, 0, 1, 1], [], []>} : vector<128x48xbf16>, vector<48x256xbf16>, vector<128x256xf32> -> vector<128x256xf32>
    %c0_20 = arith.constant 0 : index
    %c0_21 = arith.constant 0 : index
    %22 = vector.load %arg7[%c0_20, %c0_21] : memref<32x256xf32, #tpu.memory_space<vmem>>, vector<32x256xf32>
    %23 = vector.extract_strided_slice %21 {offsets = [0, 0], sizes = [32, 256], strides = [1, 1]} : vector<128x256xf32> to vector<32x256xf32>
    %24 = vector.extract_strided_slice %21 {offsets = [32, 0], sizes = [32, 256], strides = [1, 1]} : vector<128x256xf32> to vector<32x256xf32>
    %25 = vector.extract_strided_slice %21 {offsets = [64, 0], sizes = [32, 256], strides = [1, 1]} : vector<128x256xf32> to vector<32x256xf32>
    %26 = vector.extract_strided_slice %21 {offsets = [96, 0], sizes = [32, 256], strides = [1, 1]} : vector<128x256xf32> to vector<32x256xf32>
    %27 = arith.mulf %11, %22 : vector<32x256xf32>
    %28 = arith.addf %23, %27 : vector<32x256xf32>
    %cst_22 = arith.constant 5.000000e-01 : f32
    %29 = vector.broadcast %cst_22 : f32 to vector<32x256xf32>
    %30 = arith.mulf %29, %28 : vector<32x256xf32>
    %31 = math.tanh %30 : vector<32x256xf32>
    %cst_23 = arith.constant 5.000000e-01 : f32
    %32 = vector.broadcast %cst_23 : f32 to vector<32x256xf32>
    %33 = arith.mulf %32, %31 : vector<32x256xf32>
    %cst_24 = arith.constant 5.000000e-01 : f32
    %34 = vector.broadcast %cst_24 : f32 to vector<32x256xf32>
    %35 = arith.addf %33, %34 : vector<32x256xf32>
    %36 = arith.mulf %13, %22 : vector<32x256xf32>
    %37 = arith.addf %24, %36 : vector<32x256xf32>
    %cst_25 = arith.constant 5.000000e-01 : f32
    %38 = vector.broadcast %cst_25 : f32 to vector<32x256xf32>
    %39 = arith.mulf %38, %37 : vector<32x256xf32>
    %40 = math.tanh %39 : vector<32x256xf32>
    %cst_26 = arith.constant 5.000000e-01 : f32
    %41 = vector.broadcast %cst_26 : f32 to vector<32x256xf32>
    %42 = arith.mulf %41, %40 : vector<32x256xf32>
    %cst_27 = arith.constant 5.000000e-01 : f32
    %43 = vector.broadcast %cst_27 : f32 to vector<32x256xf32>
    %44 = arith.addf %42, %43 : vector<32x256xf32>
    %45 = arith.mulf %44, %22 : vector<32x256xf32>
    %cst_28 = arith.constant 0.000000e+00 : f32
    %46 = vector.broadcast %cst_28 : f32 to vector<32x256xf32>
    %47 = arith.maximumf %25, %46 : vector<32x256xf32>
    %48 = arith.mulf %35, %47 : vector<32x256xf32>
    %49 = arith.addf %45, %48 : vector<32x256xf32>
    %50 = arith.mulf %15, %49 : vector<32x256xf32>
    %51 = arith.addf %26, %50 : vector<32x256xf32>
    %cst_29 = arith.constant 5.000000e-01 : f32
    %52 = vector.broadcast %cst_29 : f32 to vector<32x256xf32>
    %53 = arith.mulf %52, %51 : vector<32x256xf32>
    %54 = math.tanh %53 : vector<32x256xf32>
    %cst_30 = arith.constant 5.000000e-01 : f32
    %55 = vector.broadcast %cst_30 : f32 to vector<32x256xf32>
    %56 = arith.mulf %55, %54 : vector<32x256xf32>
    %cst_31 = arith.constant 5.000000e-01 : f32
    %57 = vector.broadcast %cst_31 : f32 to vector<32x256xf32>
    %58 = arith.addf %56, %57 : vector<32x256xf32>
    %cst_32 = arith.constant 0.000000e+00 : f32
    %59 = vector.broadcast %cst_32 : f32 to vector<32x256xf32>
    %60 = arith.maximumf %49, %59 : vector<32x256xf32>
    %61 = arith.mulf %58, %60 : vector<32x256xf32>
    %c0_33 = arith.constant 0 : index
    %c0_34 = arith.constant 0 : index
    %62 = vector.load %arg7[%c0_33, %c0_34] : memref<32x256xf32, #tpu.memory_space<vmem>>, vector<32x256xf32>
    tpu.vector_store %arg7[%c0_33, %c0_34], %49 {strides = array<i32>} : memref<32x256xf32, #tpu.memory_space<vmem>>, vector<32x256xf32>,
    %63 = arith.truncf %61 : vector<32x256xf32> to vector<32x256xbf16>
    %c16 = arith.constant 16 : index
    %c0_35 = arith.constant 0 : index
    %64 = vector.load %arg6[%c16, %c0_35] : memref<48x256xbf16, #tpu.memory_space<vmem>>, vector<32x256xbf16>
    tpu.vector_store %arg6[%c16, %c0_35], %63 {strides = array<i32>} : memref<48x256xbf16, #tpu.memory_space<vmem>>, vector<32x256xbf16>,
    %c0_36 = arith.constant 0 : index
    %c0_37 = arith.constant 0 : index
    %c0_38 = arith.constant 0 : index
    %c0_39 = arith.constant 0 : index
    %65 = vector.load %arg5[%c0_36, %c0_37, %c0_38, %c0_39] : memref<1x32x8x256xf32, #tpu.memory_space<vmem>>, vector<1x32x1x256xf32>
    %66 = vector.shape_cast %65 : vector<1x32x1x256xf32> to vector<32x256xf32>
    %67 = vector.shape_cast %61 : vector<32x256xf32> to vector<1x32x1x256xf32>
    tpu.vector_store %arg5[%c0_36, %c0_37, %c0_38, %c0_39], %67 {strides = array<i32>} : memref<1x32x8x256xf32, #tpu.memory_space<vmem>>, vector<1x32x1x256xf32>,
    %c0_40 = arith.constant 0 : index
    %c1 = arith.constant 1 : index
    %c0_41 = arith.constant 0 : index
    %c0_42 = arith.constant 0 : index
    %68 = vector.load %arg2[%c0_40, %c1, %c0_41, %c0_42] : memref<1x8x4x256xbf16, #tpu.memory_space<vmem>>, vector<1x1x4x256xbf16>
    %69 = vector.shape_cast %68 : vector<1x1x4x256xbf16> to vector<4x256xbf16>
    %c0_43 = arith.constant 0 : index
    %c0_44 = arith.constant 0 : index
    %70 = vector.load %arg6[%c0_43, %c0_44] : memref<48x256xbf16, #tpu.memory_space<vmem>>, vector<4x256xbf16>
    tpu.vector_store %arg6[%c0_43, %c0_44], %69 {strides = array<i32>} : memref<48x256xbf16, #tpu.memory_space<vmem>>, vector<4x256xbf16>,
    %c0_45 = arith.constant 0 : index
    %c0_46 = arith.constant 0 : index
    %71 = vector.load %arg3[%c0_45, %c0_46] : memref<128x48xbf16, #tpu.memory_space<vmem>>, vector<128x48xbf16>
    %c0_47 = arith.constant 0 : index
    %c0_48 = arith.constant 0 : index
    %72 = vector.load %arg6[%c0_47, %c0_48] : memref<48x256xbf16, #tpu.memory_space<vmem>>, vector<48x256xbf16>
    %cst_49 = arith.constant dense<0.000000e+00> : vector<128x256xf32>
    %73 = tpu.matmul %71, %72, %cst_49 {dimension_numbers = #tpu.dot_dimension_numbers<[1], [0], [0], [1], [0, 0, 1, 1], [], []>} : vector<128x48xbf16>, vector<48x256xbf16>, vector<128x256xf32> -> vector<128x256xf32>
    %c0_50 = arith.constant 0 : index
    %c0_51 = arith.constant 0 : index
    %74 = vector.load %arg7[%c0_50, %c0_51] : memref<32x256xf32, #tpu.memory_space<vmem>>, vector<32x256xf32>
    %75 = vector.extract_strided_slice %73 {offsets = [0, 0], sizes = [32, 256], strides = [1, 1]} : vector<128x256xf32> to vector<32x256xf32>
    %76 = vector.extract_strided_slice %73 {offsets = [32, 0], sizes = [32, 256], strides = [1, 1]} : vector<128x256xf32> to vector<32x256xf32>
    %77 = vector.extract_strided_slice %73 {offsets = [64, 0], sizes = [32, 256], strides = [1, 1]} : vector<128x256xf32> to vector<32x256xf32>
    %78 = vector.extract_strided_slice %73 {offsets = [96, 0], sizes = [32, 256], strides = [1, 1]} : vector<128x256xf32> to vector<32x256xf32>
    %79 = arith.mulf %11, %74 : vector<32x256xf32>
    %80 = arith.addf %75, %79 : vector<32x256xf32>
    %cst_52 = arith.constant 5.000000e-01 : f32
    %81 = vector.broadcast %cst_52 : f32 to vector<32x256xf32>
    %82 = arith.mulf %81, %80 : vector<32x256xf32>
    %83 = math.tanh %82 : vector<32x256xf32>
    %cst_53 = arith.constant 5.000000e-01 : f32
    %84 = vector.broadcast %cst_53 : f32 to vector<32x256xf32>
    %85 = arith.mulf %84, %83 : vector<32x256xf32>
    %cst_54 = arith.constant 5.000000e-01 : f32
    %86 = vector.broadcast %cst_54 : f32 to vector<32x256xf32>
    %87 = arith.addf %85, %86 : vector<32x256xf32>
    %88 = arith.mulf %13, %74 : vector<32x256xf32>
    %89 = arith.addf %76, %88 : vector<32x256xf32>
    %cst_55 = arith.constant 5.000000e-01 : f32
    %90 = vector.broadcast %cst_55 : f32 to vector<32x256xf32>
    %91 = arith.mulf %90, %89 : vector<32x256xf32>
    %92 = math.tanh %91 : vector<32x256xf32>
    %cst_56 = arith.constant 5.000000e-01 : f32
    %93 = vector.broadcast %cst_56 : f32 to vector<32x256xf32>
    %94 = arith.mulf %93, %92 : vector<32x256xf32>
    %cst_57 = arith.constant 5.000000e-01 : f32
    %95 = vector.broadcast %cst_57 : f32 to vector<32x256xf32>
    %96 = arith.addf %94, %95 : vector<32x256xf32>
    %97 = arith.mulf %96, %74 : vector<32x256xf32>
    %cst_58 = arith.constant 0.000000e+00 : f32
    %98 = vector.broadcast %cst_58 : f32 to vector<32x256xf32>
    %99 = arith.maximumf %77, %98 : vector<32x256xf32>
    %100 = arith.mulf %87, %99 : vector<32x256xf32>
    %101 = arith.addf %97, %100 : vector<32x256xf32>
    %102 = arith.mulf %15, %101 : vector<32x256xf32>
    %103 = arith.addf %78, %102 : vector<32x256xf32>
    %cst_59 = arith.constant 5.000000e-01 : f32
    %104 = vector.broadcast %cst_59 : f32 to vector<32x256xf32>
    %105 = arith.mulf %104, %103 : vector<32x256xf32>
    %106 = math.tanh %105 : vector<32x256xf32>
    %cst_60 = arith.constant 5.000000e-01 : f32
    %107 = vector.broadcast %cst_60 : f32 to vector<32x256xf32>
    %108 = arith.mulf %107, %106 : vector<32x256xf32>
    %cst_61 = arith.constant 5.000000e-01 : f32
    %109 = vector.broadcast %cst_61 : f32 to vector<32x256xf32>
    %110 = arith.addf %108, %109 : vector<32x256xf32>
    %cst_62 = arith.constant 0.000000e+00 : f32
    %111 = vector.broadcast %cst_62 : f32 to vector<32x256xf32>
    %112 = arith.maximumf %101, %111 : vector<32x256xf32>
    %113 = arith.mulf %110, %112 : vector<32x256xf32>
    %c0_63 = arith.constant 0 : index
    %c0_64 = arith.constant 0 : index
    %114 = vector.load %arg7[%c0_63, %c0_64] : memref<32x256xf32, #tpu.memory_space<vmem>>, vector<32x256xf32>
    tpu.vector_store %arg7[%c0_63, %c0_64], %101 {strides = array<i32>} : memref<32x256xf32, #tpu.memory_space<vmem>>, vector<32x256xf32>,
    %115 = arith.truncf %113 : vector<32x256xf32> to vector<32x256xbf16>
    %c16_65 = arith.constant 16 : index
    %c0_66 = arith.constant 0 : index
    %116 = vector.load %arg6[%c16_65, %c0_66] : memref<48x256xbf16, #tpu.memory_space<vmem>>, vector<32x256xbf16>
    tpu.vector_store %arg6[%c16_65, %c0_66], %115 {strides = array<i32>} : memref<48x256xbf16, #tpu.memory_space<vmem>>, vector<32x256xbf16>,
    %c0_67 = arith.constant 0 : index
    %c0_68 = arith.constant 0 : index
    %c1_69 = arith.constant 1 : index
    %c0_70 = arith.constant 0 : index
    %117 = vector.load %arg5[%c0_67, %c0_68, %c1_69, %c0_70] : memref<1x32x8x256xf32, #tpu.memory_space<vmem>>, vector<1x32x1x256xf32>
    %118 = vector.shape_cast %117 : vector<1x32x1x256xf32> to vector<32x256xf32>
    %119 = vector.shape_cast %113 : vector<32x256xf32> to vector<1x32x1x256xf32>
    tpu.vector_store %arg5[%c0_67, %c0_68, %c1_69, %c0_70], %119 {strides = array<i32>} : memref<1x32x8x256xf32, #tpu.memory_space<vmem>>, vector<1x32x1x256xf32>,
    %c0_71 = arith.constant 0 : index
    %c2 = arith.constant 2 : index
    %c0_72 = arith.constant 0 : index
    %c0_73 = arith.constant 0 : index
    %120 = vector.load %arg2[%c0_71, %c2, %c0_72, %c0_73] : memref<1x8x4x256xbf16, #tpu.memory_space<vmem>>, vector<1x1x4x256xbf16>
    %121 = vector.shape_cast %120 : vector<1x1x4x256xbf16> to vector<4x256xbf16>
    %c0_74 = arith.constant 0 : index
    %c0_75 = arith.constant 0 : index
    %122 = vector.load %arg6[%c0_74, %c0_75] : memref<48x256xbf16, #tpu.memory_space<vmem>>, vector<4x256xbf16>
    tpu.vector_store %arg6[%c0_74, %c0_75], %121 {strides = array<i32>} : memref<48x256xbf16, #tpu.memory_space<vmem>>, vector<4x256xbf16>,
    %c0_76 = arith.constant 0 : index
    %c0_77 = arith.constant 0 : index
    %123 = vector.load %arg3[%c0_76, %c0_77] : memref<128x48xbf16, #tpu.memory_space<vmem>>, vector<128x48xbf16>
    %c0_78 = arith.constant 0 : index
    %c0_79 = arith.constant 0 : index
    %124 = vector.load %arg6[%c0_78, %c0_79] : memref<48x256xbf16, #tpu.memory_space<vmem>>, vector<48x256xbf16>
    %cst_80 = arith.constant dense<0.000000e+00> : vector<128x256xf32>
    %125 = tpu.matmul %123, %124, %cst_80 {dimension_numbers = #tpu.dot_dimension_numbers<[1], [0], [0], [1], [0, 0, 1, 1], [], []>} : vector<128x48xbf16>, vector<48x256xbf16>, vector<128x256xf32> -> vector<128x256xf32>
    %c0_81 = arith.constant 0 : index
    %c0_82 = arith.constant 0 : index
    %126 = vector.load %arg7[%c0_81, %c0_82] : memref<32x256xf32, #tpu.memory_space<vmem>>, vector<32x256xf32>
    %127 = vector.extract_strided_slice %125 {offsets = [0, 0], sizes = [32, 256], strides = [1, 1]} : vector<128x256xf32> to vector<32x256xf32>
    %128 = vector.extract_strided_slice %125 {offsets = [32, 0], sizes = [32, 256], strides = [1, 1]} : vector<128x256xf32> to vector<32x256xf32>
    %129 = vector.extract_strided_slice %125 {offsets = [64, 0], sizes = [32, 256], strides = [1, 1]} : vector<128x256xf32> to vector<32x256xf32>
    %130 = vector.extract_strided_slice %125 {offsets = [96, 0], sizes = [32, 256], strides = [1, 1]} : vector<128x256xf32> to vector<32x256xf32>
    %131 = arith.mulf %11, %126 : vector<32x256xf32>
    %132 = arith.addf %127, %131 : vector<32x256xf32>
    %cst_83 = arith.constant 5.000000e-01 : f32
    %133 = vector.broadcast %cst_83 : f32 to vector<32x256xf32>
    %134 = arith.mulf %133, %132 : vector<32x256xf32>
    %135 = math.tanh %134 : vector<32x256xf32>
    %cst_84 = arith.constant 5.000000e-01 : f32
    %136 = vector.broadcast %cst_84 : f32 to vector<32x256xf32>
    %137 = arith.mulf %136, %135 : vector<32x256xf32>
    %cst_85 = arith.constant 5.000000e-01 : f32
    %138 = vector.broadcast %cst_85 : f32 to vector<32x256xf32>
    %139 = arith.addf %137, %138 : vector<32x256xf32>
    %140 = arith.mulf %13, %126 : vector<32x256xf32>
    %141 = arith.addf %128, %140 : vector<32x256xf32>
    %cst_86 = arith.constant 5.000000e-01 : f32
    %142 = vector.broadcast %cst_86 : f32 to vector<32x256xf32>
    %143 = arith.mulf %142, %141 : vector<32x256xf32>
    %144 = math.tanh %143 : vector<32x256xf32>
    %cst_87 = arith.constant 5.000000e-01 : f32
    %145 = vector.broadcast %cst_87 : f32 to vector<32x256xf32>
    %146 = arith.mulf %145, %144 : vector<32x256xf32>
    %cst_88 = arith.constant 5.000000e-01 : f32
    %147 = vector.broadcast %cst_88 : f32 to vector<32x256xf32>
    %148 = arith.addf %146, %147 : vector<32x256xf32>
    %149 = arith.mulf %148, %126 : vector<32x256xf32>
    %cst_89 = arith.constant 0.000000e+00 : f32
    %150 = vector.broadcast %cst_89 : f32 to vector<32x256xf32>
    %151 = arith.maximumf %129, %150 : vector<32x256xf32>
    %152 = arith.mulf %139, %151 : vector<32x256xf32>
    %153 = arith.addf %149, %152 : vector<32x256xf32>
    %154 = arith.mulf %15, %153 : vector<32x256xf32>
    %155 = arith.addf %130, %154 : vector<32x256xf32>
    %cst_90 = arith.constant 5.000000e-01 : f32
    %156 = vector.broadcast %cst_90 : f32 to vector<32x256xf32>
    %157 = arith.mulf %156, %155 : vector<32x256xf32>
    %158 = math.tanh %157 : vector<32x256xf32>
    %cst_91 = arith.constant 5.000000e-01 : f32
    %159 = vector.broadcast %cst_91 : f32 to vector<32x256xf32>
    %160 = arith.mulf %159, %158 : vector<32x256xf32>
    %cst_92 = arith.constant 5.000000e-01 : f32
    %161 = vector.broadcast %cst_92 : f32 to vector<32x256xf32>
    %162 = arith.addf %160, %161 : vector<32x256xf32>
    %cst_93 = arith.constant 0.000000e+00 : f32
    %163 = vector.broadcast %cst_93 : f32 to vector<32x256xf32>
    %164 = arith.maximumf %153, %163 : vector<32x256xf32>
    %165 = arith.mulf %162, %164 : vector<32x256xf32>
    %c0_94 = arith.constant 0 : index
    %c0_95 = arith.constant 0 : index
    %166 = vector.load %arg7[%c0_94, %c0_95] : memref<32x256xf32, #tpu.memory_space<vmem>>, vector<32x256xf32>
    tpu.vector_store %arg7[%c0_94, %c0_95], %153 {strides = array<i32>} : memref<32x256xf32, #tpu.memory_space<vmem>>, vector<32x256xf32>,
    %167 = arith.truncf %165 : vector<32x256xf32> to vector<32x256xbf16>
    %c16_96 = arith.constant 16 : index
    %c0_97 = arith.constant 0 : index
    %168 = vector.load %arg6[%c16_96, %c0_97] : memref<48x256xbf16, #tpu.memory_space<vmem>>, vector<32x256xbf16>
    tpu.vector_store %arg6[%c16_96, %c0_97], %167 {strides = array<i32>} : memref<48x256xbf16, #tpu.memory_space<vmem>>, vector<32x256xbf16>,
    %c0_98 = arith.constant 0 : index
    %c0_99 = arith.constant 0 : index
    %c2_100 = arith.constant 2 : index
    %c0_101 = arith.constant 0 : index
    %169 = vector.load %arg5[%c0_98, %c0_99, %c2_100, %c0_101] : memref<1x32x8x256xf32, #tpu.memory_space<vmem>>, vector<1x32x1x256xf32>
    %170 = vector.shape_cast %169 : vector<1x32x1x256xf32> to vector<32x256xf32>
    %171 = vector.shape_cast %165 : vector<32x256xf32> to vector<1x32x1x256xf32>
    tpu.vector_store %arg5[%c0_98, %c0_99, %c2_100, %c0_101], %171 {strides = array<i32>} : memref<1x32x8x256xf32, #tpu.memory_space<vmem>>, vector<1x32x1x256xf32>,
    %c0_102 = arith.constant 0 : index
    %c3 = arith.constant 3 : index
    %c0_103 = arith.constant 0 : index
    %c0_104 = arith.constant 0 : index
    %172 = vector.load %arg2[%c0_102, %c3, %c0_103, %c0_104] : memref<1x8x4x256xbf16, #tpu.memory_space<vmem>>, vector<1x1x4x256xbf16>
    %173 = vector.shape_cast %172 : vector<1x1x4x256xbf16> to vector<4x256xbf16>
    %c0_105 = arith.constant 0 : index
    %c0_106 = arith.constant 0 : index
    %174 = vector.load %arg6[%c0_105, %c0_106] : memref<48x256xbf16, #tpu.memory_space<vmem>>, vector<4x256xbf16>
    tpu.vector_store %arg6[%c0_105, %c0_106], %173 {strides = array<i32>} : memref<48x256xbf16, #tpu.memory_space<vmem>>, vector<4x256xbf16>,
    %c0_107 = arith.constant 0 : index
    %c0_108 = arith.constant 0 : index
    %175 = vector.load %arg3[%c0_107, %c0_108] : memref<128x48xbf16, #tpu.memory_space<vmem>>, vector<128x48xbf16>
    %c0_109 = arith.constant 0 : index
    %c0_110 = arith.constant 0 : index
    %176 = vector.load %arg6[%c0_109, %c0_110] : memref<48x256xbf16, #tpu.memory_space<vmem>>, vector<48x256xbf16>
    %cst_111 = arith.constant dense<0.000000e+00> : vector<128x256xf32>
    %177 = tpu.matmul %175, %176, %cst_111 {dimension_numbers = #tpu.dot_dimension_numbers<[1], [0], [0], [1], [0, 0, 1, 1], [], []>} : vector<128x48xbf16>, vector<48x256xbf16>, vector<128x256xf32> -> vector<128x256xf32>
    %c0_112 = arith.constant 0 : index
    %c0_113 = arith.constant 0 : index
    %178 = vector.load %arg7[%c0_112, %c0_113] : memref<32x256xf32, #tpu.memory_space<vmem>>, vector<32x256xf32>
    %179 = vector.extract_strided_slice %177 {offsets = [0, 0], sizes = [32, 256], strides = [1, 1]} : vector<128x256xf32> to vector<32x256xf32>
    %180 = vector.extract_strided_slice %177 {offsets = [32, 0], sizes = [32, 256], strides = [1, 1]} : vector<128x256xf32> to vector<32x256xf32>
    %181 = vector.extract_strided_slice %177 {offsets = [64, 0], sizes = [32, 256], strides = [1, 1]} : vector<128x256xf32> to vector<32x256xf32>
    %182 = vector.extract_strided_slice %177 {offsets = [96, 0], sizes = [32, 256], strides = [1, 1]} : vector<128x256xf32> to vector<32x256xf32>
    %183 = arith.mulf %11, %178 : vector<32x256xf32>
    %184 = arith.addf %179, %183 : vector<32x256xf32>
    %cst_114 = arith.constant 5.000000e-01 : f32
    %185 = vector.broadcast %cst_114 : f32 to vector<32x256xf32>
    %186 = arith.mulf %185, %184 : vector<32x256xf32>
    %187 = math.tanh %186 : vector<32x256xf32>
    %cst_115 = arith.constant 5.000000e-01 : f32
    %188 = vector.broadcast %cst_115 : f32 to vector<32x256xf32>
    %189 = arith.mulf %188, %187 : vector<32x256xf32>
    %cst_116 = arith.constant 5.000000e-01 : f32
    %190 = vector.broadcast %cst_116 : f32 to vector<32x256xf32>
    %191 = arith.addf %189, %190 : vector<32x256xf32>
    %192 = arith.mulf %13, %178 : vector<32x256xf32>
    %193 = arith.addf %180, %192 : vector<32x256xf32>
    %cst_117 = arith.constant 5.000000e-01 : f32
    %194 = vector.broadcast %cst_117 : f32 to vector<32x256xf32>
    %195 = arith.mulf %194, %193 : vector<32x256xf32>
    %196 = math.tanh %195 : vector<32x256xf32>
    %cst_118 = arith.constant 5.000000e-01 : f32
    %197 = vector.broadcast %cst_118 : f32 to vector<32x256xf32>
    %198 = arith.mulf %197, %196 : vector<32x256xf32>
    %cst_119 = arith.constant 5.000000e-01 : f32
    %199 = vector.broadcast %cst_119 : f32 to vector<32x256xf32>
    %200 = arith.addf %198, %199 : vector<32x256xf32>
    %201 = arith.mulf %200, %178 : vector<32x256xf32>
    %cst_120 = arith.constant 0.000000e+00 : f32
    %202 = vector.broadcast %cst_120 : f32 to vector<32x256xf32>
    %203 = arith.maximumf %181, %202 : vector<32x256xf32>
    %204 = arith.mulf %191, %203 : vector<32x256xf32>
    %205 = arith.addf %201, %204 : vector<32x256xf32>
    %206 = arith.mulf %15, %205 : vector<32x256xf32>
    %207 = arith.addf %182, %206 : vector<32x256xf32>
    %cst_121 = arith.constant 5.000000e-01 : f32
    %208 = vector.broadcast %cst_121 : f32 to vector<32x256xf32>
    %209 = arith.mulf %208, %207 : vector<32x256xf32>
    %210 = math.tanh %209 : vector<32x256xf32>
    %cst_122 = arith.constant 5.000000e-01 : f32
    %211 = vector.broadcast %cst_122 : f32 to vector<32x256xf32>
    %212 = arith.mulf %211, %210 : vector<32x256xf32>
    %cst_123 = arith.constant 5.000000e-01 : f32
    %213 = vector.broadcast %cst_123 : f32 to vector<32x256xf32>
    %214 = arith.addf %212, %213 : vector<32x256xf32>
    %cst_124 = arith.constant 0.000000e+00 : f32
    %215 = vector.broadcast %cst_124 : f32 to vector<32x256xf32>
    %216 = arith.maximumf %205, %215 : vector<32x256xf32>
    %217 = arith.mulf %214, %216 : vector<32x256xf32>
    %c0_125 = arith.constant 0 : index
    %c0_126 = arith.constant 0 : index
    %218 = vector.load %arg7[%c0_125, %c0_126] : memref<32x256xf32, #tpu.memory_space<vmem>>, vector<32x256xf32>
    tpu.vector_store %arg7[%c0_125, %c0_126], %205 {strides = array<i32>} : memref<32x256xf32, #tpu.memory_space<vmem>>, vector<32x256xf32>,
    %219 = arith.truncf %217 : vector<32x256xf32> to vector<32x256xbf16>
    %c16_127 = arith.constant 16 : index
    %c0_128 = arith.constant 0 : index
    %220 = vector.load %arg6[%c16_127, %c0_128] : memref<48x256xbf16, #tpu.memory_space<vmem>>, vector<32x256xbf16>
    tpu.vector_store %arg6[%c16_127, %c0_128], %219 {strides = array<i32>} : memref<48x256xbf16, #tpu.memory_space<vmem>>, vector<32x256xbf16>,
    %c0_129 = arith.constant 0 : index
    %c0_130 = arith.constant 0 : index
    %c3_131 = arith.constant 3 : index
    %c0_132 = arith.constant 0 : index
    %221 = vector.load %arg5[%c0_129, %c0_130, %c3_131, %c0_132] : memref<1x32x8x256xf32, #tpu.memory_space<vmem>>, vector<1x32x1x256xf32>
    %222 = vector.shape_cast %221 : vector<1x32x1x256xf32> to vector<32x256xf32>
    %223 = vector.shape_cast %217 : vector<32x256xf32> to vector<1x32x1x256xf32>
    tpu.vector_store %arg5[%c0_129, %c0_130, %c3_131, %c0_132], %223 {strides = array<i32>} : memref<1x32x8x256xf32, #tpu.memory_space<vmem>>, vector<1x32x1x256xf32>,
    %c0_133 = arith.constant 0 : index
    %c4 = arith.constant 4 : index
    %c0_134 = arith.constant 0 : index
    %c0_135 = arith.constant 0 : index
    %224 = vector.load %arg2[%c0_133, %c4, %c0_134, %c0_135] : memref<1x8x4x256xbf16, #tpu.memory_space<vmem>>, vector<1x1x4x256xbf16>
    %225 = vector.shape_cast %224 : vector<1x1x4x256xbf16> to vector<4x256xbf16>
    %c0_136 = arith.constant 0 : index
    %c0_137 = arith.constant 0 : index
    %226 = vector.load %arg6[%c0_136, %c0_137] : memref<48x256xbf16, #tpu.memory_space<vmem>>, vector<4x256xbf16>
    tpu.vector_store %arg6[%c0_136, %c0_137], %225 {strides = array<i32>} : memref<48x256xbf16, #tpu.memory_space<vmem>>, vector<4x256xbf16>,
    %c0_138 = arith.constant 0 : index
    %c0_139 = arith.constant 0 : index
    %227 = vector.load %arg3[%c0_138, %c0_139] : memref<128x48xbf16, #tpu.memory_space<vmem>>, vector<128x48xbf16>
    %c0_140 = arith.constant 0 : index
    %c0_141 = arith.constant 0 : index
    %228 = vector.load %arg6[%c0_140, %c0_141] : memref<48x256xbf16, #tpu.memory_space<vmem>>, vector<48x256xbf16>
    %cst_142 = arith.constant dense<0.000000e+00> : vector<128x256xf32>
    %229 = tpu.matmul %227, %228, %cst_142 {dimension_numbers = #tpu.dot_dimension_numbers<[1], [0], [0], [1], [0, 0, 1, 1], [], []>} : vector<128x48xbf16>, vector<48x256xbf16>, vector<128x256xf32> -> vector<128x256xf32>
    %c0_143 = arith.constant 0 : index
    %c0_144 = arith.constant 0 : index
    %230 = vector.load %arg7[%c0_143, %c0_144] : memref<32x256xf32, #tpu.memory_space<vmem>>, vector<32x256xf32>
    %231 = vector.extract_strided_slice %229 {offsets = [0, 0], sizes = [32, 256], strides = [1, 1]} : vector<128x256xf32> to vector<32x256xf32>
    %232 = vector.extract_strided_slice %229 {offsets = [32, 0], sizes = [32, 256], strides = [1, 1]} : vector<128x256xf32> to vector<32x256xf32>
    %233 = vector.extract_strided_slice %229 {offsets = [64, 0], sizes = [32, 256], strides = [1, 1]} : vector<128x256xf32> to vector<32x256xf32>
    %234 = vector.extract_strided_slice %229 {offsets = [96, 0], sizes = [32, 256], strides = [1, 1]} : vector<128x256xf32> to vector<32x256xf32>
    %235 = arith.mulf %11, %230 : vector<32x256xf32>
    %236 = arith.addf %231, %235 : vector<32x256xf32>
    %cst_145 = arith.constant 5.000000e-01 : f32
    %237 = vector.broadcast %cst_145 : f32 to vector<32x256xf32>
    %238 = arith.mulf %237, %236 : vector<32x256xf32>
    %239 = math.tanh %238 : vector<32x256xf32>
    %cst_146 = arith.constant 5.000000e-01 : f32
    %240 = vector.broadcast %cst_146 : f32 to vector<32x256xf32>
    %241 = arith.mulf %240, %239 : vector<32x256xf32>
    %cst_147 = arith.constant 5.000000e-01 : f32
    %242 = vector.broadcast %cst_147 : f32 to vector<32x256xf32>
    %243 = arith.addf %241, %242 : vector<32x256xf32>
    %244 = arith.mulf %13, %230 : vector<32x256xf32>
    %245 = arith.addf %232, %244 : vector<32x256xf32>
    %cst_148 = arith.constant 5.000000e-01 : f32
    %246 = vector.broadcast %cst_148 : f32 to vector<32x256xf32>
    %247 = arith.mulf %246, %245 : vector<32x256xf32>
    %248 = math.tanh %247 : vector<32x256xf32>
    %cst_149 = arith.constant 5.000000e-01 : f32
    %249 = vector.broadcast %cst_149 : f32 to vector<32x256xf32>
    %250 = arith.mulf %249, %248 : vector<32x256xf32>
    %cst_150 = arith.constant 5.000000e-01 : f32
    %251 = vector.broadcast %cst_150 : f32 to vector<32x256xf32>
    %252 = arith.addf %250, %251 : vector<32x256xf32>
    %253 = arith.mulf %252, %230 : vector<32x256xf32>
    %cst_151 = arith.constant 0.000000e+00 : f32
    %254 = vector.broadcast %cst_151 : f32 to vector<32x256xf32>
    %255 = arith.maximumf %233, %254 : vector<32x256xf32>
    %256 = arith.mulf %243, %255 : vector<32x256xf32>
    %257 = arith.addf %253, %256 : vector<32x256xf32>
    %258 = arith.mulf %15, %257 : vector<32x256xf32>
    %259 = arith.addf %234, %258 : vector<32x256xf32>
    %cst_152 = arith.constant 5.000000e-01 : f32
    %260 = vector.broadcast %cst_152 : f32 to vector<32x256xf32>
    %261 = arith.mulf %260, %259 : vector<32x256xf32>
    %262 = math.tanh %261 : vector<32x256xf32>
    %cst_153 = arith.constant 5.000000e-01 : f32
    %263 = vector.broadcast %cst_153 : f32 to vector<32x256xf32>
    %264 = arith.mulf %263, %262 : vector<32x256xf32>
    %cst_154 = arith.constant 5.000000e-01 : f32
    %265 = vector.broadcast %cst_154 : f32 to vector<32x256xf32>
    %266 = arith.addf %264, %265 : vector<32x256xf32>
    %cst_155 = arith.constant 0.000000e+00 : f32
    %267 = vector.broadcast %cst_155 : f32 to vector<32x256xf32>
    %268 = arith.maximumf %257, %267 : vector<32x256xf32>
    %269 = arith.mulf %266, %268 : vector<32x256xf32>
    %c0_156 = arith.constant 0 : index
    %c0_157 = arith.constant 0 : index
    %270 = vector.load %arg7[%c0_156, %c0_157] : memref<32x256xf32, #tpu.memory_space<vmem>>, vector<32x256xf32>
    tpu.vector_store %arg7[%c0_156, %c0_157], %257 {strides = array<i32>} : memref<32x256xf32, #tpu.memory_space<vmem>>, vector<32x256xf32>,
    %271 = arith.truncf %269 : vector<32x256xf32> to vector<32x256xbf16>
    %c16_158 = arith.constant 16 : index
    %c0_159 = arith.constant 0 : index
    %272 = vector.load %arg6[%c16_158, %c0_159] : memref<48x256xbf16, #tpu.memory_space<vmem>>, vector<32x256xbf16>
    tpu.vector_store %arg6[%c16_158, %c0_159], %271 {strides = array<i32>} : memref<48x256xbf16, #tpu.memory_space<vmem>>, vector<32x256xbf16>,
    %c0_160 = arith.constant 0 : index
    %c0_161 = arith.constant 0 : index
    %c4_162 = arith.constant 4 : index
    %c0_163 = arith.constant 0 : index
    %273 = vector.load %arg5[%c0_160, %c0_161, %c4_162, %c0_163] : memref<1x32x8x256xf32, #tpu.memory_space<vmem>>, vector<1x32x1x256xf32>
    %274 = vector.shape_cast %273 : vector<1x32x1x256xf32> to vector<32x256xf32>
    %275 = vector.shape_cast %269 : vector<32x256xf32> to vector<1x32x1x256xf32>
    tpu.vector_store %arg5[%c0_160, %c0_161, %c4_162, %c0_163], %275 {strides = array<i32>} : memref<1x32x8x256xf32, #tpu.memory_space<vmem>>, vector<1x32x1x256xf32>,
    %c0_164 = arith.constant 0 : index
    %c5 = arith.constant 5 : index
    %c0_165 = arith.constant 0 : index
    %c0_166 = arith.constant 0 : index
    %276 = vector.load %arg2[%c0_164, %c5, %c0_165, %c0_166] : memref<1x8x4x256xbf16, #tpu.memory_space<vmem>>, vector<1x1x4x256xbf16>
    %277 = vector.shape_cast %276 : vector<1x1x4x256xbf16> to vector<4x256xbf16>
    %c0_167 = arith.constant 0 : index
    %c0_168 = arith.constant 0 : index
    %278 = vector.load %arg6[%c0_167, %c0_168] : memref<48x256xbf16, #tpu.memory_space<vmem>>, vector<4x256xbf16>
    tpu.vector_store %arg6[%c0_167, %c0_168], %277 {strides = array<i32>} : memref<48x256xbf16, #tpu.memory_space<vmem>>, vector<4x256xbf16>,
    %c0_169 = arith.constant 0 : index
    %c0_170 = arith.constant 0 : index
    %279 = vector.load %arg3[%c0_169, %c0_170] : memref<128x48xbf16, #tpu.memory_space<vmem>>, vector<128x48xbf16>
    %c0_171 = arith.constant 0 : index
    %c0_172 = arith.constant 0 : index
    %280 = vector.load %arg6[%c0_171, %c0_172] : memref<48x256xbf16, #tpu.memory_space<vmem>>, vector<48x256xbf16>
    %cst_173 = arith.constant dense<0.000000e+00> : vector<128x256xf32>
    %281 = tpu.matmul %279, %280, %cst_173 {dimension_numbers = #tpu.dot_dimension_numbers<[1], [0], [0], [1], [0, 0, 1, 1], [], []>} : vector<128x48xbf16>, vector<48x256xbf16>, vector<128x256xf32> -> vector<128x256xf32>
    %c0_174 = arith.constant 0 : index
    %c0_175 = arith.constant 0 : index
    %282 = vector.load %arg7[%c0_174, %c0_175] : memref<32x256xf32, #tpu.memory_space<vmem>>, vector<32x256xf32>
    %283 = vector.extract_strided_slice %281 {offsets = [0, 0], sizes = [32, 256], strides = [1, 1]} : vector<128x256xf32> to vector<32x256xf32>
    %284 = vector.extract_strided_slice %281 {offsets = [32, 0], sizes = [32, 256], strides = [1, 1]} : vector<128x256xf32> to vector<32x256xf32>
    %285 = vector.extract_strided_slice %281 {offsets = [64, 0], sizes = [32, 256], strides = [1, 1]} : vector<128x256xf32> to vector<32x256xf32>
    %286 = vector.extract_strided_slice %281 {offsets = [96, 0], sizes = [32, 256], strides = [1, 1]} : vector<128x256xf32> to vector<32x256xf32>
    %287 = arith.mulf %11, %282 : vector<32x256xf32>
    %288 = arith.addf %283, %287 : vector<32x256xf32>
    %cst_176 = arith.constant 5.000000e-01 : f32
    %289 = vector.broadcast %cst_176 : f32 to vector<32x256xf32>
    %290 = arith.mulf %289, %288 : vector<32x256xf32>
    %291 = math.tanh %290 : vector<32x256xf32>
    %cst_177 = arith.constant 5.000000e-01 : f32
    %292 = vector.broadcast %cst_177 : f32 to vector<32x256xf32>
    %293 = arith.mulf %292, %291 : vector<32x256xf32>
    %cst_178 = arith.constant 5.000000e-01 : f32
    %294 = vector.broadcast %cst_178 : f32 to vector<32x256xf32>
    %295 = arith.addf %293, %294 : vector<32x256xf32>
    %296 = arith.mulf %13, %282 : vector<32x256xf32>
    %297 = arith.addf %284, %296 : vector<32x256xf32>
    %cst_179 = arith.constant 5.000000e-01 : f32
    %298 = vector.broadcast %cst_179 : f32 to vector<32x256xf32>
    %299 = arith.mulf %298, %297 : vector<32x256xf32>
    %300 = math.tanh %299 : vector<32x256xf32>
    %cst_180 = arith.constant 5.000000e-01 : f32
    %301 = vector.broadcast %cst_180 : f32 to vector<32x256xf32>
    %302 = arith.mulf %301, %300 : vector<32x256xf32>
    %cst_181 = arith.constant 5.000000e-01 : f32
    %303 = vector.broadcast %cst_181 : f32 to vector<32x256xf32>
    %304 = arith.addf %302, %303 : vector<32x256xf32>
    %305 = arith.mulf %304, %282 : vector<32x256xf32>
    %cst_182 = arith.constant 0.000000e+00 : f32
    %306 = vector.broadcast %cst_182 : f32 to vector<32x256xf32>
    %307 = arith.maximumf %285, %306 : vector<32x256xf32>
    %308 = arith.mulf %295, %307 : vector<32x256xf32>
    %309 = arith.addf %305, %308 : vector<32x256xf32>
    %310 = arith.mulf %15, %309 : vector<32x256xf32>
    %311 = arith.addf %286, %310 : vector<32x256xf32>
    %cst_183 = arith.constant 5.000000e-01 : f32
    %312 = vector.broadcast %cst_183 : f32 to vector<32x256xf32>
    %313 = arith.mulf %312, %311 : vector<32x256xf32>
    %314 = math.tanh %313 : vector<32x256xf32>
    %cst_184 = arith.constant 5.000000e-01 : f32
    %315 = vector.broadcast %cst_184 : f32 to vector<32x256xf32>
    %316 = arith.mulf %315, %314 : vector<32x256xf32>
    %cst_185 = arith.constant 5.000000e-01 : f32
    %317 = vector.broadcast %cst_185 : f32 to vector<32x256xf32>
    %318 = arith.addf %316, %317 : vector<32x256xf32>
    %cst_186 = arith.constant 0.000000e+00 : f32
    %319 = vector.broadcast %cst_186 : f32 to vector<32x256xf32>
    %320 = arith.maximumf %309, %319 : vector<32x256xf32>
    %321 = arith.mulf %318, %320 : vector<32x256xf32>
    %c0_187 = arith.constant 0 : index
    %c0_188 = arith.constant 0 : index
    %322 = vector.load %arg7[%c0_187, %c0_188] : memref<32x256xf32, #tpu.memory_space<vmem>>, vector<32x256xf32>
    tpu.vector_store %arg7[%c0_187, %c0_188], %309 {strides = array<i32>} : memref<32x256xf32, #tpu.memory_space<vmem>>, vector<32x256xf32>,
    %323 = arith.truncf %321 : vector<32x256xf32> to vector<32x256xbf16>
    %c16_189 = arith.constant 16 : index
    %c0_190 = arith.constant 0 : index
    %324 = vector.load %arg6[%c16_189, %c0_190] : memref<48x256xbf16, #tpu.memory_space<vmem>>, vector<32x256xbf16>
    tpu.vector_store %arg6[%c16_189, %c0_190], %323 {strides = array<i32>} : memref<48x256xbf16, #tpu.memory_space<vmem>>, vector<32x256xbf16>,
    %c0_191 = arith.constant 0 : index
    %c0_192 = arith.constant 0 : index
    %c5_193 = arith.constant 5 : index
    %c0_194 = arith.constant 0 : index
    %325 = vector.load %arg5[%c0_191, %c0_192, %c5_193, %c0_194] : memref<1x32x8x256xf32, #tpu.memory_space<vmem>>, vector<1x32x1x256xf32>
    %326 = vector.shape_cast %325 : vector<1x32x1x256xf32> to vector<32x256xf32>
    %327 = vector.shape_cast %321 : vector<32x256xf32> to vector<1x32x1x256xf32>
    tpu.vector_store %arg5[%c0_191, %c0_192, %c5_193, %c0_194], %327 {strides = array<i32>} : memref<1x32x8x256xf32, #tpu.memory_space<vmem>>, vector<1x32x1x256xf32>,
    %c0_195 = arith.constant 0 : index
    %c6 = arith.constant 6 : index
    %c0_196 = arith.constant 0 : index
    %c0_197 = arith.constant 0 : index
    %328 = vector.load %arg2[%c0_195, %c6, %c0_196, %c0_197] : memref<1x8x4x256xbf16, #tpu.memory_space<vmem>>, vector<1x1x4x256xbf16>
    %329 = vector.shape_cast %328 : vector<1x1x4x256xbf16> to vector<4x256xbf16>
    %c0_198 = arith.constant 0 : index
    %c0_199 = arith.constant 0 : index
    %330 = vector.load %arg6[%c0_198, %c0_199] : memref<48x256xbf16, #tpu.memory_space<vmem>>, vector<4x256xbf16>
    tpu.vector_store %arg6[%c0_198, %c0_199], %329 {strides = array<i32>} : memref<48x256xbf16, #tpu.memory_space<vmem>>, vector<4x256xbf16>,
    %c0_200 = arith.constant 0 : index
    %c0_201 = arith.constant 0 : index
    %331 = vector.load %arg3[%c0_200, %c0_201] : memref<128x48xbf16, #tpu.memory_space<vmem>>, vector<128x48xbf16>
    %c0_202 = arith.constant 0 : index
    %c0_203 = arith.constant 0 : index
    %332 = vector.load %arg6[%c0_202, %c0_203] : memref<48x256xbf16, #tpu.memory_space<vmem>>, vector<48x256xbf16>
    %cst_204 = arith.constant dense<0.000000e+00> : vector<128x256xf32>
    %333 = tpu.matmul %331, %332, %cst_204 {dimension_numbers = #tpu.dot_dimension_numbers<[1], [0], [0], [1], [0, 0, 1, 1], [], []>} : vector<128x48xbf16>, vector<48x256xbf16>, vector<128x256xf32> -> vector<128x256xf32>
    %c0_205 = arith.constant 0 : index
    %c0_206 = arith.constant 0 : index
    %334 = vector.load %arg7[%c0_205, %c0_206] : memref<32x256xf32, #tpu.memory_space<vmem>>, vector<32x256xf32>
    %335 = vector.extract_strided_slice %333 {offsets = [0, 0], sizes = [32, 256], strides = [1, 1]} : vector<128x256xf32> to vector<32x256xf32>
    %336 = vector.extract_strided_slice %333 {offsets = [32, 0], sizes = [32, 256], strides = [1, 1]} : vector<128x256xf32> to vector<32x256xf32>
    %337 = vector.extract_strided_slice %333 {offsets = [64, 0], sizes = [32, 256], strides = [1, 1]} : vector<128x256xf32> to vector<32x256xf32>
    %338 = vector.extract_strided_slice %333 {offsets = [96, 0], sizes = [32, 256], strides = [1, 1]} : vector<128x256xf32> to vector<32x256xf32>
    %339 = arith.mulf %11, %334 : vector<32x256xf32>
    %340 = arith.addf %335, %339 : vector<32x256xf32>
    %cst_207 = arith.constant 5.000000e-01 : f32
    %341 = vector.broadcast %cst_207 : f32 to vector<32x256xf32>
    %342 = arith.mulf %341, %340 : vector<32x256xf32>
    %343 = math.tanh %342 : vector<32x256xf32>
    %cst_208 = arith.constant 5.000000e-01 : f32
    %344 = vector.broadcast %cst_208 : f32 to vector<32x256xf32>
    %345 = arith.mulf %344, %343 : vector<32x256xf32>
    %cst_209 = arith.constant 5.000000e-01 : f32
    %346 = vector.broadcast %cst_209 : f32 to vector<32x256xf32>
    %347 = arith.addf %345, %346 : vector<32x256xf32>
    %348 = arith.mulf %13, %334 : vector<32x256xf32>
    %349 = arith.addf %336, %348 : vector<32x256xf32>
    %cst_210 = arith.constant 5.000000e-01 : f32
    %350 = vector.broadcast %cst_210 : f32 to vector<32x256xf32>
    %351 = arith.mulf %350, %349 : vector<32x256xf32>
    %352 = math.tanh %351 : vector<32x256xf32>
    %cst_211 = arith.constant 5.000000e-01 : f32
    %353 = vector.broadcast %cst_211 : f32 to vector<32x256xf32>
    %354 = arith.mulf %353, %352 : vector<32x256xf32>
    %cst_212 = arith.constant 5.000000e-01 : f32
    %355 = vector.broadcast %cst_212 : f32 to vector<32x256xf32>
    %356 = arith.addf %354, %355 : vector<32x256xf32>
    %357 = arith.mulf %356, %334 : vector<32x256xf32>
    %cst_213 = arith.constant 0.000000e+00 : f32
    %358 = vector.broadcast %cst_213 : f32 to vector<32x256xf32>
    %359 = arith.maximumf %337, %358 : vector<32x256xf32>
    %360 = arith.mulf %347, %359 : vector<32x256xf32>
    %361 = arith.addf %357, %360 : vector<32x256xf32>
    %362 = arith.mulf %15, %361 : vector<32x256xf32>
    %363 = arith.addf %338, %362 : vector<32x256xf32>
    %cst_214 = arith.constant 5.000000e-01 : f32
    %364 = vector.broadcast %cst_214 : f32 to vector<32x256xf32>
    %365 = arith.mulf %364, %363 : vector<32x256xf32>
    %366 = math.tanh %365 : vector<32x256xf32>
    %cst_215 = arith.constant 5.000000e-01 : f32
    %367 = vector.broadcast %cst_215 : f32 to vector<32x256xf32>
    %368 = arith.mulf %367, %366 : vector<32x256xf32>
    %cst_216 = arith.constant 5.000000e-01 : f32
    %369 = vector.broadcast %cst_216 : f32 to vector<32x256xf32>
    %370 = arith.addf %368, %369 : vector<32x256xf32>
    %cst_217 = arith.constant 0.000000e+00 : f32
    %371 = vector.broadcast %cst_217 : f32 to vector<32x256xf32>
    %372 = arith.maximumf %361, %371 : vector<32x256xf32>
    %373 = arith.mulf %370, %372 : vector<32x256xf32>
    %c0_218 = arith.constant 0 : index
    %c0_219 = arith.constant 0 : index
    %374 = vector.load %arg7[%c0_218, %c0_219] : memref<32x256xf32, #tpu.memory_space<vmem>>, vector<32x256xf32>
    tpu.vector_store %arg7[%c0_218, %c0_219], %361 {strides = array<i32>} : memref<32x256xf32, #tpu.memory_space<vmem>>, vector<32x256xf32>,
    %375 = arith.truncf %373 : vector<32x256xf32> to vector<32x256xbf16>
    %c16_220 = arith.constant 16 : index
    %c0_221 = arith.constant 0 : index
    %376 = vector.load %arg6[%c16_220, %c0_221] : memref<48x256xbf16, #tpu.memory_space<vmem>>, vector<32x256xbf16>
    tpu.vector_store %arg6[%c16_220, %c0_221], %375 {strides = array<i32>} : memref<48x256xbf16, #tpu.memory_space<vmem>>, vector<32x256xbf16>,
    %c0_222 = arith.constant 0 : index
    %c0_223 = arith.constant 0 : index
    %c6_224 = arith.constant 6 : index
    %c0_225 = arith.constant 0 : index
    %377 = vector.load %arg5[%c0_222, %c0_223, %c6_224, %c0_225] : memref<1x32x8x256xf32, #tpu.memory_space<vmem>>, vector<1x32x1x256xf32>
    %378 = vector.shape_cast %377 : vector<1x32x1x256xf32> to vector<32x256xf32>
    %379 = vector.shape_cast %373 : vector<32x256xf32> to vector<1x32x1x256xf32>
    tpu.vector_store %arg5[%c0_222, %c0_223, %c6_224, %c0_225], %379 {strides = array<i32>} : memref<1x32x8x256xf32, #tpu.memory_space<vmem>>, vector<1x32x1x256xf32>,
    %c0_226 = arith.constant 0 : index
    %c7 = arith.constant 7 : index
    %c0_227 = arith.constant 0 : index
    %c0_228 = arith.constant 0 : index
    %380 = vector.load %arg2[%c0_226, %c7, %c0_227, %c0_228] : memref<1x8x4x256xbf16, #tpu.memory_space<vmem>>, vector<1x1x4x256xbf16>
    %381 = vector.shape_cast %380 : vector<1x1x4x256xbf16> to vector<4x256xbf16>
    %c0_229 = arith.constant 0 : index
    %c0_230 = arith.constant 0 : index
    %382 = vector.load %arg6[%c0_229, %c0_230] : memref<48x256xbf16, #tpu.memory_space<vmem>>, vector<4x256xbf16>
    tpu.vector_store %arg6[%c0_229, %c0_230], %381 {strides = array<i32>} : memref<48x256xbf16, #tpu.memory_space<vmem>>, vector<4x256xbf16>,
    %c0_231 = arith.constant 0 : index
    %c0_232 = arith.constant 0 : index
    %383 = vector.load %arg3[%c0_231, %c0_232] : memref<128x48xbf16, #tpu.memory_space<vmem>>, vector<128x48xbf16>
    %c0_233 = arith.constant 0 : index
    %c0_234 = arith.constant 0 : index
    %384 = vector.load %arg6[%c0_233, %c0_234] : memref<48x256xbf16, #tpu.memory_space<vmem>>, vector<48x256xbf16>
    %cst_235 = arith.constant dense<0.000000e+00> : vector<128x256xf32>
    %385 = tpu.matmul %383, %384, %cst_235 {dimension_numbers = #tpu.dot_dimension_numbers<[1], [0], [0], [1], [0, 0, 1, 1], [], []>} : vector<128x48xbf16>, vector<48x256xbf16>, vector<128x256xf32> -> vector<128x256xf32>
    %c0_236 = arith.constant 0 : index
    %c0_237 = arith.constant 0 : index
    %386 = vector.load %arg7[%c0_236, %c0_237] : memref<32x256xf32, #tpu.memory_space<vmem>>, vector<32x256xf32>
    %387 = vector.extract_strided_slice %385 {offsets = [0, 0], sizes = [32, 256], strides = [1, 1]} : vector<128x256xf32> to vector<32x256xf32>
    %388 = vector.extract_strided_slice %385 {offsets = [32, 0], sizes = [32, 256], strides = [1, 1]} : vector<128x256xf32> to vector<32x256xf32>
    %389 = vector.extract_strided_slice %385 {offsets = [64, 0], sizes = [32, 256], strides = [1, 1]} : vector<128x256xf32> to vector<32x256xf32>
    %390 = vector.extract_strided_slice %385 {offsets = [96, 0], sizes = [32, 256], strides = [1, 1]} : vector<128x256xf32> to vector<32x256xf32>
    %391 = arith.mulf %11, %386 : vector<32x256xf32>
    %392 = arith.addf %387, %391 : vector<32x256xf32>
    %cst_238 = arith.constant 5.000000e-01 : f32
    %393 = vector.broadcast %cst_238 : f32 to vector<32x256xf32>
    %394 = arith.mulf %393, %392 : vector<32x256xf32>
    %395 = math.tanh %394 : vector<32x256xf32>
    %cst_239 = arith.constant 5.000000e-01 : f32
    %396 = vector.broadcast %cst_239 : f32 to vector<32x256xf32>
    %397 = arith.mulf %396, %395 : vector<32x256xf32>
    %cst_240 = arith.constant 5.000000e-01 : f32
    %398 = vector.broadcast %cst_240 : f32 to vector<32x256xf32>
    %399 = arith.addf %397, %398 : vector<32x256xf32>
    %400 = arith.mulf %13, %386 : vector<32x256xf32>
    %401 = arith.addf %388, %400 : vector<32x256xf32>
    %cst_241 = arith.constant 5.000000e-01 : f32
    %402 = vector.broadcast %cst_241 : f32 to vector<32x256xf32>
    %403 = arith.mulf %402, %401 : vector<32x256xf32>
    %404 = math.tanh %403 : vector<32x256xf32>
    %cst_242 = arith.constant 5.000000e-01 : f32
    %405 = vector.broadcast %cst_242 : f32 to vector<32x256xf32>
    %406 = arith.mulf %405, %404 : vector<32x256xf32>
    %cst_243 = arith.constant 5.000000e-01 : f32
    %407 = vector.broadcast %cst_243 : f32 to vector<32x256xf32>
    %408 = arith.addf %406, %407 : vector<32x256xf32>
    %409 = arith.mulf %408, %386 : vector<32x256xf32>
    %cst_244 = arith.constant 0.000000e+00 : f32
    %410 = vector.broadcast %cst_244 : f32 to vector<32x256xf32>
    %411 = arith.maximumf %389, %410 : vector<32x256xf32>
    %412 = arith.mulf %399, %411 : vector<32x256xf32>
    %413 = arith.addf %409, %412 : vector<32x256xf32>
    %414 = arith.mulf %15, %413 : vector<32x256xf32>
    %415 = arith.addf %390, %414 : vector<32x256xf32>
    %cst_245 = arith.constant 5.000000e-01 : f32
    %416 = vector.broadcast %cst_245 : f32 to vector<32x256xf32>
    %417 = arith.mulf %416, %415 : vector<32x256xf32>
    %418 = math.tanh %417 : vector<32x256xf32>
    %cst_246 = arith.constant 5.000000e-01 : f32
    %419 = vector.broadcast %cst_246 : f32 to vector<32x256xf32>
    %420 = arith.mulf %419, %418 : vector<32x256xf32>
    %cst_247 = arith.constant 5.000000e-01 : f32
    %421 = vector.broadcast %cst_247 : f32 to vector<32x256xf32>
    %422 = arith.addf %420, %421 : vector<32x256xf32>
    %cst_248 = arith.constant 0.000000e+00 : f32
    %423 = vector.broadcast %cst_248 : f32 to vector<32x256xf32>
    %424 = arith.maximumf %413, %423 : vector<32x256xf32>
    %425 = arith.mulf %422, %424 : vector<32x256xf32>
    %c0_249 = arith.constant 0 : index
    %c0_250 = arith.constant 0 : index
    %426 = vector.load %arg7[%c0_249, %c0_250] : memref<32x256xf32, #tpu.memory_space<vmem>>, vector<32x256xf32>
    tpu.vector_store %arg7[%c0_249, %c0_250], %413 {strides = array<i32>} : memref<32x256xf32, #tpu.memory_space<vmem>>, vector<32x256xf32>,
    %427 = arith.truncf %425 : vector<32x256xf32> to vector<32x256xbf16>
    %c16_251 = arith.constant 16 : index
    %c0_252 = arith.constant 0 : index
    %428 = vector.load %arg6[%c16_251, %c0_252] : memref<48x256xbf16, #tpu.memory_space<vmem>>, vector<32x256xbf16>
    tpu.vector_store %arg6[%c16_251, %c0_252], %427 {strides = array<i32>} : memref<48x256xbf16, #tpu.memory_space<vmem>>, vector<32x256xbf16>,
    %c0_253 = arith.constant 0 : index
    %c0_254 = arith.constant 0 : index
    %c7_255 = arith.constant 7 : index
    %c0_256 = arith.constant 0 : index
    %429 = vector.load %arg5[%c0_253, %c0_254, %c7_255, %c0_256] : memref<1x32x8x256xf32, #tpu.memory_space<vmem>>, vector<1x32x1x256xf32>
    %430 = vector.shape_cast %429 : vector<1x32x1x256xf32> to vector<32x256xf32>
    %431 = vector.shape_cast %425 : vector<32x256xf32> to vector<1x32x1x256xf32>
    tpu.vector_store %arg5[%c0_253, %c0_254, %c7_255, %c0_256], %431 {strides = array<i32>} : memref<1x32x8x256xf32, #tpu.memory_space<vmem>>, vector<1x32x1x256xf32>,
    return
  }
  func.func @transform_0(%arg0: i32, %arg1: i32) -> (i32, i32, i32, i32) {
    %c0_i32 = arith.constant 0 : i32
    %c0_i32_0 = arith.constant 0 : i32
    %c0_i32_1 = arith.constant 0 : i32
    return %arg1, %c0_i32, %c0_i32_0, %arg0 : i32, i32, i32, i32
  }
  func.func @transform_1(%arg0: i32, %arg1: i32) -> (i32, i32) {
    %c0_i32 = arith.constant 0 : i32
    %c0_i32_0 = arith.constant 0 : i32
    %c0_i32_1 = arith.constant 0 : i32
    return %c0_i32, %c0_i32_0 : i32, i32
  }
  func.func @transform_2(%arg0: i32, %arg1: i32) -> (i32, i32) {
    %c0_i32 = arith.constant 0 : i32
    %c0_i32_0 = arith.constant 0 : i32
    return %c0_i32, %arg0 : i32, i32
  }
  func.func @transform_3(%arg0: i32, %arg1: i32) -> (i32, i32, i32, i32) {
    %c0_i32 = arith.constant 0 : i32
    %c0_i32_0 = arith.constant 0 : i32
    %c0_i32_1 = arith.constant 0 : i32
    return %arg1, %c0_i32, %c0_i32_0, %arg0 : i32, i32, i32, i32
  }
}

</mosaic_0001>

<bundles_post_ra>
// kernel: tpu_custom_call.1
= control target key start
LH: loop header
LB: loop body
LE: loop exit
PB: predicated region body
PF: predicated region fallthrough
CT: control target
= control target key end

     0   :  { %8 = vsyncpa [#allocation5], 0  ;;  %s9542_s0 = inlined_call_operand.vmem [shape: bf16[2,8,4,256], index: 0, kind: input, shape index: {}]   ;;  %s9543_s1 = inlined_call_operand.vmem [shape: bf16[128,48], index: 1, kind: input, shape index: {}]   ;;  %s9544_s2 = inlined_call_operand.hbm [shape: bf16[96,256], index: 2, kind: input, shape index: {}]   ;;  %s9545_s3 = inlined_call_operand.hbm [shape: f32[2,32,8,256], index: 3, kind: output, shape index: {}]  }
   0x1   :  { %9 = vsyncpa [#allocation6], 0 }
   0x2   :  { %11 = vsyncpa [#allocation6 + $0x1], 0  ;;  %s7084_s12 = smov 0   ;;  %s7086_s13 = smov 0  }
   0x3   :  { %s7088_s14 = smov 0   ;;  %s7090_s15 = smov 0  }
   0x4   :  { %s7092_s16 = smov 0   ;;  %s7094_s17 = smov 0  }
   0x5 LB: > { %s5520_s18 = sadd.s32 4294967295, %s7055_s17   ;;  %s5521_s19 = sadd.s32 4294967294, %s7055_s17   ;;  %s7055_s17 = sphi %s7094_s17, %s17_s17   ;;  %s7051_s16 = sphi %s7092_s16, %s9619_s16   ;;  %s7047_s15 = sphi %s7090_s15, %s9618_s15   ;;  %s7043_s14 = sphi %s7088_s14, %s9617_s14   ;;  %s7039_s13 = sphi %s7086_s13, %s9616_s13   ;;  %s7035_s12 = sphi %s7084_s12, %s9615_s12  }
   0x6   : > { %s26_s20 = sadd.s32 1, %s7051_s16  ;;  %s113_s21 = sadd.s32 1, %s7043_s14 }
   0x7   : > { %p27_p0 = scmp.ge.s32.totalorder %s26_s20, 2  ;;  %p123_p1 = scmp.ne.s32.totalorder %s7043_s14, %s7039_s13 }
   0x8   : > { %p124_p2 = scmp.eq.s32.totalorder %s5520_s18, 1  ;;  %p129_p3 = scmp.ne.s32.totalorder %s7039_s13, %s7035_s12 }
   0x9   : > { %s9621_s20 = smov (%p27_p0, %s26_s20), 0  ;;  %p130_p5 = scmp.eq.s32.totalorder %s5521_s19, 1 }
   0xa   : > { %p7124_p4 = por %p124_p2, %p123_p1  ;;  %s108_s23 = ssub.s32 %s7051_s16, %s9621_s20 }
   0xb   : > { %p5522_p6 = scmp.ge.s32.totalorder %s7055_s17, 1  ;;  %p111_p7 = scmp.eq.s32.totalorder %s108_s23, 0 }
   0xc   : > { %p7131_p8 = por %p130_p5, %p129_p3  ;;  %p137_p9 = scmp.lt.s32.totalorder %s7055_s17, 3 }
   0xd   : > { %s7137_s25 = scalar_select %p111_p7, %s7043_s14, %s113_s21  }
   0xe   : > { %p138_p10 = pnand %p5522_p6, %p137_p9  ;;  %p6501_p11 = scmp.eq.s32.totalorder %s5520_s18, 0 }
   0xf   : > { %s154_s28 = sshll.u32 %s9544_s2, 4  ;;  %s7057_s29 = smov [#allocation4]   ;;  %s155_s28 = int_to_ptr.hbm [resolvable:$true] %s154_s28 }
  0x10   : > { %p6493_p12 = pneg %p138_p10  ;;  %s156_s30 = sshll.u32 %s7057_s29, 4  ;;  %s157_s30 = int_to_ptr.vmem [resolvable:$true] %s156_s30 }
  0x11   : > { %s7058_s4 = smov 128   ;;  %s7059_s5 = smov 8  }
  0x12   : > { %p6494_p13 = pnand %p6501_p11, %p6493_p12  ;;  %185 = sbr.rel (%p138_p10) target bundleno = 2459 (0x99b), region = 32 }
  0x14   : > { %6496 = dma.hbm_to_vmem [thread:$0]  (!%p6494_p13), %s155_s28, 1536, %s157_s30, [#allocation5], %s7058_s4, %s7058_s4, %s7059_s5  }
  0x17   : > { %7026 = dma.done.wait (%p6501_p11), [#allocation5], 1536  }
  0x18   : > { %7028 = vsyncadd (%p6501_p11), [#allocation5], 4294965760  ;;  %p215_p0 = scmp.lt.s32.totalorder %s7047_s15, 1  ;;  %v227_v0 = vlaneseq  ;;  %v7060_v1 = vmov 0.0|0.0   ;;  %v7061_v4 = vmov 0.0   ;;  %v6374_v29 = vld [vmem:[%s9543_s1] sm:$0xff] }
  0x19   : > { %252 = vst [vmem:[#allocation2] sm:$0xff] %v7060_v1  ;;  %vm400_vm1 = vcmask 392192   ;;  %v6375_v30 = vld [vmem:[%s9543_s1 + $0x8] sm:$0xff]  ;;  %v6376_v31 = vld [vmem:[%s9543_s1 + $0x10] sm:$0xff]  ;;  %v6377_v32 = vld [vmem:[%s9543_s1 + $0x18] sm:$0xff]  ;;  %s211_s11 = sand.u32 1, %s7039_s13  }
  0x1a   : > { %256 = vst [vmem:[#allocation2 + $0x20] sm:$0xff] %v7060_v1  ;;  %s216_s6 = scalar_select %p215_p0, %s7047_s15, 1  ;;  %v228_v2 = vshrl.u32 %v227_v0, 7  ;;  %v6378_v33 = vld [vmem:[%s9543_s1 + $0x20] sm:$0xff]  ;;  %v6379_v34 = vld [vmem:[%s9543_s1 + $0x28] sm:$0xff]  ;;  %v6380_v35 = vld [vmem:[%s9543_s1 + $0x30] sm:$0xff] }
  0x1b   : > { %257 = vst [vmem:[#allocation2 + $0x28] sm:$0xff] %v7060_v1  ;;  %v6381_v36 = vld [vmem:[%s9543_s1 + $0x38] sm:$0xff]  ;;  %v267_v60 = vld [vmem:[#allocation4 + $0x8] sm:$0xff]  ;;  %vm7317_vm2 = vcmp.lt.s32.totalorder %v227_v0, 256  ;;  %vm751_vm3 = vcmask 1040384   ;;  %s7341_s18 = sshll.u32 %s211_s11, 9 }
  0x1c   : > { %254 = vst [vmem:[#allocation2 + $0x10] sm:$0xff] %v7060_v1  ;;  %s6373_s7 = sshll.u32 %s216_s6, 5  ;;  %v229_v3 = vadd.s32 8, %v228_v2  ;;  %v266_v51 = vld [vmem:[#allocation4] sm:$0xff]  ;;  %v279_v63 = vld [vmem:[#allocation4 + $0x28] sm:$0xff]  ;;  %vm753_vm4 = vcmask 1041409  }
  0x1d   : > { %255 = vst [vmem:[#allocation2 + $0x18] sm:$0xff] %v7060_v1  ;;  %s7148_s10 = scalar_lea.vmem %s9542_s0, %s6373_s7  ;;  %v278_v52 = vld [vmem:[#allocation4 + $0x20] sm:$0xff]  ;;  %v7204_v53 = vunpack.c.l.bf16 %v266_v51  ;;  %v7206_v54 = vunpack.c.h.bf16 %v266_v51  ;;  %v7219_v1 = vunpack.c.l.bf16 %v267_v60  ;;  %vm756_vm5 = vcmask 1042434   ;;  %s7353_s19 = scalar_lea.vmem [#allocation7], %s7341_s18 }
  0x1e   : > { %vm235_vm0 = vcmp.eq.s32.totalorder %v229_v3, 15  ;;  %v302_v6 = vld [vmem:[%s7148_s10] sm:$0xf]  ;;  %v5633_v20 = vld [vmem:[%s7148_s10 + $0x4] sm:$0xf]  ;;  %v7208_v55 = vunpack.c.l.bf16 %v278_v52  ;;  %v7210_v56 = vunpack.c.h.bf16 %v278_v52  ;;  %vm759_vm6 = vcmask 1043459  }
  0x1f   : > { %v241_v5 = vsel %vm235_vm0, 1.0, %v7061_v4  ;;  %304 = vst [vmem:[#allocation1] ss:$2 sm:$0xff] %v302_v6  ;;  %v531_v59 = vmul.f32 0.0, %v7204_v53  ;;  %v532_v61 = vmul.f32 0.0, %v7206_v54  ;;  %v7222_v4 = vunpack.c.h.bf16 %v267_v60  ;;  %s6486_s4 = sshll.u32 %s7047_s15, 9 }
  0x20   : > { %v247_v7 = vpack.c.bf16 %v241_v5, %v241_v5  ;;  %v579_v62 = vmul.f32 0.0, %v7208_v55  ;;  %v580_v2 = vmul.f32 0.0, %v7210_v56  ;;  %v7224_v6 = vunpack.c.l.bf16 %v279_v63  ;;  %s5423_s5 = scalar_lea.hbm %s9545_s3, %s6486_s4  ;;  %s5424_s6 = sshll.u32 %s7353_s19, 4  ;;  %s5425_s6 = int_to_ptr.vmem [resolvable:$true] %s5424_s6 }
  0x21   : > { %v5580_v8 = vld [vmem:[#allocation2 + $0x20] sm:$0xf]  ;;  %v6386_v9 = vld [vmem:[#allocation2 + $0x24] sm:$0xf]  ;;  %vm762_vm7 = vcmask 1044484   ;;  %vm765_vm8 = vcmask 1045509  }
  0x22   : > { %v6387_v10 = vld [vmem:[#allocation2 + $0x24] sm:$0xf0]  ;;  %v5582_v11 = vld [vmem:[#allocation2 + $0x28] sm:$0xf0]  ;;  %253 = vst [vmem:[#allocation2 + $0x8] sm:$0xff] %v247_v7  ;;  %vm768_vm9 = vcmask 1046534  }
  0x23   : > { %v5581_v12 = vor.u32 %v6387_v10, %v5580_v8  ;;  %v5585_v13 = vor.u32 %v6386_v9, %v5582_v11  ;;  %v5572_v14 = vld [vmem:[#allocation2 + $0x10] sm:$0xf]  ;;  %v6384_v15 = vld [vmem:[#allocation2 + $0x14] sm:$0xf]  ;;  %v7226_v8 = vunpack.c.h.bf16 %v279_v63  ;;  %v533_v9 = vmul.f32 0.0, %v7219_v1  ;;  %s5426_s7 = sshll.u32 %s5423_s5, 4  ;;  %s5427_s7 = int_to_ptr.hbm [resolvable:$true] %s5426_s7 }
  0x24   : > { %v6385_v16 = vld [vmem:[#allocation2 + $0x14] sm:$0xf0]  ;;  %v5574_v17 = vld [vmem:[#allocation2 + $0x18] sm:$0xf0]  ;;  %vm771_vm10 = vcmask 1046528   ;;  %s5410_s8 = scalar_lea.sflag [#allocation6], %s211_s11 }
  0x25   : > { %430 = vmatpush.bf16.msra.mxu0 %v5581_v12  ;;  %479 = vmatpush.bf16.msra.mxu1 %v5585_v13  ;;  %v5573_v18 = vor.u32 %v6385_v16, %v5572_v14  ;;  %v5577_v19 = vor.u32 %v6384_v15, %v5574_v17  ;;  %v534_v14 = vmul.f32 0.0, %v7222_v4  ;;  %v268_v15 = vld [vmem:[#allocation4 + $0x10] sm:$0xff]  ;;  %v581_v17 = vmul.f32 0.0, %v7224_v6  ;;  %s6987_s9 = sshra.s32 %s5427_s7, 4  ;;  %s6993_s26 = scalar_lea.hbm %s9545_s3, 1024  ;;  %s6988_s9 = int_to_ptr.hbm [resolvable:$true] %s6987_s9 }
  0x26   : > { %v305_v21 = vld.sshfl [vmem:[#allocation1] sm:$0xff pattern:$0x75643120]  ;;  %s6989_s18 = scalar_lea.hbm %s6988_s9, 512  ;;  %p6994_p5 = scmp.lt.s32.totalorder %s6988_s9, %s9545_s3 }
  0x27   : > { %307 = vst [vmem:[#allocation2] sm:$0x33] %v305_v21  ;;  %p6990_p1 = scmp.ne.s32.totalorder %s6988_s9, %s6989_s18  ;;  %p6995_p6 = scmp.lt.s32.totalorder %s6993_s26, %s6989_s18 }
  0x28   : > { %953 = vst [vmem:[#allocation1] ss:$2 sm:$0xff] %v5633_v20  ;;  %v582_v20 = vmul.f32 0.0, %v7226_v8 }
  0x29   : > { %431 = vmatpush.bf16.msra.mxu0 %v5573_v18  ;;  %480 = vmatpush.bf16.msra.mxu1 %v5577_v19  ;;  %v6383_v22 = vld [vmem:[#allocation2 + $0x4] sm:$0xf0]  ;;  %v5566_v23 = vld [vmem:[#allocation2 + $0x8] sm:$0xf0]  ;;  %p6991_p2 = pnand %p6990_p1, %p7124_p4  ;;  %p6996_p7 = por %p6995_p6, %p6994_p5 }
  0x2a   : > { %v269_v18 = vld [vmem:[#allocation4 + $0x18] sm:$0xff] }
  0x2b   : > { %p6992_p3 = pneg %p6991_p2 }
  0x2d   : > { %p6997_p9 = pnand %p6996_p7, %p6992_p3 }
  0x2e   : > { %v5564_v24 = vld [vmem:[#allocation2] sm:$0xf]  ;;  %v6382_v25 = vld [vmem:[#allocation2 + $0x4] sm:$0xf] }
  0x2f   : > { %v5565_v26 = vor.u32 %v6383_v22, %v5564_v24  ;;  %v5569_v27 = vor.u32 %v6382_v25, %v5566_v23  ;;  %v954_v28 = vld.sshfl [vmem:[#allocation1] sm:$0xff pattern:$0x75643120]  ;;  %v7236_v22 = vunpack.c.l.bf16 %v268_v15  ;;  %v280_v24 = vld [vmem:[#allocation4 + $0x30] sm:$0xff] }
  0x30   : > { %956 = vst [vmem:[#allocation2] sm:$0x33] %v954_v28 }
  0x31   : > { %432 = vmatpush.bf16.msra.mxu0 %v5565_v26  ;;  %481 = vmatpush.bf16.msra.mxu1 %v5569_v27  ;;  %9565 = vst [vmem:[#allocation10_spill] sm:$0xff] %v7236_v22  ;;  %v7238_v26 = vunpack.c.h.bf16 %v268_v15  ;;  %v7240_v27 = vunpack.c.l.bf16 %v269_v18 }
  0x33   : > { %9566 = vst [vmem:[#allocation11_spill] sm:$0xff] %v7238_v26 }
  0x34   : > { %5586 = vmatmul.msk.bf16.vlgmr.msra.gmra.mxu0 %vm400_vm1, %v6374_v29  ;;  %5594 = vmatmul.msk.bf16.vlgmr.msra.gmra.mxu1 %vm400_vm1, %v6374_v29  ;;  %9567 = vst [vmem:[#allocation12_spill] sm:$0xff] %v7240_v27  ;;  %v281_v29 = vld [vmem:[#allocation4 + $0x38] sm:$0xff] }
  0x44   : > { %5587 = vmatmul.msk.bf16.gmra.mxu0 %vm400_vm1, %v6375_v30  ;;  %5595 = vmatmul.msk.bf16.gmra.mxu1 %vm400_vm1, %v6375_v30 }
  0x54   : > { %5588 = vmatmul.msk.bf16.gmra.mxu0 %vm400_vm1, %v6376_v31  ;;  %5596 = vmatmul.msk.bf16.gmra.mxu1 %vm400_vm1, %v6376_v31  ;;  %v7242_v31 = vunpack.c.l.bf16 %v280_v24 }
  0x56   : > { %9568 = vst [vmem:[#allocation13_spill] sm:$0xff] %v7242_v31  ;;  %v583_v51 = vmul.f32 0.0, %v7242_v31 }
  0x64   : > { %5589 = vmatmul.msk.bf16.gmra.mxu0 %vm400_vm1, %v6377_v32  ;;  %5597 = vmatmul.msk.bf16.gmra.mxu1 %vm400_vm1, %v6377_v32 }
  0x74   : > { %5590 = vmatmul.msk.bf16.gmra.mxu0 %vm400_vm1, %v6378_v33  ;;  %5598 = vmatmul.msk.bf16.gmra.mxu1 %vm400_vm1, %v6378_v33  ;;  %v535_v33 = vmul.f32 0.0, %v7236_v22 }
  0x84   : > { %5591 = vmatmul.msk.bf16.gmra.mxu0 %vm400_vm1, %v6379_v34  ;;  %5599 = vmatmul.msk.bf16.gmra.mxu1 %vm400_vm1, %v6379_v34  ;;  %v7245_v34 = vunpack.c.h.bf16 %v280_v24 }
  0x86   : > { %9569 = vst [vmem:[#allocation14_spill] sm:$0xff] %v7245_v34  ;;  %v584_v60 = vmul.f32 0.0, %v7245_v34 }
  0x94   : > { %5592 = vmatmul.msk.bf16.gmra.mxu0 %vm400_vm1, %v6380_v35  ;;  %5600 = vmatmul.msk.bf16.gmra.mxu1 %vm400_vm1, %v6380_v35 }
  0xa4   : > { %5593 = vmatmul.msk.bf16.gmra.mxu0 %vm400_vm1, %v6381_v36  ;;  %5601 = vmatmul.msk.bf16.gmra.mxu1 %vm400_vm1, %v6381_v36 }
  0xb1   : > { %v434_v37 = vpop.f32.mrf.mxu0  ;;  %v483_v38 = vpop.f32.mrf.mxu1 }
  0xb2   : > { %v539_v3 = vadd.f32 %v531_v59, %v434_v37  ;;  %v540_v5 = vadd.f32 %v532_v61, %v483_v38  ;;  %v536_v38 = vmul.f32 0.0, %v7238_v26  ;;  %v7260_v61 = vunpack.c.h.bf16 %v281_v29 }
  0xb4   : > { %v547_v13 = vmul.f32 0.5, %v539_v3  ;;  %v548_v16 = vmul.f32 0.5, %v540_v5  ;;  %9572 = vst [vmem:[#allocation17_spill] sm:$0xff] %v7260_v61  ;;  %v586_v15 = vmul.f32 0.0, %v7260_v61 }
  0xb6   : > { %6559 = vtanh.f32 %v547_v13 }
  0xb7   : > { %6561 = vtanh.f32 %v548_v16 }
  0xb9   : > { %v436_v39 = vpop.f32.mrf.mxu0  ;;  %v485_v40 = vpop.f32.mrf.mxu1 }
  0xba   : > { %v541_v21 = vadd.f32 %v533_v9, %v436_v39  ;;  %v542_v25 = vadd.f32 %v534_v14, %v485_v40  ;;  %v7252_v39 = vunpack.c.l.bf16 %v281_v29  ;;  %v537_v40 = vmul.f32 0.0, %v7240_v27 }
  0xbc   : > { %v549_v32 = vmul.f32 0.5, %v541_v21  ;;  %v550_v37 = vmul.f32 0.5, %v542_v25  ;;  %9570 = vst [vmem:[#allocation15_spill] sm:$0xff] %v7252_v39 }
  0xc1   : > { %v7192_v41 = vpop.f32.mrf.mxu0  ;;  %v7194_v42 = vpop.f32.mrf.mxu1 }
  0xc2   : > { %v543_v59 = vadd.f32 %v535_v33, %v7192_v41  ;;  %v544_v63 = vadd.f32 %v536_v38, %v7194_v42 }
  0xc4   : > { %v551_v13 = vmul.f32 0.5, %v543_v59 }
  0xc9   : > { %v7196_v43 = vpop.f32.mrf.mxu0  ;;  %v7198_v44 = vpop.f32.mrf.mxu1 }
  0xca   : > { %v545_v5 = vadd.f32 %v537_v40, %v7196_v43 }
  0xcc   : > { %v553_v21 = vmul.f32 0.5, %v545_v5 }
  0xd1   : > { %v444_v45 = vpop.f32.mrf.mxu0  ;;  %v493_v46 = vpop.f32.mrf.mxu1 }
  0xd2   : > { %v587_v7 = vadd.f32 %v579_v62, %v444_v45  ;;  %v588_v10 = vadd.f32 %v580_v2, %v493_v46  ;;  %v7255_v45 = vunpack.c.h.bf16 %v269_v18  ;;  %v585_v2 = vmul.f32 0.0, %v7252_v39 }
  0xd4   : > { %v595_v19 = vmul.f32 0.5, %v587_v7  ;;  %v596_v23 = vmul.f32 0.5, %v588_v10  ;;  %9571 = vst [vmem:[#allocation16_spill] sm:$0xff] %v7255_v45  ;;  %v538_v7 = vmul.f32 0.0, %v7255_v45 }
  0xd6   : > { %6563 = vtanh.f32 %v595_v19 }
  0xd7   : > { %6565 = vtanh.f32 %v596_v23  ;;  %v546_v23 = vadd.f32 %v538_v7, %v7198_v44 }
  0xd8   : > { %6567 = vtanh.f32 %v549_v32 }
  0xd9   : > { %v446_v47 = vpop.f32.mrf.mxu0  ;;  %v495_v48 = vpop.f32.mrf.mxu1  ;;  %6569 = vtanh.f32 %v550_v37  ;;  %v554_v44 = vmul.f32 0.5, %v546_v23  ;;  %v291_v23 = vld [vmem:[#allocation4 + $0x48] sm:$0xff] }
  0xda   : > { %v589_v28 = vadd.f32 %v581_v17, %v446_v47  ;;  %v590_v30 = vadd.f32 %v582_v20, %v495_v48  ;;  %v6560_v47 = vpop.eup %6559  ;;  %v552_v17 = vmul.f32 0.5, %v544_v63 }
  0xdb   : > { %v6562_v52 = vpop.eup %6561  ;;  %v563_v9 = vmul.f32 0.5, %v6560_v47 }
  0xdc   : > { %v597_v46 = vmul.f32 0.5, %v589_v28  ;;  %v598_v48 = vmul.f32 0.5, %v590_v30  ;;  %v6564_v62 = vpop.eup %6563  ;;  %v564_v10 = vmul.f32 0.5, %v6562_v52 }
  0xdd   : > { %v6566_v3 = vpop.eup %6565  ;;  %v611_v18 = vmul.f32 0.5, %v6564_v62  ;;  %v571_v24 = vadd.f32 0.5, %v563_v9 }
  0xde   : > { %6571 = vtanh.f32 %v597_v46  ;;  %v612_v43 = vmul.f32 0.5, %v6566_v3  ;;  %v6568_v20 = vpop.eup %6567  ;;  %v572_v30 = vadd.f32 0.5, %v564_v10 }
  0xdf   : > { %6573 = vtanh.f32 %v598_v48  ;;  %v565_v46 = vmul.f32 0.5, %v6568_v20 }
  0xe0   : > { %6575 = vtanh.f32 %v551_v13  ;;  %v620_v38 = vadd.f32 0.5, %v612_v43 }
  0xe1   : > { %v7200_v49 = vpop.f32.mrf.mxu0  ;;  %v7202_v50 = vpop.f32.mrf.mxu1  ;;  %6577 = vtanh.f32 %v552_v17  ;;  %v573_v3 = vadd.f32 0.5, %v565_v46  ;;  %v7296_v46 = vunpack.c.l.bf16 %v291_v23 }
  0xe2   : > { %v591_v41 = vadd.f32 %v583_v51, %v7200_v49  ;;  %v592_v14 = vadd.f32 %v584_v60, %v7202_v50  ;;  %v6570_v49 = vpop.eup %6569  ;;  %6579 = vtanh.f32 %v553_v21  ;;  %v628_v63 = vmul.f32 0.0, %v620_v38 }
  0xe3   : > { %v566_v47 = vmul.f32 0.5, %v6570_v49 }
  0xe4   : > { %v599_v25 = vmul.f32 0.5, %v591_v41  ;;  %v6572_v29 = vpop.eup %6571  ;;  %v600_v32 = vmul.f32 0.5, %v592_v14 }
  0xe5   : > { %v6574_v37 = vpop.eup %6573  ;;  %v613_v51 = vmul.f32 0.5, %v6572_v29  ;;  %v574_v17 = vadd.f32 0.5, %v566_v47 }
  0xe6   : > { %6581 = vtanh.f32 %v599_v25 }
  0xe7   : > { %6583 = vtanh.f32 %v600_v32 }
  0xe9   : > { %v7212_v57 = vpop.f32.mrf.mxu0  ;;  %v7214_v58 = vpop.f32.mrf.mxu1 }
  0xea   : > { %v593_v19 = vadd.f32 %v585_v2, %v7212_v57  ;;  %v594_v33 = vadd.f32 %v586_v15, %v7214_v58  ;;  %v619_v57 = vadd.f32 0.5, %v611_v18  ;;  %v290_v58 = vld [vmem:[#allocation4 + $0x40] sm:$0xff]  ;;  %v6576_v2 = vpop.eup %6575  ;;  %v621_v18 = vadd.f32 0.5, %v613_v51 }
  0xeb   : > { %v6578_v9 = vpop.eup %6577  ;;  %v7288_v13 = vunpack.c.l.bf16 %v290_v58  ;;  %v7290_v14 = vunpack.c.h.bf16 %v290_v58  ;;  %v567_v49 = vmul.f32 0.5, %v6576_v2  ;;  %v7302_v51 = vunpack.c.h.bf16 %v291_v23 }
  0xec   : > { %v601_v40 = vmul.f32 0.5, %v593_v19  ;;  %v602_v52 = vmul.f32 0.5, %v594_v33  ;;  %v627_v62 = vmul.f32 0.0, %v619_v57  ;;  %v6580_v15 = vpop.eup %6579  ;;  %v629_v29 = vmul.f32 0.0, %v621_v18 }
  0xed   : > { %v6582_v19 = vpop.eup %6581  ;;  %v569_v2 = vmul.f32 0.5, %v6580_v15 }
  0xee   : > { %6585 = vtanh.f32 %v601_v40  ;;  %v6584_v20 = vpop.eup %6583  ;;  %v615_v32 = vmul.f32 0.5, %v6582_v19 }
  0xef   : > { %6587 = vtanh.f32 %v554_v44  ;;  %v616_v57 = vmul.f32 0.5, %v6584_v20 }
  0xf0   : > { %6589 = vtanh.f32 %v602_v52 }
  0xf1   : > { %v7229_v11 = vpop.f32.mrf.mxu0  ;;  %v7231_v12 = vpop.f32.mrf.mxu1 }
  0xf2   : > { %v635_v50 = vmax.f32 %v7229_v11, 0.0  ;;  %v636_v28 = vmax.f32 %v7231_v12, 0.0  ;;  %v614_v12 = vmul.f32 0.5, %v6574_v37 }
  0xf4   : > { %v643_v48 = vmul.f32 %v635_v50, %v571_v24  ;;  %v644_v11 = vmul.f32 %v636_v28, %v572_v30  ;;  %v622_v43 = vadd.f32 0.5, %v614_v12  ;;  %v568_v28 = vmul.f32 0.5, %v6578_v9 }
  0xf5   : > { %v624_v9 = vadd.f32 0.5, %v616_v57 }
  0xf6   : > { %v7284_v41 = vadd.f32 %v643_v48, %v627_v62  ;;  %v7286_v10 = vadd.f32 %v644_v11, %v628_v63  ;;  %v630_v30 = vmul.f32 0.0, %v622_v43  ;;  %v575_v63 = vadd.f32 0.5, %v567_v49 }
  0xf8   : > { %v659_v24 = vmul.f32 %v7284_v41, %v7288_v13  ;;  %v660_v25 = vmul.f32 %v7286_v10, %v7290_v14 }
  0xf9   : > { %v7247_v35 = vpop.f32.mrf.mxu0  ;;  %v7249_v36 = vpop.f32.mrf.mxu1 }
  0xfa   : > { %v637_v5 = vmax.f32 %v7247_v35, 0.0  ;;  %v638_v7 = vmax.f32 %v7249_v36, 0.0  ;;  %v6586_v36 = vpop.eup %6585 }
  0xfb   : > { %v6588_v50 = vpop.eup %6587  ;;  %v617_v47 = vmul.f32 0.5, %v6586_v36 }
  0xfc   : > { %v645_v21 = vmul.f32 %v637_v5, %v573_v3  ;;  %v646_v35 = vmul.f32 %v638_v7, %v574_v17  ;;  %v6590_v44 = vpop.eup %6589  ;;  %v570_v3 = vmul.f32 0.5, %v6588_v50  ;;  %v623_v5 = vadd.f32 0.5, %v615_v32 }
  0xfd   : > { %v576_v7 = vadd.f32 0.5, %v568_v28  ;;  %v618_v17 = vmul.f32 0.5, %v6590_v44  ;;  %v625_v18 = vadd.f32 0.5, %v617_v47 }
  0xfe   : > { %v7298_v48 = vadd.f32 %v645_v21, %v629_v29  ;;  %v7300_v11 = vadd.f32 %v646_v35, %v630_v30  ;;  %v577_v21 = vadd.f32 0.5, %v569_v2  ;;  %v578_v35 = vadd.f32 0.5, %v570_v3 }
  0xff   : > { %v631_v15 = vmul.f32 0.0, %v623_v5  ;;  %v633_v29 = vmul.f32 0.0, %v625_v18  ;;  %v707_v30 = vmax.f32 %v7284_v41, 0.0 }
 0x100   : > { %v661_v20 = vmul.f32 %v7298_v48, %v7296_v46 }
 0x101   : > { %v7269_v16 = vpop.f32.mrf.mxu0  ;;  %v7271_v42 = vpop.f32.mrf.mxu1 }
 0x102   : > { %v639_v12 = vmax.f32 %v7269_v16, 0.0  ;;  %v640_v52 = vmax.f32 %v7271_v42, 0.0  ;;  %v662_v16 = vmul.f32 %v7300_v11, %v7302_v51  ;;  %v292_v42 = vld [vmem:[#allocation4 + $0x50] sm:$0xff] }
 0x103   : > { %v7312_v32 = vunpack.c.l.bf16 %v292_v42 }
 0x104   : > { %v647_v43 = vmul.f32 %v639_v12, %v575_v63  ;;  %v648_v19 = vmul.f32 %v640_v52, %v576_v7  ;;  %v709_v7 = vmax.f32 %v7298_v48, 0.0 }
 0x109   : > { %v7278_v59 = vpop.f32.mrf.mxu0  ;;  %v7280_v60 = vpop.f32.mrf.mxu1 }
 0x10a   : > { %v641_v23 = vmax.f32 %v7278_v59, 0.0  ;;  %v7321_v59 = vadd.f32 %v647_v43, %v631_v15  ;;  %v642_v44 = vmax.f32 %v7280_v60, 0.0 }
 0x10c   : > { %v649_v52 = vmul.f32 %v641_v23, %v577_v21  ;;  %v650_v60 = vmul.f32 %v642_v44, %v578_v35  ;;  %v663_v18 = vmul.f32 %v7321_v59, %v7312_v32 }
 0x111   : > { %v464_v33 = vpop.f32.mrf.mxu0  ;;  %v513_v37 = vpop.f32.mrf.mxu1 }
 0x112   : > { %v667_v38 = vadd.f32 %v659_v24, %v464_v33  ;;  %v668_v40 = vadd.f32 %v660_v25, %v513_v37  ;;  %v632_v24 = vmul.f32 0.0, %v624_v9  ;;  %v626_v25 = vadd.f32 0.5, %v618_v17  ;;  %v293_v37 = vld [vmem:[#allocation4 + $0x58] sm:$0xff] }
 0x113   : > { %v7314_v33 = vunpack.c.h.bf16 %v292_v42  ;;  %v7328_v3 = vunpack.c.l.bf16 %v293_v37  ;;  %v7331_v9 = vunpack.c.h.bf16 %v293_v37 }
 0x114   : > { %v675_v58 = vmul.f32 0.5, %v667_v38  ;;  %v676_v62 = vmul.f32 0.5, %v668_v40  ;;  %v7323_v40 = vadd.f32 %v648_v19, %v632_v24  ;;  %v634_v2 = vmul.f32 0.0, %v626_v25 }
 0x115   : > { %v7337_v19 = vadd.f32 %v649_v52, %v633_v29 }
 0x116   : > { %6591 = vtanh.f32 %v675_v58  ;;  %v664_v43 = vmul.f32 %v7323_v40, %v7314_v33 }
 0x117   : > { %6593 = vtanh.f32 %v676_v62  ;;  %v708_v62 = vmax.f32 %v7286_v10, 0.0  ;;  %v665_v29 = vmul.f32 %v7337_v19, %v7328_v3 }
 0x119   : > { %v466_v36 = vpop.f32.mrf.mxu0  ;;  %v515_v49 = vpop.f32.mrf.mxu1 }
 0x11a   : > { %v669_v50 = vadd.f32 %v661_v20, %v466_v36  ;;  %v670_v28 = vadd.f32 %v662_v16, %v515_v49  ;;  %v7343_v36 = vadd.f32 %v650_v60, %v634_v2 }
 0x11c   : > { %v6592_v57 = vpop.eup %6591  ;;  %v677_v47 = vmul.f32 0.5, %v669_v50  ;;  %v678_v63 = vmul.f32 0.5, %v670_v28 }
 0x11d   : > { %v6594_v12 = vpop.eup %6593  ;;  %v691_v58 = vmul.f32 0.5, %v6592_v57 }
 0x11e   : > { %v692_v0 = vmul.f32 0.5, %v6594_v12  ;;  %6595 = vtanh.f32 %v677_v47 }
 0x11f   : > { %v699_v5 = vadd.f32 0.5, %v691_v58  ;;  %6597 = vtanh.f32 %v678_v63 }
 0x120   : > { %v700_v17 = vadd.f32 0.5, %v692_v0 }
 0x121   : > { %v715_v20 = vmul.f32 %v707_v30, %v699_v5  ;;  %v469_v16 = vpop.f32.mrf.mxu0  ;;  %v518_v42 = vpop.f32.mrf.mxu1 }
 0x122   : > { %v716_v21 = vmul.f32 %v708_v62, %v700_v17  ;;  %v671_v35 = vadd.f32 %v663_v18, %v469_v16  ;;  %v672_v15 = vadd.f32 %v664_v43, %v518_v42  ;;  %v666_v16 = vmul.f32 %v7343_v36, %v7331_v9 }
 0x124   : > { %v6596_v23 = vpop.eup %6595  ;;  %v731_v49 = vpack.c.bf16 %v716_v21, %v715_v20  ;;  %v747_v24 = vrot.slane %v716_v21, 7  ;;  %v679_v50 = vmul.f32 0.5, %v671_v35  ;;  %v680_v28 = vmul.f32 0.5, %v672_v15 }
 0x125   : > { %v693_v25 = vmul.f32 0.5, %v6596_v23  ;;  %v6598_v47 = vpop.eup %6597 }
 0x126   : > { %735 = vst [vmem:[#allocation2 + $0x10] sm:$0xff] %v731_v49  ;;  %v752_v30 = vsel %vm751_vm3, %v715_v20, %v747_v24  ;;  %v754_v37 = vsel %vm753_vm4, %v715_v20, %v747_v24  ;;  %v757_v57 = vsel %vm756_vm5, %v715_v20, %v747_v24  ;;  %v760_v44 = vsel %vm759_vm6, %v715_v20, %v747_v24 }
 0x127   : > { %v755_v12 = vrot.slane %v754_v37, 1  ;;  %v758_v52 = vrot.slane %v757_v57, 2  ;;  %v761_v58 = vrot.slane %v760_v44, 3  ;;  %v763_v62 = vsel %vm762_vm7, %v715_v20, %v747_v24  ;;  %855 = vst.msk [vmem:[%s7353_s19] ss:$8 sm:$0x3] %vm7317_vm2, %v752_v30 }
 0x128   : > { %v764_v63 = vrot.slane %v763_v62, 4  ;;  %v766_v2 = vsel %vm765_vm8, %v715_v20, %v747_v24  ;;  %v769_v0 = vsel %vm768_vm9, %v715_v20, %v747_v24  ;;  %v772_v5 = vsel %vm771_vm10, %v747_v24, %v715_v20 }
 0x129   : > { %v767_v60 = vrot.slane %v766_v2, 5  ;;  %v770_v17 = vrot.slane %v769_v0, 6  ;;  %5602 = vst.msk [vmem:[%s7353_s19 + $0x10] ss:$8 sm:$0x3] %vm7317_vm2, %v755_v12  ;;  %6599 = vtanh.f32 %v679_v50  ;;  %v471_v18 = vpop.f32.mrf.mxu0  ;;  %v520_v43 = vpop.f32.mrf.mxu1  ;;  %v701_v42 = vadd.f32 0.5, %v693_v25 }
 0x12a   : > { %5603 = vst.msk [vmem:[%s7353_s19 + $0x20] ss:$8 sm:$0x3] %vm7317_vm2, %v758_v52  ;;  %v694_v21 = vmul.f32 0.5, %v6598_v47  ;;  %6601 = vtanh.f32 %v680_v28  ;;  %v673_v20 = vadd.f32 %v665_v29, %v471_v18  ;;  %v773_v35 = vrot.slane %v772_v5, 7 }
 0x12b   : > { %5604 = vst.msk [vmem:[%s7353_s19 + $0x30] ss:$8 sm:$0x3] %vm7317_vm2, %v761_v58  ;;  %v674_v15 = vadd.f32 %v666_v16, %v520_v43  ;;  %v717_v23 = vmul.f32 %v709_v7, %v701_v42  ;;  %v710_v24 = vmax.f32 %v7300_v11, 0.0  ;;  %v711_v44 = vmax.f32 %v7321_v59, 0.0 }
 0x12c   : > { %5605 = vst.msk [vmem:[%s7353_s19 + $0x40] ss:$8 sm:$0x3] %vm7317_vm2, %v764_v63  ;;  %v702_v49 = vadd.f32 0.5, %v694_v21  ;;  %v681_v50 = vmul.f32 0.5, %v673_v20 }
 0x12d   : > { %5606 = vst.msk [vmem:[%s7353_s19 + $0x50] ss:$8 sm:$0x3] %vm7317_vm2, %v767_v60  ;;  %v682_v25 = vmul.f32 0.5, %v674_v15 }
 0x12e   : > { %5607 = vst.msk [vmem:[%s7353_s19 + $0x60] ss:$8 sm:$0x3] %vm7317_vm2, %v770_v17  ;;  %v718_v28 = vmul.f32 %v710_v24, %v702_v49  ;;  %6603 = vtanh.f32 %v681_v50 }
 0x12f   : > { %v6600_v29 = vpop.eup %6599  ;;  %5608 = vst.msk [vmem:[%s7353_s19 + $0x70] ss:$8 sm:$0x3] %vm7317_vm2, %v773_v35  ;;  %6605 = vtanh.f32 %v682_v25  ;;  %v712_v35 = vmax.f32 %v7323_v40, 0.0 }
 0x130   : > { %v6602_v7 = vpop.eup %6601  ;;  %v732_v30 = vpack.c.bf16 %v718_v28, %v717_v23  ;;  %v748_v37 = vrot.slane %v718_v28, 7  ;;  %v695_v57 = vmul.f32 0.5, %v6600_v29 }
 0x131   : > { %v696_v47 = vmul.f32 0.5, %v6602_v7  ;;  %v713_v7 = vmax.f32 %v7337_v19, 0.0 }
 0x132   : > { %736 = vst [vmem:[#allocation2 + $0x18] sm:$0xff] %v732_v30  ;;  %v774_v12 = vsel %vm751_vm3, %v717_v23, %v748_v37  ;;  %v775_v52 = vsel %vm753_vm4, %v717_v23, %v748_v37  ;;  %v777_v58 = vsel %vm756_vm5, %v717_v23, %v748_v37  ;;  %v779_v62 = vsel %vm759_vm6, %v717_v23, %v748_v37 }
 0x133   : > { %v776_v63 = vrot.slane %v775_v52, 1  ;;  %v778_v2 = vrot.slane %v777_v58, 2  ;;  %v780_v0 = vrot.slane %v779_v62, 3  ;;  %v781_v5 = vsel %vm762_vm7, %v717_v23, %v748_v37  ;;  %5609 = vst.msk [vmem:[%s7353_s19 + $0x80] ss:$8 sm:$0x3] %vm7317_vm2, %v774_v12 }
 0x134   : > { %v6604_v60 = vpop.eup %6603  ;;  %v782_v17 = vrot.slane %v781_v5, 4  ;;  %v783_v18 = vsel %vm765_vm8, %v717_v23, %v748_v37  ;;  %v785_v43 = vsel %vm768_vm9, %v717_v23, %v748_v37  ;;  %v787_v16 = vsel %vm771_vm10, %v748_v37, %v717_v23 }
 0x135   : > { %v6606_v42 = vpop.eup %6605  ;;  %v784_v21 = vrot.slane %v783_v18, 5  ;;  %v786_v20 = vrot.slane %v785_v43, 6  ;;  %5610 = vst.msk [vmem:[%s7353_s19 + $0x90] ss:$8 sm:$0x3] %vm7317_vm2, %v776_v63  ;;  %v703_v15 = vadd.f32 0.5, %v695_v57 }
 0x136   : > { %5611 = vst.msk [vmem:[%s7353_s19 + $0xa0] ss:$8 sm:$0x3] %vm7317_vm2, %v778_v2  ;;  %v704_v49 = vadd.f32 0.5, %v696_v47  ;;  %v697_v24 = vmul.f32 0.5, %v6604_v60  ;;  %v788_v50 = vrot.slane %v787_v16, 7 }
 0x137   : > { %5612 = vst.msk [vmem:[%s7353_s19 + $0xb0] ss:$8 sm:$0x3] %vm7317_vm2, %v780_v0  ;;  %v698_v23 = vmul.f32 0.5, %v6606_v42  ;;  %v719_v25 = vmul.f32 %v711_v44, %v703_v15  ;;  %v714_v37 = vmax.f32 %v7343_v36, 0.0 }
 0x138   : > { %5613 = vst.msk [vmem:[%s7353_s19 + $0xc0] ss:$8 sm:$0x3] %vm7317_vm2, %v782_v17  ;;  %v720_v28 = vmul.f32 %v712_v35, %v704_v49  ;;  %v705_v29 = vadd.f32 0.5, %v697_v24  ;;  %v5738_v2 = vld [vmem:[%s7148_s10 + $0x8] sm:$0xf] }
 0x139   : > { %5614 = vst.msk [vmem:[%s7353_s19 + $0xd0] ss:$8 sm:$0x3] %vm7317_vm2, %v784_v21  ;;  %v706_v30 = vadd.f32 0.5, %v698_v23 }
 0x13a   : > { %5615 = vst.msk [vmem:[%s7353_s19 + $0xe0] ss:$8 sm:$0x3] %vm7317_vm2, %v786_v20  ;;  %v733_v57 = vpack.c.bf16 %v720_v28, %v719_v25  ;;  %v749_v47 = vrot.slane %v720_v28, 7  ;;  %v721_v44 = vmul.f32 %v713_v7, %v705_v29 }
 0x13b   : > { %5616 = vst.msk [vmem:[%s7353_s19 + $0xf0] ss:$8 sm:$0x3] %vm7317_vm2, %v788_v50  ;;  %v722_v12 = vmul.f32 %v714_v37, %v706_v30 }
 0x13c   : > { %737 = vst [vmem:[#allocation2 + $0x20] sm:$0xff] %v733_v57  ;;  %v789_v52 = vsel %vm751_vm3, %v719_v25, %v749_v47  ;;  %v790_v58 = vsel %vm753_vm4, %v719_v25, %v749_v47  ;;  %v792_v62 = vsel %vm756_vm5, %v719_v25, %v749_v47  ;;  %v794_v63 = vsel %vm759_vm6, %v719_v25, %v749_v47 }
 0x13d   : > { %v791_v0 = vrot.slane %v790_v58, 1  ;;  %v793_v5 = vrot.slane %v792_v62, 2  ;;  %v795_v60 = vrot.slane %v794_v63, 3  ;;  %v796_v17 = vsel %vm762_vm7, %v719_v25, %v749_v47  ;;  %5617 = vst.msk [vmem:[%s7353_s19 + $0x100] ss:$8 sm:$0x3] %vm7317_vm2, %v789_v52 }
 0x13e   : > { %v797_v18 = vrot.slane %v796_v17, 4  ;;  %v798_v43 = vsel %vm765_vm8, %v719_v25, %v749_v47  ;;  %v800_v16 = vsel %vm768_vm9, %v719_v25, %v749_v47  ;;  %v802_v42 = vsel %vm771_vm10, %v749_v47, %v719_v25  ;;  %1590 = vst [vmem:[#allocation1] ss:$2 sm:$0xff] %v5738_v2  ;;  %v5843_v63 = vld [vmem:[%s7148_s10 + $0xc] sm:$0xf] }
 0x13f   : > { %v799_v21 = vrot.slane %v798_v43, 5  ;;  %5618 = vst.msk [vmem:[%s7353_s19 + $0x110] ss:$8 sm:$0x3] %vm7317_vm2, %v791_v0  ;;  %v801_v20 = vrot.slane %v800_v16, 6  ;;  %v750_v35 = vrot.slane %v722_v12, 7  ;;  %v734_v49 = vpack.c.bf16 %v722_v12, %v721_v44 }
 0x140   : > { %5619 = vst.msk [vmem:[%s7353_s19 + $0x120] ss:$8 sm:$0x3] %vm7317_vm2, %v793_v5  ;;  %v803_v15 = vrot.slane %v802_v42, 7  ;;  %v5668_v0 = vld [vmem:[#allocation2] sm:$0xf] }
 0x141   : > { %5620 = vst.msk [vmem:[%s7353_s19 + $0x130] ss:$8 sm:$0x3] %vm7317_vm2, %v795_v60  ;;  %v805_v24 = vsel %vm753_vm4, %v721_v44, %v750_v35  ;;  %v807_v50 = vsel %vm756_vm5, %v721_v44, %v750_v35  ;;  %v809_v23 = vsel %vm759_vm6, %v721_v44, %v750_v35  ;;  %v804_v25 = vsel %vm751_vm3, %v721_v44, %v750_v35  ;;  %v6396_v5 = vld [vmem:[#allocation2 + $0x4] sm:$0xf] }
 0x142   : > { %5621 = vst.msk [vmem:[%s7353_s19 + $0x140] ss:$8 sm:$0x3] %vm7317_vm2, %v797_v18  ;;  %v806_v28 = vrot.slane %v805_v24, 1  ;;  %v811_v29 = vsel %vm762_vm7, %v721_v44, %v750_v35  ;;  %v808_v7 = vrot.slane %v807_v50, 2  ;;  %v813_v30 = vsel %vm765_vm8, %v721_v44, %v750_v35 }
 0x143   : > { %5622 = vst.msk [vmem:[%s7353_s19 + $0x150] ss:$8 sm:$0x3] %vm7317_vm2, %v799_v21  ;;  %v810_v37 = vrot.slane %v809_v23, 3  ;;  %v815_v57 = vsel %vm768_vm9, %v721_v44, %v750_v35  ;;  %v812_v47 = vrot.slane %v811_v29, 4  ;;  %v817_v12 = vsel %vm771_vm10, %v750_v35, %v721_v44 }
 0x144   : > { %5623 = vst.msk [vmem:[%s7353_s19 + $0x160] ss:$8 sm:$0x3] %vm7317_vm2, %v801_v20  ;;  %v814_v52 = vrot.slane %v813_v30, 5  ;;  %v816_v58 = vrot.slane %v815_v57, 6  ;;  %v818_v62 = vrot.slane %v817_v12, 7 }
 0x145   : > { %5624 = vst.msk [vmem:[%s7353_s19 + $0x170] ss:$8 sm:$0x3] %vm7317_vm2, %v803_v15  ;;  %v5684_v44 = vld [vmem:[#allocation2 + $0x20] sm:$0xf] }
 0x146   : > { %738 = vst [vmem:[#allocation2 + $0x28] sm:$0xff] %v734_v49  ;;  %v6400_v2 = vld [vmem:[#allocation2 + $0x24] sm:$0xf]  ;;  %v1591_v60 = vld.sshfl [vmem:[#allocation1] sm:$0xff pattern:$0x75643120] }
 0x147   : > { %5625 = vst.msk [vmem:[%s7353_s19 + $0x180] ss:$8 sm:$0x3] %vm7317_vm2, %v804_v25  ;;  %v6399_v42 = vld [vmem:[#allocation2 + $0x14] sm:$0xf0]  ;;  %v6389_v12 = vld [vmem:[%s9543_s1 + $0x8] sm:$0xff] }
 0x148   : > { %5626 = vst.msk [vmem:[%s7353_s19 + $0x190] ss:$8 sm:$0x3] %vm7317_vm2, %v806_v28  ;;  %v5678_v21 = vld [vmem:[#allocation2 + $0x18] sm:$0xf0] }
 0x149   : > { %5627 = vst.msk [vmem:[%s7353_s19 + $0x1a0] ss:$8 sm:$0x3] %vm7317_vm2, %v808_v7  ;;  %v5676_v20 = vld [vmem:[#allocation2 + $0x10] sm:$0xf]  ;;  %v6388_v7 = vld [vmem:[%s9543_s1] sm:$0xff] }
 0x14a   : > { %5628 = vst.msk [vmem:[%s7353_s19 + $0x1b0] ss:$8 sm:$0x3] %vm7317_vm2, %v810_v37  ;;  %v6397_v35 = vld [vmem:[#allocation2 + $0x4] sm:$0xf0]  ;;  %v5677_v15 = vor.u32 %v6399_v42, %v5676_v20 }
 0x14b   : > { %5629 = vst.msk [vmem:[%s7353_s19 + $0x1c0] ss:$8 sm:$0x3] %vm7317_vm2, %v812_v47  ;;  %v6398_v49 = vld [vmem:[#allocation2 + $0x14] sm:$0xf]  ;;  %v5669_v23 = vor.u32 %v6397_v35, %v5668_v0  ;;  %v6394_v0 = vld [vmem:[%s9543_s1 + $0x30] sm:$0xff] }
 0x14c   : > { %5630 = vst.msk [vmem:[%s7353_s19 + $0x1d0] ss:$8 sm:$0x3] %vm7317_vm2, %v814_v52  ;;  %v5670_v24 = vld [vmem:[#allocation2 + $0x8] sm:$0xf0]  ;;  %v5681_v50 = vor.u32 %v6398_v49, %v5678_v21 }
 0x14d   : > { %5631 = vst.msk [vmem:[%s7353_s19 + $0x1e0] ss:$8 sm:$0x3] %vm7317_vm2, %v816_v58  ;;  %v6401_v17 = vld [vmem:[#allocation2 + $0x24] sm:$0xf0]  ;;  %v5673_v25 = vor.u32 %v6396_v5, %v5670_v24  ;;  %v6395_v5 = vld [vmem:[%s9543_s1 + $0x38] sm:$0xff] }
 0x14e   : > { %5632 = vst.msk [vmem:[%s7353_s19 + $0x1f0] ss:$8 sm:$0x3] %vm7317_vm2, %v818_v62  ;;  %v5685_v18 = vor.u32 %v6401_v17, %v5684_v44  ;;  %v5686_v43 = vld [vmem:[#allocation2 + $0x28] sm:$0xf0]  ;;  %v6391_v44 = vld [vmem:[%s9543_s1 + $0x18] sm:$0xff] }
 0x14f   : > { %v5689_v16 = vor.u32 %v6400_v2, %v5686_v43  ;;  %1593 = vst [vmem:[#allocation2] sm:$0x33] %v1591_v60  ;;  %v5948_v28 = vld [vmem:[%s7148_s10 + $0x10] sm:$0xf]  ;;  %v6053_v30 = vld [vmem:[%s7148_s10 + $0x14] sm:$0xf] }
 0x150   : > { %1078 = vmatpush.bf16.msra.mxu2 %v5685_v18  ;;  %2227 = vst [vmem:[#allocation1] ss:$2 sm:$0xff] %v5843_v63  ;;  %v6158_v57 = vld [vmem:[%s7148_s10 + $0x18] sm:$0xf]  ;;  %v6263_v52 = vld [vmem:[%s7148_s10 + $0x1c] sm:$0xf] }
 0x151   : > { %1127 = vmatpush.bf16.msra.mxu3 %v5689_v16  ;;  %v6390_v62 = vld [vmem:[%s9543_s1 + $0x10] sm:$0xff]  ;;  %v6392_v63 = vld [vmem:[%s9543_s1 + $0x20] sm:$0xff]  ;;  %v6393_v2 = vld [vmem:[%s9543_s1 + $0x28] sm:$0xff] }
 0x154   : > { %1079 = vmatpush.bf16.msra.mxu2 %v5677_v15 }
 0x155   : > { %1128 = vmatpush.bf16.msra.mxu3 %v5681_v50 }
 0x157   : > { %v7488_v29 = vld.sshfl [vmem:[#allocation1] sm:$0xff pattern:$0x75643120] }
 0x158   : > { %1080 = vmatpush.bf16.msra.mxu2 %v5669_v23  ;;  %2864 = vst [vmem:[#allocation1] ss:$2 sm:$0xff] %v5948_v28 }
 0x159   : > { %1129 = vmatpush.bf16.msra.mxu3 %v5673_v25 }
 0x15b   : > { %5690 = vmatmul.msk.bf16.vlgmr.msra.gmra.mxu2 %vm400_vm1, %v6388_v7 }
 0x15c   : > { %5698 = vmatmul.msk.bf16.vlgmr.msra.gmra.mxu3 %vm400_vm1, %v6388_v7  ;;  %v1179_v7 = vmul.f32 %v7284_v41, %v7204_v53 }
 0x15f   : > { %v7496_v37 = vld.sshfl [vmem:[#allocation1] sm:$0xff pattern:$0x75643120] }
 0x160   : > { %9575 = vst [vmem:[#allocation18_spill] sm:$0xff] %v7496_v37 }
 0x161   : > { %3501 = vst [vmem:[#allocation1] ss:$2 sm:$0xff] %v6053_v30  ;;  %v1180_v30 = vmul.f32 %v7286_v10, %v7206_v54 }
 0x168   : > { %v7499_v47 = vld.sshfl [vmem:[#allocation1] sm:$0xff pattern:$0x75643120] }
 0x169   : > { %9576 = vst [vmem:[#allocation19_spill] sm:$0xff] %v7499_v47  ;;  %v1181_v47 = vmul.f32 %v7298_v48, %v7219_v1 }
 0x16a   : > { %4138 = vst [vmem:[#allocation1] ss:$2 sm:$0xff] %v6158_v57 }
 0x16b   : > { %5691 = vmatmul.msk.bf16.gmra.mxu2 %vm400_vm1, %v6389_v12 }
 0x16c   : > { %5699 = vmatmul.msk.bf16.gmra.mxu3 %vm400_vm1, %v6389_v12  ;;  %v1227_v12 = vmul.f32 %v7284_v41, %v7208_v55 }
 0x171   : > { %v7507_v58 = vld.sshfl [vmem:[#allocation1] sm:$0xff pattern:$0x75643120] }
 0x172   : > { %9577 = vst [vmem:[#allocation20_spill] sm:$0xff] %v7507_v58 }
 0x173   : > { %4775 = vst [vmem:[#allocation1] ss:$2 sm:$0xff] %v6263_v52 }
 0x17b   : > { %5692 = vmatmul.msk.bf16.gmra.mxu2 %vm400_vm1, %v6390_v62 }
 0x17c   : > { %5700 = vmatmul.msk.bf16.gmra.mxu3 %vm400_vm1, %v6390_v62  ;;  %v1228_v62 = vmul.f32 %v7286_v10, %v7210_v56 }
 0x18b   : > { %5693 = vmatmul.msk.bf16.gmra.mxu2 %vm400_vm1, %v6391_v44 }
 0x18c   : > { %5701 = vmatmul.msk.bf16.gmra.mxu3 %vm400_vm1, %v6391_v44 }
 0x19b   : > { %5694 = vmatmul.msk.bf16.gmra.mxu2 %vm400_vm1, %v6392_v63 }
 0x19c   : > { %5702 = vmatmul.msk.bf16.gmra.mxu3 %vm400_vm1, %v6392_v63 }
 0x1ab   : > { %5695 = vmatmul.msk.bf16.gmra.mxu2 %vm400_vm1, %v6393_v2 }
 0x1ac   : > { %5703 = vmatmul.msk.bf16.gmra.mxu3 %vm400_vm1, %v6393_v2 }
 0x1bb   : > { %5696 = vmatmul.msk.bf16.gmra.mxu2 %vm400_vm1, %v6394_v0 }
 0x1bc   : > { %5704 = vmatmul.msk.bf16.gmra.mxu3 %vm400_vm1, %v6394_v0 }
 0x1cb   : > { %5697 = vmatmul.msk.bf16.gmra.mxu2 %vm400_vm1, %v6395_v5 }
 0x1cc   : > { %5705 = vmatmul.msk.bf16.gmra.mxu3 %vm400_vm1, %v6395_v5 }
 0x1de   : > { %v1082_v60 = vpop.f32.mrf.mxu2 }
 0x1df   : > { %v1131_v17 = vpop.f32.mrf.mxu3  ;;  %v1187_v57 = vadd.f32 %v1179_v7, %v1082_v60  ;;  %v1182_v60 = vmul.f32 %v7300_v11, %v7222_v4 }
 0x1e0   : > { %v1188_v52 = vadd.f32 %v1180_v30, %v1131_v17 }
 0x1e1   : > { %v1195_v5 = vmul.f32 0.5, %v1187_v57 }
 0x1e2   : > { %v1196_v58 = vmul.f32 0.5, %v1188_v52 }
 0x1e3   : > { %6607 = vtanh.f32 %v1195_v5 }
 0x1e4   : > { %6609 = vtanh.f32 %v1196_v58 }
 0x1e6   : > { %v1084_v18 = vpop.f32.mrf.mxu2 }
 0x1e7   : > { %v1133_v43 = vpop.f32.mrf.mxu3  ;;  %v1189_v17 = vadd.f32 %v1181_v47, %v1084_v18  ;;  %v1183_v47 = vmul.f32 %v7321_v59, %v7236_v22 }
 0x1e8   : > { %v1190_v30 = vadd.f32 %v1182_v60, %v1133_v43  ;;  %v1184_v43 = vmul.f32 %v7323_v40, %v7238_v26 }
 0x1e9   : > { %v6608_v5 = vpop.eup %6607 }
 0x1ea   : > { %v6610_v58 = vpop.eup %6609 }
 0x1ee   : > { %v1087_v16 = vpop.f32.mrf.mxu2 }
 0x1ef   : > { %v1136_v42 = vpop.f32.mrf.mxu3 }
 0x1f6   : > { %v7539_v21 = vpop.f32.mrf.mxu2 }
 0x1f7   : > { %v7541_v20 = vpop.f32.mrf.mxu3 }
 0x1fe   : > { %v1092_v35 = vpop.f32.mrf.mxu2 }
 0x1ff   : > { %v1141_v15 = vpop.f32.mrf.mxu3  ;;  %v1235_v44 = vadd.f32 %v1227_v12, %v1092_v35  ;;  %v1229_v35 = vmul.f32 %v7298_v48, %v7224_v6 }
 0x200   : > { %v1236_v2 = vadd.f32 %v1228_v62, %v1141_v15  ;;  %v1230_v15 = vmul.f32 %v7300_v11, %v7226_v8 }
 0x201   : > { %v1243_v37 = vmul.f32 0.5, %v1235_v44  ;;  %v1197_v44 = vmul.f32 0.5, %v1189_v17  ;;  %v1192_v17 = vadd.f32 %v1184_v43, %v1136_v42  ;;  %v1233_v43 = vmul.f32 %v7337_v19, %v7252_v39 }
 0x202   : > { %v1244_v7 = vmul.f32 0.5, %v1236_v2  ;;  %v1198_v2 = vmul.f32 0.5, %v1190_v30 }
 0x203   : > { %6611 = vtanh.f32 %v1243_v37  ;;  %v1200_v42 = vmul.f32 0.5, %v1192_v17 }
 0x204   : > { %6613 = vtanh.f32 %v1244_v7 }
 0x205   : > { %6615 = vtanh.f32 %v1197_v44 }
 0x206   : > { %v1094_v49 = vpop.f32.mrf.mxu2  ;;  %6617 = vtanh.f32 %v1198_v2 }
 0x207   : > { %v1143_v24 = vpop.f32.mrf.mxu3  ;;  %v1237_v57 = vadd.f32 %v1229_v35, %v1094_v49  ;;  %v1191_v49 = vadd.f32 %v1183_v47, %v1087_v16  ;;  %v1232_v35 = vmul.f32 %v7323_v40, %v7245_v34  ;;  %v1212_v16 = vmul.f32 0.5, %v6610_v58 }
 0x208   : > { %v1238_v52 = vadd.f32 %v1230_v15, %v1143_v24  ;;  %v1231_v24 = vmul.f32 %v7321_v59, %v7242_v31  ;;  %v1185_v47 = vmul.f32 %v7337_v19, %v7240_v27 }
 0x209   : > { %v1245_v18 = vmul.f32 0.5, %v1237_v57  ;;  %v6612_v37 = vpop.eup %6611  ;;  %v1211_v57 = vmul.f32 0.5, %v6608_v5  ;;  %v1199_v44 = vmul.f32 0.5, %v1191_v49  ;;  %v1220_v27 = vadd.f32 0.5, %v1212_v16 }
 0x20a   : > { %v1246_v60 = vmul.f32 0.5, %v1238_v52  ;;  %v6614_v7 = vpop.eup %6613  ;;  %v1259_v22 = vmul.f32 0.5, %v6612_v37  ;;  %v1193_v5 = vadd.f32 %v1185_v47, %v7539_v21 }
 0x20b   : > { %6619 = vtanh.f32 %v1245_v18  ;;  %v1260_v2 = vmul.f32 0.5, %v6614_v7  ;;  %v6616_v18 = vpop.eup %6615  ;;  %v1219_v49 = vadd.f32 0.5, %v1211_v57 }
 0x20c   : > { %6621 = vtanh.f32 %v1246_v60  ;;  %v6618_v37 = vpop.eup %6617  ;;  %v1213_v47 = vmul.f32 0.5, %v6616_v18 }
 0x20d   : > { %6623 = vtanh.f32 %v1199_v44  ;;  %v1268_v39 = vadd.f32 0.5, %v1260_v2 }
 0x20e   : > { %v1097_v50 = vpop.f32.mrf.mxu2  ;;  %6625 = vtanh.f32 %v1200_v42 }
 0x20f   : > { %v1146_v23 = vpop.f32.mrf.mxu3  ;;  %v1239_v30 = vadd.f32 %v1231_v24, %v1097_v50  ;;  %v1267_v24 = vadd.f32 0.5, %v1259_v22  ;;  %v1276_v42 = vmul.f32 %v1268_v39, %v7286_v10 }
 0x210   : > { %v1240_v52 = vadd.f32 %v1232_v35, %v1146_v23  ;;  %v1186_v23 = vmul.f32 %v7343_v36, %v7255_v45 }
 0x211   : > { %v1247_v60 = vmul.f32 0.5, %v1239_v30  ;;  %v6620_v17 = vpop.eup %6619 }
 0x212   : > { %v1248_v35 = vmul.f32 0.5, %v1240_v52  ;;  %v6622_v21 = vpop.eup %6621  ;;  %v1194_v30 = vadd.f32 %v1186_v23, %v7541_v20  ;;  %v1261_v16 = vmul.f32 0.5, %v6620_v17 }
 0x213   : > { %6627 = vtanh.f32 %v1247_v60  ;;  %v1262_v18 = vmul.f32 0.5, %v6622_v21 }
 0x214   : > { %6629 = vtanh.f32 %v1248_v35  ;;  %v1202_v20 = vmul.f32 0.5, %v1194_v30 }
 0x215   : > { %v1270_v39 = vadd.f32 0.5, %v1262_v18 }
 0x216   : > { %v7543_v25 = vpop.f32.mrf.mxu2 }
 0x217   : > { %v7545_v28 = vpop.f32.mrf.mxu3  ;;  %v1241_v7 = vadd.f32 %v1233_v43, %v7543_v25  ;;  %v1275_v25 = vmul.f32 %v1267_v24, %v7284_v41  ;;  %v1214_v43 = vmul.f32 0.5, %v6618_v37 }
 0x219   : > { %v1249_v44 = vmul.f32 0.5, %v1241_v7  ;;  %v1222_v24 = vadd.f32 0.5, %v1214_v43 }
 0x21e   : > { %v7555_v63 = vpop.f32.mrf.mxu2 }
 0x21f   : > { %v7557_v0 = vpop.f32.mrf.mxu3  ;;  %v1283_v50 = vmax.f32 %v7555_v63, 0.0  ;;  %v1234_v63 = vmul.f32 %v7343_v36, %v7260_v61 }
 0x220   : > { %v1284_v58 = vmax.f32 %v7557_v0, 0.0  ;;  %v1201_v0 = vmul.f32 0.5, %v1193_v5 }
 0x221   : > { %v1291_v45 = vmul.f32 %v1283_v50, %v1219_v49  ;;  %v1242_v22 = vadd.f32 %v1234_v63, %v7545_v28  ;;  %v6624_v28 = vpop.eup %6623  ;;  %v1269_v49 = vadd.f32 0.5, %v1261_v16 }
 0x222   : > { %v1292_v57 = vmul.f32 %v1284_v58, %v1220_v27  ;;  %6631 = vtanh.f32 %v1201_v0  ;;  %v6626_v60 = vpop.eup %6625  ;;  %v1221_v58 = vadd.f32 0.5, %v1213_v47  ;;  %v1215_v35 = vmul.f32 0.5, %v6624_v28 }
 0x223   : > { %v7603_v50 = vadd.f32 %v1291_v45, %v1275_v25  ;;  %v1250_v27 = vmul.f32 0.5, %v1242_v22  ;;  %6633 = vtanh.f32 %v1249_v44  ;;  %v6628_v37 = vpop.eup %6627  ;;  %v1216_v63 = vmul.f32 0.5, %v6626_v60 }
 0x224   : > { %v7606_v23 = vadd.f32 %v1292_v57, %v1276_v42  ;;  %v6630_v10 = vpop.eup %6629  ;;  %6635 = vtanh.f32 %v1202_v20  ;;  %v1277_v21 = vmul.f32 %v1269_v49, %v7298_v48  ;;  %v1263_v47 = vmul.f32 0.5, %v6628_v37 }
 0x225   : > { %6637 = vtanh.f32 %v1250_v27  ;;  %v1278_v57 = vmul.f32 %v1270_v39, %v7300_v11  ;;  %v1264_v25 = vmul.f32 0.5, %v6630_v10  ;;  %v1223_v27 = vadd.f32 0.5, %v1215_v35 }
 0x226   : > { %v7567_v12 = vpop.f32.mrf.mxu2  ;;  %v1271_v60 = vadd.f32 0.5, %v1263_v47 }
 0x227   : > { %v7569_v62 = vpop.f32.mrf.mxu3  ;;  %v1285_v5 = vmax.f32 %v7567_v12, 0.0  ;;  %v1307_v12 = vmul.f32 %v7603_v50, %v7288_v13  ;;  %v1272_v49 = vadd.f32 0.5, %v1264_v25 }
 0x228   : > { %v1286_v41 = vmax.f32 %v7569_v62, 0.0  ;;  %v1308_v62 = vmul.f32 %v7606_v23, %v7290_v14  ;;  %v6632_v22 = vpop.eup %6631  ;;  %v1279_v35 = vmul.f32 %v1271_v60, %v7321_v59 }
 0x229   : > { %v1293_v45 = vmul.f32 %v1285_v5, %v1221_v58  ;;  %v6634_v44 = vpop.eup %6633  ;;  %v1217_v11 = vmul.f32 0.5, %v6632_v22 }
 0x22a   : > { %v1294_v7 = vmul.f32 %v1286_v41, %v1222_v24  ;;  %v6636_v48 = vpop.eup %6635  ;;  %v1224_v41 = vadd.f32 0.5, %v1216_v63  ;;  %v1265_v37 = vmul.f32 0.5, %v6634_v44 }
 0x22b   : > { %v7615_v43 = vadd.f32 %v1293_v45, %v1277_v21  ;;  %v6638_v58 = vpop.eup %6637  ;;  %v1225_v63 = vadd.f32 0.5, %v1217_v11  ;;  %v1280_v21 = vmul.f32 %v1272_v49, %v7323_v40 }
 0x22c   : > { %v7618_v20 = vadd.f32 %v1294_v7, %v1278_v57  ;;  %v1266_v7 = vmul.f32 0.5, %v6638_v58  ;;  %v1273_v47 = vadd.f32 0.5, %v1265_v37 }
 0x22e   : > { %v7579_v15 = vpop.f32.mrf.mxu2  ;;  %v1281_v40 = vmul.f32 %v1273_v47, %v7337_v19 }
 0x22f   : > { %v7581_v26 = vpop.f32.mrf.mxu3  ;;  %v1287_v42 = vmax.f32 %v7579_v15, 0.0  ;;  %v1309_v15 = vmul.f32 %v7615_v43, %v7296_v46 }
 0x230   : > { %v1288_v5 = vmax.f32 %v7581_v26, 0.0  ;;  %v1310_v26 = vmul.f32 %v7618_v20, %v7302_v51 }
 0x231   : > { %v1295_v24 = vmul.f32 %v1287_v42, %v1223_v27  ;;  %v1355_v27 = vmax.f32 %v7603_v50, 0.0 }
 0x232   : > { %v1296_v39 = vmul.f32 %v1288_v5, %v1224_v41  ;;  %v1274_v5 = vadd.f32 0.5, %v1266_v7 }
 0x233   : > { %v7628_v22 = vadd.f32 %v1295_v24, %v1279_v35 }
 0x234   : > { %v1282_v19 = vmul.f32 %v1274_v5, %v7343_v36 }
 0x235   : > { %v1311_v58 = vmul.f32 %v7628_v22, %v7312_v32 }
 0x236   : > { %v7597_v52 = vpop.f32.mrf.mxu2 }
 0x237   : > { %v7600_v2 = vpop.f32.mrf.mxu3  ;;  %v1289_v10 = vmax.f32 %v7597_v52, 0.0 }
 0x238   : > { %v1290_v52 = vmax.f32 %v7600_v2, 0.0  ;;  %v1356_v2 = vmax.f32 %v7606_v23, 0.0 }
 0x239   : > { %v1297_v44 = vmul.f32 %v1289_v10, %v1225_v63 }
 0x23b   : > { %v7638_v11 = vadd.f32 %v1297_v44, %v1281_v40 }
 0x23d   : > { %v1313_v47 = vmul.f32 %v7638_v11, %v7328_v3 }
 0x23e   : > { %v1112_v17 = vpop.f32.mrf.mxu2 }
 0x23f   : > { %v1315_v30 = vadd.f32 %v1307_v12, %v1112_v17  ;;  %v1161_v0 = vpop.f32.mrf.mxu3  ;;  %v1218_v12 = vmul.f32 0.5, %v6636_v48 }
 0x240   : > { %v1316_v16 = vadd.f32 %v1308_v62, %v1161_v0 }
 0x241   : > { %v1323_v18 = vmul.f32 0.5, %v1315_v30 }
 0x242   : > { %v1324_v28 = vmul.f32 0.5, %v1316_v16  ;;  %v7631_v16 = vadd.f32 %v1296_v39, %v1280_v21 }
 0x243   : > { %6639 = vtanh.f32 %v1323_v18  ;;  %v1226_v18 = vadd.f32 0.5, %v1218_v12 }
 0x244   : > { %6641 = vtanh.f32 %v1324_v28  ;;  %v1312_v24 = vmul.f32 %v7631_v16, %v7314_v33 }
 0x245   : > { %v1298_v41 = vmul.f32 %v1290_v52, %v1226_v18 }
 0x246   : > { %v1114_v45 = vpop.f32.mrf.mxu2 }
 0x247   : > { %v1317_v17 = vadd.f32 %v1309_v15, %v1114_v45  ;;  %v1163_v62 = vpop.f32.mrf.mxu3  ;;  %v7643_v12 = vadd.f32 %v1298_v41, %v1282_v19 }
 0x248   : > { %v1318_v30 = vadd.f32 %v1310_v26, %v1163_v62 }
 0x249   : > { %v6640_v0 = vpop.eup %6639  ;;  %v1325_v57 = vmul.f32 0.5, %v1317_v17  ;;  %v1357_v17 = vmax.f32 %v7615_v43, 0.0 }
 0x24a   : > { %v6642_v25 = vpop.eup %6641  ;;  %v1339_v42 = vmul.f32 0.5, %v6640_v0  ;;  %v1326_v59 = vmul.f32 0.5, %v1318_v30 }
 0x24b   : > { %v1340_v28 = vmul.f32 0.5, %v6642_v25  ;;  %6643 = vtanh.f32 %v1325_v57 }
 0x24c   : > { %v1347_v48 = vadd.f32 0.5, %v1339_v42  ;;  %6645 = vtanh.f32 %v1326_v59 }
 0x24d   : > { %v1348_v60 = vadd.f32 0.5, %v1340_v28 }
 0x24e   : > { %v1363_v49 = vmul.f32 %v1355_v27, %v1347_v48  ;;  %v1117_v37 = vpop.f32.mrf.mxu2 }
 0x24f   : > { %v1364_v15 = vmul.f32 %v1356_v2, %v1348_v60  ;;  %v1319_v39 = vadd.f32 %v1311_v58, %v1117_v37  ;;  %v1166_v10 = vpop.f32.mrf.mxu3  ;;  %v1314_v60 = vmul.f32 %v7643_v12, %v7331_v9 }
 0x250   : > { %v1320_v45 = vadd.f32 %v1312_v24, %v1166_v10  ;;  %v1358_v10 = vmax.f32 %v7618_v20, 0.0 }
 0x251   : > { %v6644_v26 = vpop.eup %6643  ;;  %v1379_v35 = vpack.c.bf16 %v1364_v15, %v1363_v49  ;;  %v1395_v7 = vrot.slane %v1364_v15, 7  ;;  %v1327_v63 = vmul.f32 0.5, %v1319_v39 }
 0x252   : > { %v1341_v62 = vmul.f32 0.5, %v6644_v26  ;;  %v1328_v21 = vmul.f32 0.5, %v1320_v45  ;;  %v6646_v57 = vpop.eup %6645 }
 0x253   : > { %1383 = vst [vmem:[#allocation2 + $0x10] sm:$0xff] %v1379_v35  ;;  %v1399_v36 = vsel %vm751_vm3, %v1363_v49, %v1395_v7  ;;  %v1400_v30 = vsel %vm753_vm4, %v1363_v49, %v1395_v7  ;;  %v1402_v0 = vsel %vm756_vm5, %v1363_v49, %v1395_v7  ;;  %v1404_v52 = vsel %vm759_vm6, %v1363_v49, %v1395_v7 }
 0x254   : > { %v1401_v25 = vrot.slane %v1400_v30, 1  ;;  %v1403_v44 = vrot.slane %v1402_v0, 2  ;;  %v1405_v42 = vrot.slane %v1404_v52, 3  ;;  %v1406_v59 = vsel %vm762_vm7, %v1363_v49, %v1395_v7  ;;  %5706 = vst.msk [vmem:[%s7353_s19 + $0x1] ss:$8 sm:$0x3] %vm7317_vm2, %v1399_v36 }
 0x255   : > { %v1407_v18 = vrot.slane %v1406_v59, 4  ;;  %v1408_v5 = vsel %vm765_vm8, %v1363_v49, %v1395_v7  ;;  %v1410_v28 = vsel %vm768_vm9, %v1363_v49, %v1395_v7  ;;  %v1412_v40 = vsel %vm771_vm10, %v1395_v7, %v1363_v49 }
 0x256   : > { %v1409_v48 = vrot.slane %v1408_v5, 5  ;;  %v1411_v27 = vrot.slane %v1410_v28, 6  ;;  %5707 = vst.msk [vmem:[%s7353_s19 + $0x11] ss:$8 sm:$0x3] %vm7317_vm2, %v1401_v25  ;;  %6647 = vtanh.f32 %v1327_v63  ;;  %v1119_v41 = vpop.f32.mrf.mxu2  ;;  %v1349_v2 = vadd.f32 0.5, %v1341_v62 }
 0x257   : > { %5708 = vst.msk [vmem:[%s7353_s19 + $0x21] ss:$8 sm:$0x3] %vm7317_vm2, %v1403_v44  ;;  %v1342_v58 = vmul.f32 0.5, %v6646_v57  ;;  %6649 = vtanh.f32 %v1328_v21  ;;  %v1321_v49 = vadd.f32 %v1313_v47, %v1119_v41  ;;  %v1168_v37 = vpop.f32.mrf.mxu3  ;;  %v1413_v24 = vrot.slane %v1412_v40, 7 }
 0x258   : > { %5709 = vst.msk [vmem:[%s7353_s19 + $0x31] ss:$8 sm:$0x3] %vm7317_vm2, %v1405_v42  ;;  %v1322_v19 = vadd.f32 %v1314_v60, %v1168_v37  ;;  %v1365_v15 = vmul.f32 %v1357_v17, %v1349_v2  ;;  %v1359_v47 = vmax.f32 %v7628_v22, 0.0  ;;  %v1360_v2 = vmax.f32 %v7631_v16, 0.0 }
 0x259   : > { %5710 = vst.msk [vmem:[%s7353_s19 + $0x41] ss:$8 sm:$0x3] %vm7317_vm2, %v1407_v18  ;;  %v1350_v39 = vadd.f32 0.5, %v1342_v58  ;;  %v1329_v45 = vmul.f32 0.5, %v1321_v49 }
 0x25a   : > { %5711 = vst.msk [vmem:[%s7353_s19 + $0x51] ss:$8 sm:$0x3] %vm7317_vm2, %v1409_v48  ;;  %v1330_v26 = vmul.f32 0.5, %v1322_v19 }
 0x25b   : > { %5712 = vst.msk [vmem:[%s7353_s19 + $0x61] ss:$8 sm:$0x3] %vm7317_vm2, %v1411_v27  ;;  %v1366_v35 = vmul.f32 %v1358_v10, %v1350_v39  ;;  %6651 = vtanh.f32 %v1329_v45  ;;  %v1361_v45 = vmax.f32 %v7638_v11, 0.0 }
 0x25c   : > { %v6648_v7 = vpop.eup %6647  ;;  %5713 = vst.msk [vmem:[%s7353_s19 + $0x71] ss:$8 sm:$0x3] %vm7317_vm2, %v1413_v24  ;;  %6653 = vtanh.f32 %v1330_v26 }
 0x25d   : > { %v6650_v17 = vpop.eup %6649  ;;  %v1380_v62 = vpack.c.bf16 %v1366_v35, %v1365_v15  ;;  %v1396_v63 = vrot.slane %v1366_v35, 7  ;;  %v1343_v21 = vmul.f32 0.5, %v6648_v7  ;;  %v1362_v35 = vmax.f32 %v7643_v12, 0.0 }
 0x25e   : > { %v1344_v36 = vmul.f32 0.5, %v6650_v17 }
 0x25f   : > { %1384 = vst [vmem:[#allocation2 + $0x18] sm:$0xff] %v1380_v62  ;;  %v1414_v30 = vsel %vm751_vm3, %v1365_v15, %v1396_v63  ;;  %v1415_v0 = vsel %vm753_vm4, %v1365_v15, %v1396_v63  ;;  %v1417_v52 = vsel %vm756_vm5, %v1365_v15, %v1396_v63  ;;  %v1419_v57 = vsel %vm759_vm6, %v1365_v15, %v1396_v63 }
 0x260   : > { %v1416_v25 = vrot.slane %v1415_v0, 1  ;;  %v1418_v44 = vrot.slane %v1417_v52, 2  ;;  %v1420_v42 = vrot.slane %v1419_v57, 3  ;;  %v1421_v59 = vsel %vm762_vm7, %v1365_v15, %v1396_v63  ;;  %5714 = vst.msk [vmem:[%s7353_s19 + $0x81] ss:$8 sm:$0x3] %vm7317_vm2, %v1414_v30 }
 0x261   : > { %v6652_v18 = vpop.eup %6651  ;;  %v1422_v5 = vrot.slane %v1421_v59, 4  ;;  %v1423_v28 = vsel %vm765_vm8, %v1365_v15, %v1396_v63  ;;  %v1425_v40 = vsel %vm768_vm9, %v1365_v15, %v1396_v63  ;;  %v1427_v48 = vsel %vm771_vm10, %v1396_v63, %v1365_v15  ;;  %v7723_v0 = vld [vmem:[#allocation2] sm:$0xf]  ;;  %v7725_v52 = vld [vmem:[#allocation2 + $0x4] sm:$0xf] }
 0x262   : > { %v6654_v27 = vpop.eup %6653  ;;  %v1424_v41 = vrot.slane %v1423_v28, 5  ;;  %v1426_v60 = vrot.slane %v1425_v40, 6  ;;  %5715 = vst.msk [vmem:[%s7353_s19 + $0x91] ss:$8 sm:$0x3] %vm7317_vm2, %v1416_v25  ;;  %v1351_v58 = vadd.f32 0.5, %v1343_v21 }
 0x263   : > { %5716 = vst.msk [vmem:[%s7353_s19 + $0xa1] ss:$8 sm:$0x3] %vm7317_vm2, %v1418_v44  ;;  %v1352_v49 = vadd.f32 0.5, %v1344_v36  ;;  %v1345_v37 = vmul.f32 0.5, %v6652_v18  ;;  %v1428_v24 = vrot.slane %v1427_v48, 7 }
 0x264   : > { %5717 = vst.msk [vmem:[%s7353_s19 + $0xb1] ss:$8 sm:$0x3] %vm7317_vm2, %v1420_v42  ;;  %v1346_v19 = vmul.f32 0.5, %v6654_v27  ;;  %v1367_v15 = vmul.f32 %v1359_v47, %v1351_v58 }
 0x265   : > { %5718 = vst.msk [vmem:[%s7353_s19 + $0xc1] ss:$8 sm:$0x3] %vm7317_vm2, %v1422_v5  ;;  %v1368_v39 = vmul.f32 %v1360_v2, %v1352_v49  ;;  %v1353_v10 = vadd.f32 0.5, %v1345_v37 }
 0x266   : > { %5719 = vst.msk [vmem:[%s7353_s19 + $0xd1] ss:$8 sm:$0x3] %vm7317_vm2, %v1424_v41  ;;  %v1354_v26 = vadd.f32 0.5, %v1346_v19 }
 0x267   : > { %5720 = vst.msk [vmem:[%s7353_s19 + $0xe1] ss:$8 sm:$0x3] %vm7317_vm2, %v1426_v60  ;;  %v1381_v7 = vpack.c.bf16 %v1368_v39, %v1367_v15  ;;  %v1397_v17 = vrot.slane %v1368_v39, 7  ;;  %v1369_v62 = vmul.f32 %v1361_v45, %v1353_v10 }
 0x268   : > { %5721 = vst.msk [vmem:[%s7353_s19 + $0xf1] ss:$8 sm:$0x3] %vm7317_vm2, %v1428_v24  ;;  %v1370_v63 = vmul.f32 %v1362_v35, %v1354_v26 }
 0x269   : > { %1385 = vst [vmem:[#allocation2 + $0x20] sm:$0xff] %v1381_v7  ;;  %v1429_v21 = vsel %vm751_vm3, %v1367_v15, %v1397_v17  ;;  %v1430_v47 = vsel %vm753_vm4, %v1367_v15, %v1397_v17  ;;  %v1432_v36 = vsel %vm756_vm5, %v1367_v15, %v1397_v17  ;;  %v1434_v30 = vsel %vm759_vm6, %v1367_v15, %v1397_v17 }
 0x26a   : > { %v1431_v57 = vrot.slane %v1430_v47, 1  ;;  %v1433_v25 = vrot.slane %v1432_v36, 2  ;;  %v1435_v44 = vrot.slane %v1434_v30, 3  ;;  %v1436_v42 = vsel %vm762_vm7, %v1367_v15, %v1397_v17  ;;  %5722 = vst.msk [vmem:[%s7353_s19 + $0x101] ss:$8 sm:$0x3] %vm7317_vm2, %v1429_v21 }
 0x26b   : > { %v1437_v59 = vrot.slane %v1436_v42, 4  ;;  %v1438_v18 = vsel %vm765_vm8, %v1367_v15, %v1397_v17  ;;  %v1440_v5 = vsel %vm768_vm9, %v1367_v15, %v1397_v17  ;;  %v1442_v28 = vsel %vm771_vm10, %v1397_v17, %v1367_v15  ;;  %2230 = vst [vmem:[#allocation2] sm:$0x33] %v7488_v29  ;;  %v6411_v42 = vld [vmem:[#allocation2 + $0x4] sm:$0xf0] }
 0x26c   : > { %v1439_v40 = vrot.slane %v1438_v18, 5  ;;  %5723 = vst.msk [vmem:[%s7353_s19 + $0x111] ss:$8 sm:$0x3] %vm7317_vm2, %v1431_v57  ;;  %v1441_v48 = vrot.slane %v1440_v5, 6  ;;  %v1398_v27 = vrot.slane %v1370_v63, 7  ;;  %v1382_v60 = vpack.c.bf16 %v1370_v63, %v1369_v62 }
 0x26d   : > { %5724 = vst.msk [vmem:[%s7353_s19 + $0x121] ss:$8 sm:$0x3] %vm7317_vm2, %v1433_v25  ;;  %v1443_v41 = vrot.slane %v1442_v28, 7  ;;  %v6413_v57 = vld [vmem:[#allocation2 + $0x14] sm:$0xf0] }
 0x26e   : > { %5725 = vst.msk [vmem:[%s7353_s19 + $0x131] ss:$8 sm:$0x3] %vm7317_vm2, %v1435_v44  ;;  %v1445_v29 = vsel %vm753_vm4, %v1369_v62, %v1398_v27  ;;  %v1447_v2 = vsel %vm756_vm5, %v1369_v62, %v1398_v27  ;;  %v1449_v58 = vsel %vm759_vm6, %v1369_v62, %v1398_v27  ;;  %v1444_v49 = vsel %vm751_vm3, %v1369_v62, %v1398_v27  ;;  %v5783_v25 = vld [vmem:[#allocation2 + $0x18] sm:$0xf0] }
 0x26f   : > { %5726 = vst.msk [vmem:[%s7353_s19 + $0x141] ss:$8 sm:$0x3] %vm7317_vm2, %v1437_v59  ;;  %v1446_v37 = vrot.slane %v1445_v29, 1  ;;  %v1451_v24 = vsel %vm762_vm7, %v1369_v62, %v1398_v27  ;;  %v1448_v19 = vrot.slane %v1447_v2, 2  ;;  %v1453_v15 = vsel %vm765_vm8, %v1369_v62, %v1398_v27  ;;  %v6407_v29 = vld [vmem:[%s9543_s1 + $0x28] sm:$0xff] }
 0x270   : > { %5727 = vst.msk [vmem:[%s7353_s19 + $0x151] ss:$8 sm:$0x3] %vm7317_vm2, %v1439_v40  ;;  %v1450_v39 = vrot.slane %v1449_v58, 3  ;;  %v1455_v10 = vsel %vm768_vm9, %v1369_v62, %v1398_v27  ;;  %v1452_v45 = vrot.slane %v1451_v24, 4  ;;  %v1457_v26 = vsel %vm771_vm10, %v1398_v27, %v1369_v62  ;;  %v6402_v27 = vld [vmem:[%s9543_s1] sm:$0xff] }
 0x271   : > { %5728 = vst.msk [vmem:[%s7353_s19 + $0x161] ss:$8 sm:$0x3] %vm7317_vm2, %v1441_v48  ;;  %v1454_v35 = vrot.slane %v1453_v15, 5  ;;  %v1456_v7 = vrot.slane %v1455_v10, 6  ;;  %v1458_v17 = vrot.slane %v1457_v26, 7  ;;  %v5774_v40 = vor.u32 %v6411_v42, %v7723_v0 }
 0x272   : > { %5729 = vst.msk [vmem:[%s7353_s19 + $0x171] ss:$8 sm:$0x3] %vm7317_vm2, %v1443_v41  ;;  %v5789_v63 = vld [vmem:[#allocation2 + $0x20] sm:$0xf]  ;;  %v6404_v0 = vld [vmem:[%s9543_s1 + $0x10] sm:$0xff]  ;;  %v1865_v42 = vmul.f32 %v7606_v23, %v7210_v56 }
 0x273   : > { %1386 = vst [vmem:[#allocation2 + $0x28] sm:$0xff] %v1382_v60  ;;  %v6414_v62 = vld [vmem:[#allocation2 + $0x24] sm:$0xf]  ;;  %v5781_v44 = vld [vmem:[#allocation2 + $0x10] sm:$0xf]  ;;  %v6406_v60 = vld [vmem:[%s9543_s1 + $0x20] sm:$0xff] }
 0x274   : > { %5730 = vst.msk [vmem:[%s7353_s19 + $0x181] ss:$8 sm:$0x3] %vm7317_vm2, %v1444_v49  ;;  %v5782_v59 = vor.u32 %v6413_v57, %v5781_v44  ;;  %v6412_v18 = vld [vmem:[#allocation2 + $0x14] sm:$0xf]  ;;  %v6403_v41 = vld [vmem:[%s9543_s1 + $0x8] sm:$0xff] }
 0x275   : > { %5731 = vst.msk [vmem:[%s7353_s19 + $0x191] ss:$8 sm:$0x3] %vm7317_vm2, %v1446_v37  ;;  %v5775_v5 = vld [vmem:[#allocation2 + $0x8] sm:$0xf0]  ;;  %v5786_v28 = vor.u32 %v6412_v18, %v5783_v25  ;;  %v6409_v58 = vld [vmem:[%s9543_s1 + $0x38] sm:$0xff]  ;;  %v1864_v25 = vmul.f32 %v7603_v50, %v7208_v55 }
 0x276   : > { %5732 = vst.msk [vmem:[%s7353_s19 + $0x1a1] ss:$8 sm:$0x3] %vm7317_vm2, %v1448_v19  ;;  %v5778_v48 = vor.u32 %v7725_v52, %v5775_v5  ;;  %v6405_v52 = vld [vmem:[%s9543_s1 + $0x18] sm:$0xff]  ;;  %v6408_v2 = vld [vmem:[%s9543_s1 + $0x30] sm:$0xff] }
 0x277   : > { %5733 = vst.msk [vmem:[%s7353_s19 + $0x1b1] ss:$8 sm:$0x3] %vm7317_vm2, %v1450_v39 }
 0x278   : > { %5734 = vst.msk [vmem:[%s7353_s19 + $0x1c1] ss:$8 sm:$0x3] %vm7317_vm2, %v1452_v45 }
 0x279   : > { %5735 = vst.msk [vmem:[%s7353_s19 + $0x1d1] ss:$8 sm:$0x3] %vm7317_vm2, %v1454_v35 }
 0x27a   : > { %5736 = vst.msk [vmem:[%s7353_s19 + $0x1e1] ss:$8 sm:$0x3] %vm7317_vm2, %v1456_v7  ;;  %v6415_v21 = vld [vmem:[#allocation2 + $0x24] sm:$0xf0] }
 0x27b   : > { %5737 = vst.msk [vmem:[%s7353_s19 + $0x1f1] ss:$8 sm:$0x3] %vm7317_vm2, %v1458_v17  ;;  %v5790_v47 = vor.u32 %v6415_v21, %v5789_v63  ;;  %v5791_v36 = vld [vmem:[#allocation2 + $0x28] sm:$0xf0] }
 0x27c   : > { %v5794_v30 = vor.u32 %v6414_v62, %v5791_v36  ;;  %v1816_v36 = vmul.f32 %v7603_v50, %v7204_v53 }
 0x27d   : > { %1715 = vmatpush.bf16.msrb.mxu0 %v5790_v47 }
 0x27e   : > { %1764 = vmatpush.bf16.msrb.mxu1 %v5794_v30  ;;  %v1817_v30 = vmul.f32 %v7606_v23, %v7206_v54 }
 0x281   : > { %1716 = vmatpush.bf16.msrb.mxu0 %v5782_v59 }
 0x282   : > { %1765 = vmatpush.bf16.msrb.mxu1 %v5786_v28 }
 0x285   : > { %1717 = vmatpush.bf16.msrb.mxu0 %v5774_v40 }
 0x286   : > { %1766 = vmatpush.bf16.msrb.mxu1 %v5778_v48 }
 0x288   : > { %5795 = vmatmul.msk.bf16.vlgmr.msrb.gmra.mxu0 %vm400_vm1, %v6402_v27 }
 0x289   : > { %5803 = vmatmul.msk.bf16.vlgmr.msrb.gmra.mxu1 %vm400_vm1, %v6402_v27  ;;  %v1818_v27 = vmul.f32 %v7615_v43, %v7219_v1 }
 0x298   : > { %5796 = vmatmul.msk.bf16.gmra.mxu0 %vm400_vm1, %v6403_v41 }
 0x299   : > { %5804 = vmatmul.msk.bf16.gmra.mxu1 %vm400_vm1, %v6403_v41 }
 0x2a8   : > { %5797 = vmatmul.msk.bf16.gmra.mxu0 %vm400_vm1, %v6404_v0 }
 0x2a9   : > { %5805 = vmatmul.msk.bf16.gmra.mxu1 %vm400_vm1, %v6404_v0  ;;  %v1819_v0 = vmul.f32 %v7618_v20, %v7222_v4 }
 0x2b8   : > { %5798 = vmatmul.msk.bf16.gmra.mxu0 %vm400_vm1, %v6405_v52 }
 0x2b9   : > { %5806 = vmatmul.msk.bf16.gmra.mxu1 %vm400_vm1, %v6405_v52 }
 0x2c8   : > { %5799 = vmatmul.msk.bf16.gmra.mxu0 %vm400_vm1, %v6406_v60 }
 0x2c9   : > { %5807 = vmatmul.msk.bf16.gmra.mxu1 %vm400_vm1, %v6406_v60 }
 0x2d8   : > { %5800 = vmatmul.msk.bf16.gmra.mxu0 %vm400_vm1, %v6407_v29 }
 0x2d9   : > { %5808 = vmatmul.msk.bf16.gmra.mxu1 %vm400_vm1, %v6407_v29  ;;  %v1866_v29 = vmul.f32 %v7615_v43, %v7224_v6 }
 0x2e8   : > { %5801 = vmatmul.msk.bf16.gmra.mxu0 %vm400_vm1, %v6408_v2 }
 0x2e9   : > { %5809 = vmatmul.msk.bf16.gmra.mxu1 %vm400_vm1, %v6408_v2 }
 0x2f8   : > { %5802 = vmatmul.msk.bf16.gmra.mxu0 %vm400_vm1, %v6409_v58 }
 0x2f9   : > { %5810 = vmatmul.msk.bf16.gmra.mxu1 %vm400_vm1, %v6409_v58  ;;  %v1867_v58 = vmul.f32 %v7618_v20, %v7226_v8 }
 0x305   : > { %v1719_v49 = vpop.f32.mrf.mxu0 }
 0x306   : > { %v1768_v37 = vpop.f32.mrf.mxu1  ;;  %v1824_v57 = vadd.f32 %v1816_v36, %v1719_v49 }
 0x307   : > { %v1825_v44 = vadd.f32 %v1817_v30, %v1768_v37 }
 0x308   : > { %v1832_v40 = vmul.f32 0.5, %v1824_v57 }
 0x309   : > { %v1833_v48 = vmul.f32 0.5, %v1825_v44 }
 0x30a   : > { %6655 = vtanh.f32 %v1832_v40 }
 0x30b   : > { %6657 = vtanh.f32 %v1833_v48 }
 0x30d   : > { %v1721_v24 = vpop.f32.mrf.mxu0 }
 0x30e   : > { %v1770_v19 = vpop.f32.mrf.mxu1  ;;  %v1826_v60 = vadd.f32 %v1818_v27, %v1721_v24  ;;  %v9578_v24 = vld [vmem:[#allocation10_spill] sm:$0xff] }
 0x30f   : > { %v1827_v2 = vadd.f32 %v1819_v0, %v1770_v19  ;;  %v9579_v19 = vld [vmem:[#allocation11_spill] sm:$0xff] }
 0x310   : > { %v1834_v36 = vmul.f32 0.5, %v1826_v60  ;;  %v6656_v57 = vpop.eup %6655 }
 0x311   : > { %v1835_v30 = vmul.f32 0.5, %v1827_v2  ;;  %v1848_v60 = vmul.f32 0.5, %v6656_v57 }
 0x315   : > { %v1724_v15 = vpop.f32.mrf.mxu0 }
 0x316   : > { %v1773_v39 = vpop.f32.mrf.mxu1 }
 0x31d   : > { %v7830_v10 = vpop.f32.mrf.mxu0 }
 0x31e   : > { %v7832_v45 = vpop.f32.mrf.mxu1 }
 0x325   : > { %v1729_v26 = vpop.f32.mrf.mxu0 }
 0x326   : > { %v1778_v35 = vpop.f32.mrf.mxu1  ;;  %v1872_v59 = vadd.f32 %v1864_v25, %v1729_v26  ;;  %v1820_v25 = vmul.f32 %v7628_v22, %v9578_v24 }
 0x327   : > { %v1873_v5 = vadd.f32 %v1865_v42, %v1778_v35  ;;  %v6658_v42 = vpop.eup %6657 }
 0x328   : > { %v1880_v41 = vmul.f32 0.5, %v1872_v59  ;;  %v1821_v59 = vmul.f32 %v7631_v16, %v9579_v19 }
 0x329   : > { %v1881_v52 = vmul.f32 0.5, %v1873_v5 }
 0x32a   : > { %6659 = vtanh.f32 %v1880_v41  ;;  %v1829_v27 = vadd.f32 %v1821_v59, %v1773_v39  ;;  %v1869_v41 = vmul.f32 %v7631_v16, %v7245_v34 }
 0x32b   : > { %6661 = vtanh.f32 %v1881_v52 }
 0x32c   : > { %6663 = vtanh.f32 %v1834_v36  ;;  %v1837_v39 = vmul.f32 0.5, %v1829_v27 }
 0x32d   : > { %v1731_v7 = vpop.f32.mrf.mxu0  ;;  %6665 = vtanh.f32 %v1835_v30 }
 0x32e   : > { %v1780_v17 = vpop.f32.mrf.mxu1  ;;  %v1874_v49 = vadd.f32 %v1866_v29, %v1731_v7  ;;  %v1828_v7 = vadd.f32 %v1820_v25, %v1724_v15  ;;  %v1849_v15 = vmul.f32 0.5, %v6658_v42  ;;  %v9581_v25 = vld [vmem:[#allocation15_spill] sm:$0xff] }
 0x32f   : > { %v1875_v26 = vadd.f32 %v1867_v58, %v1780_v17  ;;  %v1868_v17 = vmul.f32 %v7628_v22, %v7242_v31  ;;  %v1870_v59 = vmul.f32 %v7638_v11, %v9581_v25 }
 0x330   : > { %v1882_v44 = vmul.f32 0.5, %v1874_v49  ;;  %v6660_v40 = vpop.eup %6659  ;;  %v1836_v49 = vmul.f32 0.5, %v1828_v7  ;;  %v1857_v34 = vadd.f32 0.5, %v1849_v15 }
 0x331   : > { %v1883_v5 = vmul.f32 0.5, %v1875_v26  ;;  %v6662_v48 = vpop.eup %6661  ;;  %v1896_v29 = vmul.f32 0.5, %v6660_v40  ;;  %v9580_v26 = vld [vmem:[#allocation12_spill] sm:$0xff] }
 0x332   : > { %6667 = vtanh.f32 %v1882_v44  ;;  %v1822_v36 = vmul.f32 %v7638_v11, %v9580_v26  ;;  %v1897_v30 = vmul.f32 0.5, %v6662_v48  ;;  %v6664_v44 = vpop.eup %6663  ;;  %v9582_v40 = vld [vmem:[#allocation16_spill] sm:$0xff] }
 0x333   : > { %6669 = vtanh.f32 %v1883_v5  ;;  %v6666_v7 = vpop.eup %6665 }
 0x334   : > { %v1830_v57 = vadd.f32 %v1822_v36, %v7830_v10  ;;  %6671 = vtanh.f32 %v1836_v49  ;;  %v1905_v25 = vadd.f32 0.5, %v1897_v30  ;;  %v1850_v36 = vmul.f32 0.5, %v6664_v44 }
 0x335   : > { %v1734_v63 = vpop.f32.mrf.mxu0  ;;  %6673 = vtanh.f32 %v1837_v39 }
 0x336   : > { %v1783_v62 = vpop.f32.mrf.mxu1  ;;  %v1876_v0 = vadd.f32 %v1868_v17, %v1734_v63  ;;  %v1856_v17 = vadd.f32 0.5, %v1848_v60  ;;  %v1913_v39 = vmul.f32 %v1905_v25, %v7606_v23 }
 0x337   : > { %v1877_v2 = vadd.f32 %v1869_v41, %v1783_v62  ;;  %v1823_v62 = vmul.f32 %v7643_v12, %v9582_v40  ;;  %v1904_v41 = vadd.f32 0.5, %v1896_v29 }
 0x338   : > { %v1884_v5 = vmul.f32 0.5, %v1876_v0  ;;  %v6668_v27 = vpop.eup %6667 }
 0x339   : > { %v1885_v26 = vmul.f32 0.5, %v1877_v2  ;;  %v6670_v10 = vpop.eup %6669  ;;  %v1831_v0 = vadd.f32 %v1823_v62, %v7832_v45  ;;  %v1898_v15 = vmul.f32 0.5, %v6668_v27 }
 0x33a   : > { %6675 = vtanh.f32 %v1884_v5  ;;  %v1899_v44 = vmul.f32 0.5, %v6670_v10  ;;  %v1858_v5 = vadd.f32 0.5, %v1850_v36 }
 0x33b   : > { %6677 = vtanh.f32 %v1885_v26  ;;  %v1839_v45 = vmul.f32 0.5, %v1831_v0 }
 0x33c   : > { %v1907_v23 = vadd.f32 0.5, %v1899_v44 }
 0x33d   : > { %v7834_v21 = vpop.f32.mrf.mxu0 }
 0x33e   : > { %v7836_v47 = vpop.f32.mrf.mxu1  ;;  %v1878_v48 = vadd.f32 %v1870_v59, %v7834_v21  ;;  %v1912_v21 = vmul.f32 %v1904_v41, %v7603_v50  ;;  %v1851_v59 = vmul.f32 0.5, %v6666_v7 }
 0x340   : > { %v1886_v49 = vmul.f32 0.5, %v1878_v48 }
 0x345   : > { %v7846_v18 = vpop.f32.mrf.mxu0 }
 0x346   : > { %v7848_v28 = vpop.f32.mrf.mxu1  ;;  %v1920_v63 = vmax.f32 %v7846_v18, 0.0  ;;  %v1871_v18 = vmul.f32 %v7643_v12, %v7260_v61 }
 0x347   : > { %v1921_v42 = vmax.f32 %v7848_v28, 0.0  ;;  %v1838_v28 = vmul.f32 0.5, %v1830_v57 }
 0x348   : > { %v1928_v40 = vmul.f32 %v1920_v63, %v1856_v17  ;;  %v1879_v60 = vadd.f32 %v1871_v18, %v7836_v47  ;;  %v6672_v47 = vpop.eup %6671  ;;  %v1859_v17 = vadd.f32 0.5, %v1851_v59 }
 0x349   : > { %v1929_v29 = vmul.f32 %v1921_v42, %v1857_v34  ;;  %6679 = vtanh.f32 %v1838_v28  ;;  %v6674_v26 = vpop.eup %6673  ;;  %v1906_v42 = vadd.f32 0.5, %v1898_v15  ;;  %v1852_v41 = vmul.f32 0.5, %v6672_v47 }
 0x34a   : > { %v7894_v63 = vadd.f32 %v1928_v40, %v1912_v21  ;;  %v1887_v34 = vmul.f32 0.5, %v1879_v60  ;;  %6681 = vtanh.f32 %v1886_v49  ;;  %v6676_v7 = vpop.eup %6675  ;;  %v1853_v18 = vmul.f32 0.5, %v6674_v26 }
 0x34b   : > { %v7897_v62 = vadd.f32 %v1929_v29, %v1913_v39  ;;  %v6678_v25 = vpop.eup %6677  ;;  %6683 = vtanh.f32 %v1839_v45  ;;  %v1914_v10 = vmul.f32 %v1906_v42, %v7615_v43  ;;  %v1900_v36 = vmul.f32 0.5, %v6676_v7 }
 0x34c   : > { %6685 = vtanh.f32 %v1887_v34  ;;  %v1915_v29 = vmul.f32 %v1907_v23, %v7618_v20  ;;  %v1901_v21 = vmul.f32 0.5, %v6678_v25  ;;  %v1860_v34 = vadd.f32 0.5, %v1852_v41 }
 0x34d   : > { %v7858_v37 = vpop.f32.mrf.mxu0  ;;  %v1908_v26 = vadd.f32 0.5, %v1900_v36 }
 0x34e   : > { %v7860_v35 = vpop.f32.mrf.mxu1  ;;  %v1922_v57 = vmax.f32 %v7858_v37, 0.0  ;;  %v1944_v37 = vmul.f32 %v7894_v63, %v7288_v13  ;;  %v1909_v42 = vadd.f32 0.5, %v1901_v21 }
 0x34f   : > { %v1923_v50 = vmax.f32 %v7860_v35, 0.0  ;;  %v1945_v35 = vmul.f32 %v7897_v62, %v7290_v14  ;;  %v6680_v60 = vpop.eup %6679  ;;  %v1916_v41 = vmul.f32 %v1908_v26, %v7628_v22 }
 0x350   : > { %v1930_v40 = vmul.f32 %v1922_v57, %v1858_v5  ;;  %v6682_v49 = vpop.eup %6681  ;;  %v1854_v20 = vmul.f32 0.5, %v6680_v60 }
 0x351   : > { %v1931_v48 = vmul.f32 %v1923_v50, %v1859_v17  ;;  %v6684_v43 = vpop.eup %6683  ;;  %v1861_v50 = vadd.f32 0.5, %v1853_v18  ;;  %v1902_v7 = vmul.f32 0.5, %v6682_v49 }
 0x352   : > { %v7906_v59 = vadd.f32 %v1930_v40, %v1914_v10  ;;  %v6686_v5 = vpop.eup %6685  ;;  %v1862_v18 = vadd.f32 0.5, %v1854_v20  ;;  %v1917_v10 = vmul.f32 %v1909_v42, %v7631_v16 }
 0x353   : > { %v7909_v45 = vadd.f32 %v1931_v48, %v1915_v29  ;;  %v1903_v48 = vmul.f32 0.5, %v6686_v5  ;;  %v1910_v36 = vadd.f32 0.5, %v1902_v7 }
 0x355   : > { %v7870_v52 = vpop.f32.mrf.mxu0  ;;  %v1918_v16 = vmul.f32 %v1910_v36, %v7638_v11 }
 0x356   : > { %v7872_v58 = vpop.f32.mrf.mxu1  ;;  %v1924_v39 = vmax.f32 %v7870_v52, 0.0  ;;  %v1946_v52 = vmul.f32 %v7906_v59, %v7296_v46 }
 0x357   : > { %v1925_v57 = vmax.f32 %v7872_v58, 0.0  ;;  %v1947_v58 = vmul.f32 %v7909_v45, %v7302_v51 }
 0x358   : > { %v1932_v17 = vmul.f32 %v1924_v39, %v1860_v34  ;;  %v1992_v34 = vmax.f32 %v7894_v63, 0.0 }
 0x359   : > { %v1933_v23 = vmul.f32 %v1925_v57, %v1861_v50  ;;  %v1911_v57 = vadd.f32 0.5, %v1903_v48 }
 0x35a   : > { %v7919_v60 = vadd.f32 %v1932_v17, %v1916_v41 }
 0x35b   : > { %v1919_v11 = vmul.f32 %v1911_v57, %v7643_v12 }
 0x35c   : > { %v1948_v5 = vmul.f32 %v7919_v60, %v7312_v32 }
 0x35d   : > { %v7888_v2 = vpop.f32.mrf.mxu0 }
 0x35e   : > { %v7891_v30 = vpop.f32.mrf.mxu1  ;;  %v1926_v25 = vmax.f32 %v7888_v2, 0.0 }
 0x35f   : > { %v1927_v2 = vmax.f32 %v7891_v30, 0.0  ;;  %v1993_v30 = vmax.f32 %v7897_v62, 0.0 }
 0x360   : > { %v1934_v49 = vmul.f32 %v1926_v25, %v1862_v18 }
 0x362   : > { %v7929_v20 = vadd.f32 %v1934_v49, %v1918_v16 }
 0x364   : > { %v1950_v36 = vmul.f32 %v7929_v20, %v7328_v3 }
 0x365   : > { %v1749_v27 = vpop.f32.mrf.mxu0 }
 0x366   : > { %v1952_v0 = vadd.f32 %v1944_v37, %v1749_v27  ;;  %v1798_v28 = vpop.f32.mrf.mxu1  ;;  %v1855_v37 = vmul.f32 0.5, %v6684_v43 }
 0x367   : > { %v1953_v15 = vadd.f32 %v1945_v35, %v1798_v28 }
 0x368   : > { %v1960_v44 = vmul.f32 0.5, %v1952_v0 }
 0x369   : > { %v1961_v47 = vmul.f32 0.5, %v1953_v15  ;;  %v7922_v15 = vadd.f32 %v1933_v23, %v1917_v10 }
 0x36a   : > { %6687 = vtanh.f32 %v1960_v44  ;;  %v1863_v44 = vadd.f32 0.5, %v1855_v37 }
 0x36b   : > { %6689 = vtanh.f32 %v1961_v47  ;;  %v1949_v17 = vmul.f32 %v7922_v15, %v7314_v33 }
 0x36c   : > { %v1935_v50 = vmul.f32 %v1927_v2, %v1863_v44 }
 0x36d   : > { %v1751_v40 = vpop.f32.mrf.mxu0 }
 0x36e   : > { %v1954_v27 = vadd.f32 %v1946_v52, %v1751_v40  ;;  %v1800_v35 = vpop.f32.mrf.mxu1  ;;  %v7934_v37 = vadd.f32 %v1935_v50, %v1919_v11 }
 0x36f   : > { %v1955_v0 = vadd.f32 %v1947_v58, %v1800_v35 }
 0x370   : > { %v6688_v28 = vpop.eup %6687  ;;  %v1962_v29 = vmul.f32 0.5, %v1954_v27  ;;  %v1994_v27 = vmax.f32 %v7906_v59, 0.0 }
 0x371   : > { %v6690_v21 = vpop.eup %6689  ;;  %v1976_v39 = vmul.f32 0.5, %v6688_v28  ;;  %v1963_v22 = vmul.f32 0.5, %v1955_v0 }
 0x372   : > { %v1977_v47 = vmul.f32 0.5, %v6690_v21  ;;  %6691 = vtanh.f32 %v1962_v29 }
 0x373   : > { %v1984_v43 = vadd.f32 0.5, %v1976_v39  ;;  %6693 = vtanh.f32 %v1963_v22 }
 0x374   : > { %v1985_v26 = vadd.f32 0.5, %v1977_v47 }
 0x375   : > { %v2000_v42 = vmul.f32 %v1992_v34, %v1984_v43  ;;  %v1754_v7 = vpop.f32.mrf.mxu0 }
 0x376   : > { %v2001_v52 = vmul.f32 %v1993_v30, %v1985_v26  ;;  %v1956_v23 = vadd.f32 %v1948_v5, %v1754_v7  ;;  %v1803_v25 = vpop.f32.mrf.mxu1  ;;  %v1951_v26 = vmul.f32 %v7934_v37, %v7331_v9 }
 0x377   : > { %v1957_v40 = vadd.f32 %v1949_v17, %v1803_v25  ;;  %v1995_v25 = vmax.f32 %v7909_v45, 0.0 }
 0x378   : > { %v6692_v58 = vpop.eup %6691  ;;  %v2016_v41 = vpack.c.bf16 %v2001_v52, %v2000_v42  ;;  %v2032_v48 = vrot.slane %v2001_v52, 7  ;;  %v1964_v18 = vmul.f32 0.5, %v1956_v23 }
 0x379   : > { %v1978_v35 = vmul.f32 0.5, %v6692_v58  ;;  %v1965_v10 = vmul.f32 0.5, %v1957_v40  ;;  %v6694_v29 = vpop.eup %6693 }
 0x37a   : > { %2020 = vst [vmem:[#allocation2 + $0x10] sm:$0xff] %v2016_v41  ;;  %v2036_v12 = vsel %vm751_vm3, %v2000_v42, %v2032_v48  ;;  %v2037_v0 = vsel %vm753_vm4, %v2000_v42, %v2032_v48  ;;  %v2039_v28 = vsel %vm756_vm5, %v2000_v42, %v2032_v48  ;;  %v2041_v2 = vsel %vm759_vm6, %v2000_v42, %v2032_v48 }
 0x37b   : > { %v2038_v21 = vrot.slane %v2037_v0, 1  ;;  %v2040_v49 = vrot.slane %v2039_v28, 2  ;;  %v2042_v39 = vrot.slane %v2041_v2, 3  ;;  %v2043_v22 = vsel %vm762_vm7, %v2000_v42, %v2032_v48  ;;  %5811 = vst.msk [vmem:[%s7353_s19 + $0x2] ss:$8 sm:$0x3] %vm7317_vm2, %v2036_v12 }
 0x37c   : > { %v2044_v44 = vrot.slane %v2043_v22, 4  ;;  %v2045_v57 = vsel %vm765_vm8, %v2000_v42, %v2032_v48  ;;  %v2047_v47 = vsel %vm768_vm9, %v2000_v42, %v2032_v48  ;;  %v2049_v16 = vsel %vm771_vm10, %v2032_v48, %v2000_v42 }
 0x37d   : > { %v2046_v43 = vrot.slane %v2045_v57, 5  ;;  %v2048_v34 = vrot.slane %v2047_v47, 6  ;;  %5812 = vst.msk [vmem:[%s7353_s19 + $0x12] ss:$8 sm:$0x3] %vm7317_vm2, %v2038_v21  ;;  %6695 = vtanh.f32 %v1964_v18  ;;  %v1756_v50 = vpop.f32.mrf.mxu0  ;;  %v1986_v30 = vadd.f32 0.5, %v1978_v35 }
 0x37e   : > { %5813 = vst.msk [vmem:[%s7353_s19 + $0x22] ss:$8 sm:$0x3] %vm7317_vm2, %v2040_v49  ;;  %v1979_v5 = vmul.f32 0.5, %v6694_v29  ;;  %6697 = vtanh.f32 %v1965_v10  ;;  %v1958_v42 = vadd.f32 %v1950_v36, %v1756_v50  ;;  %v1805_v7 = vpop.f32.mrf.mxu1  ;;  %v2050_v17 = vrot.slane %v2049_v16, 7 }
 0x37f   : > { %5814 = vst.msk [vmem:[%s7353_s19 + $0x32] ss:$8 sm:$0x3] %vm7317_vm2, %v2042_v39  ;;  %v1959_v11 = vadd.f32 %v1951_v26, %v1805_v7  ;;  %v2002_v52 = vmul.f32 %v1994_v27, %v1986_v30  ;;  %v1996_v36 = vmax.f32 %v7919_v60, 0.0  ;;  %v1997_v30 = vmax.f32 %v7922_v15, 0.0 }
 0x380   : > { %5815 = vst.msk [vmem:[%s7353_s19 + $0x42] ss:$8 sm:$0x3] %vm7317_vm2, %v2044_v44  ;;  %v1987_v23 = vadd.f32 0.5, %v1979_v5  ;;  %v1966_v40 = vmul.f32 0.5, %v1958_v42 }
 0x381   : > { %5816 = vst.msk [vmem:[%s7353_s19 + $0x52] ss:$8 sm:$0x3] %vm7317_vm2, %v2046_v43  ;;  %v1967_v58 = vmul.f32 0.5, %v1959_v11 }
 0x382   : > { %5817 = vst.msk [vmem:[%s7353_s19 + $0x62] ss:$8 sm:$0x3] %vm7317_vm2, %v2048_v34  ;;  %v2003_v41 = vmul.f32 %v1995_v25, %v1987_v23  ;;  %6699 = vtanh.f32 %v1966_v40  ;;  %v1998_v40 = vmax.f32 %v7929_v20, 0.0 }
 0x383   : > { %v6696_v48 = vpop.eup %6695  ;;  %5818 = vst.msk [vmem:[%s7353_s19 + $0x72] ss:$8 sm:$0x3] %vm7317_vm2, %v2050_v17  ;;  %6701 = vtanh.f32 %v1967_v58 }
 0x384   : > { %v6698_v27 = vpop.eup %6697  ;;  %v2017_v35 = vpack.c.bf16 %v2003_v41, %v2002_v52  ;;  %v2033_v18 = vrot.slane %v2003_v41, 7  ;;  %v1980_v10 = vmul.f32 0.5, %v6696_v48  ;;  %v1999_v41 = vmax.f32 %v7934_v37, 0.0 }
 0x385   : > { %v1981_v12 = vmul.f32 0.5, %v6698_v27 }
 0x386   : > { %2021 = vst [vmem:[#allocation2 + $0x18] sm:$0xff] %v2017_v35  ;;  %v2051_v0 = vsel %vm751_vm3, %v2002_v52, %v2033_v18  ;;  %v2052_v28 = vsel %vm753_vm4, %v2002_v52, %v2033_v18  ;;  %v2054_v2 = vsel %vm756_vm5, %v2002_v52, %v2033_v18  ;;  %v2056_v29 = vsel %vm759_vm6, %v2002_v52, %v2033_v18 }
 0x387   : > { %v2053_v21 = vrot.slane %v2052_v28, 1  ;;  %v2055_v49 = vrot.slane %v2054_v2, 2  ;;  %v2057_v39 = vrot.slane %v2056_v29, 3  ;;  %v2058_v22 = vsel %vm762_vm7, %v2002_v52, %v2033_v18  ;;  %5819 = vst.msk [vmem:[%s7353_s19 + $0x82] ss:$8 sm:$0x3] %vm7317_vm2, %v2051_v0 }
 0x388   : > { %v6700_v44 = vpop.eup %6699  ;;  %v2059_v57 = vrot.slane %v2058_v22, 4  ;;  %v2060_v47 = vsel %vm765_vm8, %v2002_v52, %v2033_v18  ;;  %v2062_v16 = vsel %vm768_vm9, %v2002_v52, %v2033_v18  ;;  %v2064_v43 = vsel %vm771_vm10, %v2033_v18, %v2002_v52  ;;  %v8014_v28 = vld [vmem:[#allocation2] sm:$0xf]  ;;  %v8016_v2 = vld [vmem:[#allocation2 + $0x4] sm:$0xf] }
 0x389   : > { %v6702_v34 = vpop.eup %6701  ;;  %v2061_v50 = vrot.slane %v2060_v47, 5  ;;  %v2063_v26 = vrot.slane %v2062_v16, 6  ;;  %5820 = vst.msk [vmem:[%s7353_s19 + $0x92] ss:$8 sm:$0x3] %vm7317_vm2, %v2053_v21  ;;  %v1988_v5 = vadd.f32 0.5, %v1980_v10 }
 0x38a   : > { %5821 = vst.msk [vmem:[%s7353_s19 + $0xa2] ss:$8 sm:$0x3] %vm7317_vm2, %v2055_v49  ;;  %v1989_v42 = vadd.f32 0.5, %v1981_v12  ;;  %v1982_v7 = vmul.f32 0.5, %v6700_v44  ;;  %v2065_v17 = vrot.slane %v2064_v43, 7 }
 0x38b   : > { %5822 = vst.msk [vmem:[%s7353_s19 + $0xb2] ss:$8 sm:$0x3] %vm7317_vm2, %v2057_v39  ;;  %v1983_v11 = vmul.f32 0.5, %v6702_v34  ;;  %v2004_v52 = vmul.f32 %v1996_v36, %v1988_v5  ;;  %v9583_v16 = vld [vmem:[#allocation18_spill] sm:$0xff] }
 0x38c   : > { %5823 = vst.msk [vmem:[%s7353_s19 + $0xc2] ss:$8 sm:$0x3] %vm7317_vm2, %v2059_v57  ;;  %v2005_v23 = vmul.f32 %v1997_v30, %v1989_v42  ;;  %v1990_v25 = vadd.f32 0.5, %v1982_v7 }
 0x38d   : > { %5824 = vst.msk [vmem:[%s7353_s19 + $0xd2] ss:$8 sm:$0x3] %vm7317_vm2, %v2061_v50  ;;  %v1991_v58 = vadd.f32 0.5, %v1983_v11 }
 0x38e   : > { %5825 = vst.msk [vmem:[%s7353_s19 + $0xe2] ss:$8 sm:$0x3] %vm7317_vm2, %v2063_v26  ;;  %v2018_v48 = vpack.c.bf16 %v2005_v23, %v2004_v52  ;;  %v2034_v27 = vrot.slane %v2005_v23, 7  ;;  %v2006_v35 = vmul.f32 %v1998_v40, %v1990_v25 }
 0x38f   : > { %5826 = vst.msk [vmem:[%s7353_s19 + $0xf2] ss:$8 sm:$0x3] %vm7317_vm2, %v2065_v17  ;;  %v2007_v18 = vmul.f32 %v1999_v41, %v1991_v58 }
 0x390   : > { %2022 = vst [vmem:[#allocation2 + $0x20] sm:$0xff] %v2018_v48  ;;  %v2066_v10 = vsel %vm751_vm3, %v2004_v52, %v2034_v27  ;;  %v2067_v36 = vsel %vm753_vm4, %v2004_v52, %v2034_v27  ;;  %v2069_v12 = vsel %vm756_vm5, %v2004_v52, %v2034_v27  ;;  %v2071_v0 = vsel %vm759_vm6, %v2004_v52, %v2034_v27 }
 0x391   : > { %v2068_v29 = vrot.slane %v2067_v36, 1  ;;  %v2070_v21 = vrot.slane %v2069_v12, 2  ;;  %v2072_v49 = vrot.slane %v2071_v0, 3  ;;  %v2073_v39 = vsel %vm762_vm7, %v2004_v52, %v2034_v27  ;;  %5827 = vst.msk [vmem:[%s7353_s19 + $0x102] ss:$8 sm:$0x3] %vm7317_vm2, %v2066_v10 }
 0x392   : > { %v2074_v22 = vrot.slane %v2073_v39, 4  ;;  %v2075_v44 = vsel %vm765_vm8, %v2004_v52, %v2034_v27  ;;  %v2077_v57 = vsel %vm768_vm9, %v2004_v52, %v2034_v27  ;;  %v2079_v47 = vsel %vm771_vm10, %v2034_v27, %v2004_v52  ;;  %2867 = vst [vmem:[#allocation2] sm:$0x33] %v9583_v16  ;;  %v5888_v39 = vld [vmem:[#allocation2 + $0x18] sm:$0xf0] }
 0x393   : > { %v2076_v43 = vrot.slane %v2075_v44, 5  ;;  %5828 = vst.msk [vmem:[%s7353_s19 + $0x112] ss:$8 sm:$0x3] %vm7317_vm2, %v2068_v29  ;;  %v2078_v34 = vrot.slane %v2077_v57, 6  ;;  %v2035_v50 = vrot.slane %v2007_v18, 7  ;;  %v2019_v30 = vpack.c.bf16 %v2007_v18, %v2006_v35 }
 0x394   : > { %5829 = vst.msk [vmem:[%s7353_s19 + $0x122] ss:$8 sm:$0x3] %vm7317_vm2, %v2070_v21  ;;  %v2080_v26 = vrot.slane %v2079_v47, 7  ;;  %v6425_v44 = vld [vmem:[#allocation2 + $0x4] sm:$0xf0] }
 0x395   : > { %5830 = vst.msk [vmem:[%s7353_s19 + $0x132] ss:$8 sm:$0x3] %vm7317_vm2, %v2072_v49  ;;  %v2082_v5 = vsel %vm753_vm4, %v2006_v35, %v2035_v50  ;;  %v2084_v42 = vsel %vm756_vm5, %v2006_v35, %v2035_v50  ;;  %v2086_v7 = vsel %vm759_vm6, %v2006_v35, %v2035_v50  ;;  %v2081_v17 = vsel %vm751_vm3, %v2006_v35, %v2035_v50  ;;  %v6427_v49 = vld [vmem:[#allocation2 + $0x14] sm:$0xf0] }
 0x396   : > { %5831 = vst.msk [vmem:[%s7353_s19 + $0x142] ss:$8 sm:$0x3] %vm7317_vm2, %v2074_v22  ;;  %v2083_v11 = vrot.slane %v2082_v5, 1  ;;  %v2088_v52 = vsel %vm762_vm7, %v2006_v35, %v2035_v50  ;;  %v2085_v23 = vrot.slane %v2084_v42, 2  ;;  %v2090_v25 = vsel %vm765_vm8, %v2006_v35, %v2035_v50  ;;  %v6420_v5 = vld [vmem:[%s9543_s1 + $0x20] sm:$0xff] }
 0x397   : > { %5832 = vst.msk [vmem:[%s7353_s19 + $0x152] ss:$8 sm:$0x3] %vm7317_vm2, %v2076_v43  ;;  %v2087_v40 = vrot.slane %v2086_v7, 3  ;;  %v2092_v58 = vsel %vm768_vm9, %v2006_v35, %v2035_v50  ;;  %v2089_v41 = vrot.slane %v2088_v52, 4  ;;  %v2094_v48 = vsel %vm771_vm10, %v2035_v50, %v2006_v35  ;;  %v6421_v42 = vld [vmem:[%s9543_s1 + $0x28] sm:$0xff] }
 0x398   : > { %5833 = vst.msk [vmem:[%s7353_s19 + $0x162] ss:$8 sm:$0x3] %vm7317_vm2, %v2078_v34  ;;  %v2091_v27 = vrot.slane %v2090_v25, 5  ;;  %v2093_v18 = vrot.slane %v2092_v58, 6  ;;  %v2095_v10 = vrot.slane %v2094_v48, 7  ;;  %v5879_v34 = vor.u32 %v6425_v44, %v8014_v28 }
 0x399   : > { %5834 = vst.msk [vmem:[%s7353_s19 + $0x172] ss:$8 sm:$0x3] %vm7317_vm2, %v2080_v26  ;;  %v5894_v36 = vld [vmem:[#allocation2 + $0x20] sm:$0xf]  ;;  %v6416_v26 = vld [vmem:[%s9543_s1] sm:$0xff] }
 0x39a   : > { %2023 = vst [vmem:[#allocation2 + $0x28] sm:$0xff] %v2019_v30  ;;  %v6428_v35 = vld [vmem:[#allocation2 + $0x24] sm:$0xf]  ;;  %v5886_v22 = vld [vmem:[#allocation2 + $0x10] sm:$0xf]  ;;  %v6418_v28 = vld [vmem:[%s9543_s1 + $0x10] sm:$0xff] }
 0x39b   : > { %5835 = vst.msk [vmem:[%s7353_s19 + $0x182] ss:$8 sm:$0x3] %vm7317_vm2, %v2081_v17  ;;  %v5887_v57 = vor.u32 %v6427_v49, %v5886_v22  ;;  %v6426_v47 = vld [vmem:[#allocation2 + $0x14] sm:$0xf]  ;;  %v6417_v30 = vld [vmem:[%s9543_s1 + $0x8] sm:$0xff]  ;;  %v2454_v49 = vmul.f32 %v7897_v62, %v7206_v54  ;;  %v2501_v22 = vmul.f32 %v7894_v63, %v7208_v55 }
 0x39c   : > { %5836 = vst.msk [vmem:[%s7353_s19 + $0x192] ss:$8 sm:$0x3] %vm7317_vm2, %v2083_v11  ;;  %v5880_v16 = vld [vmem:[#allocation2 + $0x8] sm:$0xf0]  ;;  %v5891_v43 = vor.u32 %v6426_v47, %v5888_v39  ;;  %v6423_v17 = vld [vmem:[%s9543_s1 + $0x38] sm:$0xff] }
 0x39d   : > { %5837 = vst.msk [vmem:[%s7353_s19 + $0x1a2] ss:$8 sm:$0x3] %vm7317_vm2, %v2085_v23  ;;  %v5883_v50 = vor.u32 %v8016_v2, %v5880_v16  ;;  %v6419_v2 = vld [vmem:[%s9543_s1 + $0x18] sm:$0xff]  ;;  %v6422_v7 = vld [vmem:[%s9543_s1 + $0x30] sm:$0xff] }
 0x39e   : > { %5838 = vst.msk [vmem:[%s7353_s19 + $0x1b2] ss:$8 sm:$0x3] %vm7317_vm2, %v2087_v40 }
 0x39f   : > { %5839 = vst.msk [vmem:[%s7353_s19 + $0x1c2] ss:$8 sm:$0x3] %vm7317_vm2, %v2089_v41 }
 0x3a0   : > { %5840 = vst.msk [vmem:[%s7353_s19 + $0x1d2] ss:$8 sm:$0x3] %vm7317_vm2, %v2091_v27 }
 0x3a1   : > { %5841 = vst.msk [vmem:[%s7353_s19 + $0x1e2] ss:$8 sm:$0x3] %vm7317_vm2, %v2093_v18  ;;  %v6429_v12 = vld [vmem:[#allocation2 + $0x24] sm:$0xf0] }
 0x3a2   : > { %5842 = vst.msk [vmem:[%s7353_s19 + $0x1f2] ss:$8 sm:$0x3] %vm7317_vm2, %v2095_v10  ;;  %v5895_v0 = vor.u32 %v6429_v12, %v5894_v36  ;;  %v5896_v29 = vld [vmem:[#allocation2 + $0x28] sm:$0xf0] }
 0x3a3   : > { %v5899_v21 = vor.u32 %v6428_v35, %v5896_v29 }
 0x3a4   : > { %2352 = vmatpush.bf16.msrb.mxu2 %v5895_v0 }
 0x3a5   : > { %2401 = vmatpush.bf16.msrb.mxu3 %v5899_v21  ;;  %v2453_v21 = vmul.f32 %v7894_v63, %v7204_v53 }
 0x3a8   : > { %2353 = vmatpush.bf16.msrb.mxu2 %v5887_v57  ;;  %v2502_v57 = vmul.f32 %v7897_v62, %v7210_v56 }
 0x3a9   : > { %2402 = vmatpush.bf16.msrb.mxu3 %v5891_v43 }
 0x3ac   : > { %2354 = vmatpush.bf16.msrb.mxu2 %v5879_v34 }
 0x3ad   : > { %2403 = vmatpush.bf16.msrb.mxu3 %v5883_v50 }
 0x3af   : > { %5900 = vmatmul.msk.bf16.vlgmr.msrb.gmra.mxu2 %vm400_vm1, %v6416_v26 }
 0x3b0   : > { %5908 = vmatmul.msk.bf16.vlgmr.msrb.gmra.mxu3 %vm400_vm1, %v6416_v26 }
 0x3bf   : > { %5901 = vmatmul.msk.bf16.gmra.mxu2 %vm400_vm1, %v6417_v30 }
 0x3c0   : > { %5909 = vmatmul.msk.bf16.gmra.mxu3 %vm400_vm1, %v6417_v30  ;;  %v2455_v30 = vmul.f32 %v7906_v59, %v7219_v1 }
 0x3cf   : > { %5902 = vmatmul.msk.bf16.gmra.mxu2 %vm400_vm1, %v6418_v28 }
 0x3d0   : > { %5910 = vmatmul.msk.bf16.gmra.mxu3 %vm400_vm1, %v6418_v28 }
 0x3df   : > { %5903 = vmatmul.msk.bf16.gmra.mxu2 %vm400_vm1, %v6419_v2 }
 0x3e0   : > { %5911 = vmatmul.msk.bf16.gmra.mxu3 %vm400_vm1, %v6419_v2  ;;  %v2456_v2 = vmul.f32 %v7909_v45, %v7222_v4 }
 0x3ef   : > { %5904 = vmatmul.msk.bf16.gmra.mxu2 %vm400_vm1, %v6420_v5 }
 0x3f0   : > { %5912 = vmatmul.msk.bf16.gmra.mxu3 %vm400_vm1, %v6420_v5 }
 0x3ff   : > { %5905 = vmatmul.msk.bf16.gmra.mxu2 %vm400_vm1, %v6421_v42 }
 0x400   : > { %5913 = vmatmul.msk.bf16.gmra.mxu3 %vm400_vm1, %v6421_v42 }
 0x40f   : > { %5906 = vmatmul.msk.bf16.gmra.mxu2 %vm400_vm1, %v6422_v7 }
 0x410   : > { %5914 = vmatmul.msk.bf16.gmra.mxu3 %vm400_vm1, %v6422_v7  ;;  %v2503_v7 = vmul.f32 %v7906_v59, %v7224_v6 }
 0x41f   : > { %5907 = vmatmul.msk.bf16.gmra.mxu2 %vm400_vm1, %v6423_v17 }
 0x420   : > { %5915 = vmatmul.msk.bf16.gmra.mxu3 %vm400_vm1, %v6423_v17 }
 0x432   : > { %v2356_v11 = vpop.f32.mrf.mxu2 }
 0x433   : > { %v2405_v52 = vpop.f32.mrf.mxu3  ;;  %v2461_v39 = vadd.f32 %v2453_v21, %v2356_v11  ;;  %v2504_v11 = vmul.f32 %v7909_v45, %v7226_v8 }
 0x434   : > { %v2462_v44 = vadd.f32 %v2454_v49, %v2405_v52 }
 0x435   : > { %v2469_v50 = vmul.f32 0.5, %v2461_v39 }
 0x436   : > { %v2470_v26 = vmul.f32 0.5, %v2462_v44 }
 0x437   : > { %6703 = vtanh.f32 %v2469_v50 }
 0x438   : > { %6705 = vtanh.f32 %v2470_v26 }
 0x43a   : > { %v2358_v23 = vpop.f32.mrf.mxu2 }
 0x43b   : > { %v2407_v25 = vpop.f32.mrf.mxu3  ;;  %v2463_v42 = vadd.f32 %v2455_v30, %v2358_v23  ;;  %v2457_v23 = vmul.f32 %v7919_v60, %v9578_v24  ;;  %v9584_v30 = vld [vmem:[#allocation14_spill] sm:$0xff] }
 0x43c   : > { %v2464_v17 = vadd.f32 %v2456_v2, %v2407_v25  ;;  %v2458_v25 = vmul.f32 %v7922_v15, %v9579_v19 }
 0x43d   : > { %v2471_v49 = vmul.f32 0.5, %v2463_v42 }
 0x43e   : > { %v2472_v39 = vmul.f32 0.5, %v2464_v17 }
 0x442   : > { %v2361_v40 = vpop.f32.mrf.mxu2 }
 0x443   : > { %v2410_v58 = vpop.f32.mrf.mxu3 }
 0x444   : > { %v2466_v26 = vadd.f32 %v2458_v25, %v2410_v58 }
 0x446   : > { %v2474_v58 = vmul.f32 0.5, %v2466_v26 }
 0x44a   : > { %v8121_v41 = vpop.f32.mrf.mxu2 }
 0x44b   : > { %v8123_v48 = vpop.f32.mrf.mxu3 }
 0x452   : > { %v2366_v27 = vpop.f32.mrf.mxu2 }
 0x453   : > { %v2415_v18 = vpop.f32.mrf.mxu3  ;;  %v2509_v47 = vadd.f32 %v2501_v22, %v2366_v27  ;;  %v6704_v22 = vpop.eup %6703 }
 0x454   : > { %v2510_v43 = vadd.f32 %v2502_v57, %v2415_v18  ;;  %v6706_v57 = vpop.eup %6705  ;;  %v2485_v42 = vmul.f32 0.5, %v6704_v22 }
 0x455   : > { %v2517_v28 = vmul.f32 0.5, %v2509_v47 }
 0x456   : > { %v2518_v5 = vmul.f32 0.5, %v2510_v43 }
 0x457   : > { %6707 = vtanh.f32 %v2517_v28  ;;  %v2506_v28 = vmul.f32 %v7922_v15, %v9584_v30 }
 0x458   : > { %6709 = vtanh.f32 %v2518_v5 }
 0x459   : > { %6711 = vtanh.f32 %v2471_v49 }
 0x45a   : > { %v2368_v10 = vpop.f32.mrf.mxu2  ;;  %6713 = vtanh.f32 %v2472_v39 }
 0x45b   : > { %v2417_v36 = vpop.f32.mrf.mxu3  ;;  %v2511_v52 = vadd.f32 %v2503_v7, %v2368_v10  ;;  %v2465_v10 = vadd.f32 %v2457_v23, %v2361_v40  ;;  %v2486_v40 = vmul.f32 0.5, %v6706_v57  ;;  %v9586_v23 = vld [vmem:[#allocation15_spill] sm:$0xff] }
 0x45c   : > { %v2512_v18 = vadd.f32 %v2504_v11, %v2417_v36  ;;  %v2505_v36 = vmul.f32 %v7919_v60, %v7242_v31  ;;  %v2507_v25 = vmul.f32 %v7929_v20, %v9586_v23 }
 0x45d   : > { %v2519_v44 = vmul.f32 0.5, %v2511_v52  ;;  %v6708_v43 = vpop.eup %6707  ;;  %v2473_v52 = vmul.f32 0.5, %v2465_v10  ;;  %v2494_v30 = vadd.f32 0.5, %v2486_v40 }
 0x45e   : > { %v2520_v47 = vmul.f32 0.5, %v2512_v18  ;;  %v6710_v50 = vpop.eup %6709  ;;  %v2533_v7 = vmul.f32 0.5, %v6708_v43  ;;  %v9585_v18 = vld [vmem:[#allocation12_spill] sm:$0xff] }
 0x45f   : > { %6715 = vtanh.f32 %v2519_v44  ;;  %v2459_v49 = vmul.f32 %v7929_v20, %v9585_v18  ;;  %v2534_v39 = vmul.f32 0.5, %v6710_v50  ;;  %v6712_v44 = vpop.eup %6711  ;;  %v9587_v43 = vld [vmem:[#allocation16_spill] sm:$0xff] }
 0x460   : > { %6717 = vtanh.f32 %v2520_v47  ;;  %v6714_v10 = vpop.eup %6713 }
 0x461   : > { %v2467_v22 = vadd.f32 %v2459_v49, %v8121_v41  ;;  %6719 = vtanh.f32 %v2473_v52  ;;  %v2542_v23 = vadd.f32 0.5, %v2534_v39  ;;  %v2487_v49 = vmul.f32 0.5, %v6712_v44 }
 0x462   : > { %v2371_v35 = vpop.f32.mrf.mxu2  ;;  %6721 = vtanh.f32 %v2474_v58 }
 0x463   : > { %v2420_v12 = vpop.f32.mrf.mxu3  ;;  %v2513_v2 = vadd.f32 %v2505_v36, %v2371_v35  ;;  %v2493_v36 = vadd.f32 0.5, %v2485_v42  ;;  %v2550_v58 = vmul.f32 %v2542_v23, %v7897_v62 }
 0x464   : > { %v2514_v17 = vadd.f32 %v2506_v28, %v2420_v12  ;;  %v2460_v12 = vmul.f32 %v7934_v37, %v9587_v43  ;;  %v2541_v28 = vadd.f32 0.5, %v2533_v7 }
 0x465   : > { %v2521_v47 = vmul.f32 0.5, %v2513_v2  ;;  %v6716_v26 = vpop.eup %6715 }
 0x466   : > { %v2522_v18 = vmul.f32 0.5, %v2514_v17  ;;  %v6718_v41 = vpop.eup %6717  ;;  %v2468_v2 = vadd.f32 %v2460_v12, %v8123_v48  ;;  %v2535_v40 = vmul.f32 0.5, %v6716_v26 }
 0x467   : > { %6723 = vtanh.f32 %v2521_v47  ;;  %v2536_v44 = vmul.f32 0.5, %v6718_v41  ;;  %v2495_v47 = vadd.f32 0.5, %v2487_v49 }
 0x468   : > { %6725 = vtanh.f32 %v2522_v18  ;;  %v2476_v48 = vmul.f32 0.5, %v2468_v2 }
 0x469   : > { %v2544_v62 = vadd.f32 0.5, %v2536_v44 }
 0x46a   : > { %v8125_v0 = vpop.f32.mrf.mxu2 }
 0x46b   : > { %v8127_v29 = vpop.f32.mrf.mxu3  ;;  %v2515_v50 = vadd.f32 %v2507_v25, %v8125_v0  ;;  %v2549_v0 = vmul.f32 %v2541_v28, %v7894_v63  ;;  %v2488_v25 = vmul.f32 0.5, %v6714_v10 }
 0x46d   : > { %v2523_v52 = vmul.f32 0.5, %v2515_v50 }
 0x472   : > { %v8137_v16 = vpop.f32.mrf.mxu2 }
 0x473   : > { %v8139_v34 = vpop.f32.mrf.mxu3  ;;  %v2557_v35 = vmax.f32 %v8137_v16, 0.0  ;;  %v2508_v16 = vmul.f32 %v7934_v37, %v7260_v61 }
 0x474   : > { %v2558_v57 = vmax.f32 %v8139_v34, 0.0  ;;  %v2475_v34 = vmul.f32 0.5, %v2467_v22 }
 0x475   : > { %v2565_v43 = vmul.f32 %v2557_v35, %v2493_v36  ;;  %v2516_v42 = vadd.f32 %v2508_v16, %v8127_v29  ;;  %v6720_v29 = vpop.eup %6719  ;;  %v2496_v36 = vadd.f32 0.5, %v2488_v25 }
 0x476   : > { %v2566_v7 = vmul.f32 %v2558_v57, %v2494_v30  ;;  %6727 = vtanh.f32 %v2475_v34  ;;  %v6722_v18 = vpop.eup %6721  ;;  %v2543_v57 = vadd.f32 0.5, %v2535_v40  ;;  %v2489_v28 = vmul.f32 0.5, %v6720_v29 }
 0x477   : > { %v8185_v35 = vadd.f32 %v2565_v43, %v2549_v0  ;;  %v2524_v30 = vmul.f32 0.5, %v2516_v42  ;;  %6729 = vtanh.f32 %v2523_v52  ;;  %v6724_v10 = vpop.eup %6723  ;;  %v2490_v16 = vmul.f32 0.5, %v6722_v18 }
 0x478   : > { %v8188_v12 = vadd.f32 %v2566_v7, %v2550_v58  ;;  %v6726_v23 = vpop.eup %6725  ;;  %6731 = vtanh.f32 %v2476_v48  ;;  %v2551_v41 = vmul.f32 %v2543_v57, %v7906_v59  ;;  %v2537_v49 = vmul.f32 0.5, %v6724_v10 }
 0x479   : > { %6733 = vtanh.f32 %v2524_v30  ;;  %v2552_v7 = vmul.f32 %v2544_v62, %v7909_v45  ;;  %v2538_v0 = vmul.f32 0.5, %v6726_v23  ;;  %v2497_v30 = vadd.f32 0.5, %v2489_v28 }
 0x47a   : > { %v8149_v27 = vpop.f32.mrf.mxu2  ;;  %v2545_v18 = vadd.f32 0.5, %v2537_v49 }
 0x47b   : > { %v8151_v21 = vpop.f32.mrf.mxu3  ;;  %v2559_v22 = vmax.f32 %v8149_v27, 0.0  ;;  %v2581_v27 = vmul.f32 %v8185_v35, %v7288_v13  ;;  %v2546_v57 = vadd.f32 0.5, %v2538_v0 }
 0x47c   : > { %v2560_v63 = vmax.f32 %v8151_v21, 0.0  ;;  %v2582_v21 = vmul.f32 %v8188_v12, %v7290_v14  ;;  %v6728_v42 = vpop.eup %6727  ;;  %v2553_v28 = vmul.f32 %v2545_v18, %v7919_v60 }
 0x47d   : > { %v2567_v43 = vmul.f32 %v2559_v22, %v2495_v47  ;;  %v6730_v52 = vpop.eup %6729  ;;  %v2491_v45 = vmul.f32 0.5, %v6728_v42 }
 0x47e   : > { %v2568_v50 = vmul.f32 %v2560_v63, %v2496_v36  ;;  %v6732_v59 = vpop.eup %6731  ;;  %v2498_v63 = vadd.f32 0.5, %v2490_v16  ;;  %v2539_v10 = vmul.f32 0.5, %v6730_v52 }
 0x47f   : > { %v8197_v25 = vadd.f32 %v2567_v43, %v2551_v41  ;;  %v6734_v47 = vpop.eup %6733  ;;  %v2499_v16 = vadd.f32 0.5, %v2491_v45  ;;  %v2554_v41 = vmul.f32 %v2546_v57, %v7922_v15 }
 0x480   : > { %v8200_v48 = vadd.f32 %v2568_v50, %v2552_v7  ;;  %v2540_v50 = vmul.f32 0.5, %v6734_v47  ;;  %v2547_v49 = vadd.f32 0.5, %v2539_v10 }
 0x482   : > { %v8161_v5 = vpop.f32.mrf.mxu2  ;;  %v2555_v15 = vmul.f32 %v2547_v49, %v7929_v20 }
 0x483   : > { %v8163_v11 = vpop.f32.mrf.mxu3  ;;  %v2561_v58 = vmax.f32 %v8161_v5, 0.0  ;;  %v2583_v5 = vmul.f32 %v8197_v25, %v7296_v46 }
 0x484   : > { %v2562_v22 = vmax.f32 %v8163_v11, 0.0  ;;  %v2584_v11 = vmul.f32 %v8200_v48, %v7302_v51 }
 0x485   : > { %v2569_v36 = vmul.f32 %v2561_v58, %v2497_v30  ;;  %v2629_v30 = vmax.f32 %v8185_v35, 0.0 }
 0x486   : > { %v2570_v62 = vmul.f32 %v2562_v22, %v2498_v63  ;;  %v2548_v22 = vadd.f32 0.5, %v2540_v50 }
 0x487   : > { %v8210_v42 = vadd.f32 %v2569_v36, %v2553_v28 }
 0x488   : > { %v2556_v20 = vmul.f32 %v2548_v22, %v7934_v37 }
 0x489   : > { %v2585_v47 = vmul.f32 %v8210_v42, %v7312_v32 }
 0x48a   : > { %v8179_v17 = vpop.f32.mrf.mxu2 }
 0x48b   : > { %v8182_v39 = vpop.f32.mrf.mxu3  ;;  %v2563_v23 = vmax.f32 %v8179_v17, 0.0 }
 0x48c   : > { %v2564_v17 = vmax.f32 %v8182_v39, 0.0  ;;  %v2630_v39 = vmax.f32 %v8188_v12, 0.0 }
 0x48d   : > { %v2571_v52 = vmul.f32 %v2563_v23, %v2499_v16 }
 0x48f   : > { %v8220_v45 = vadd.f32 %v2571_v52, %v2555_v15 }
 0x491   : > { %v2587_v49 = vmul.f32 %v8220_v45, %v7328_v3 }
 0x492   : > { %v2386_v26 = vpop.f32.mrf.mxu2 }
 0x493   : > { %v2589_v2 = vadd.f32 %v2581_v27, %v2386_v26  ;;  %v2435_v34 = vpop.f32.mrf.mxu3  ;;  %v2492_v27 = vmul.f32 0.5, %v6732_v59 }
 0x494   : > { %v2590_v40 = vadd.f32 %v2582_v21, %v2435_v34 }
 0x495   : > { %v2597_v44 = vmul.f32 0.5, %v2589_v2 }
 0x496   : > { %v2598_v29 = vmul.f32 0.5, %v2590_v40  ;;  %v8213_v40 = vadd.f32 %v2570_v62, %v2554_v41 }
 0x497   : > { %6735 = vtanh.f32 %v2597_v44  ;;  %v2500_v44 = vadd.f32 0.5, %v2492_v27 }
 0x498   : > { %6737 = vtanh.f32 %v2598_v29  ;;  %v2586_v36 = vmul.f32 %v8213_v40, %v7314_v33 }
 0x499   : > { %v2572_v63 = vmul.f32 %v2564_v17, %v2500_v44 }
 0x49a   : > { %v2388_v43 = vpop.f32.mrf.mxu2 }
 0x49b   : > { %v2591_v26 = vadd.f32 %v2583_v5, %v2388_v43  ;;  %v2437_v21 = vpop.f32.mrf.mxu3  ;;  %v8225_v27 = vadd.f32 %v2572_v63, %v2556_v20 }
 0x49c   : > { %v2592_v2 = vadd.f32 %v2584_v11, %v2437_v21 }
 0x49d   : > { %v6736_v34 = vpop.eup %6735  ;;  %v2599_v7 = vmul.f32 0.5, %v2591_v26  ;;  %v2631_v26 = vmax.f32 %v8197_v25, 0.0 }
 0x49e   : > { %v6738_v0 = vpop.eup %6737  ;;  %v2613_v58 = vmul.f32 0.5, %v6736_v34  ;;  %v2600_v60 = vmul.f32 0.5, %v2592_v2 }
 0x49f   : > { %v2614_v29 = vmul.f32 0.5, %v6738_v0  ;;  %6739 = vtanh.f32 %v2599_v7 }
 0x4a0   : > { %v2621_v59 = vadd.f32 0.5, %v2613_v58  ;;  %6741 = vtanh.f32 %v2600_v60 }
 0x4a1   : > { %v2622_v18 = vadd.f32 0.5, %v2614_v29 }
 0x4a2   : > { %v2637_v57 = vmul.f32 %v2629_v30, %v2621_v59  ;;  %v2391_v10 = vpop.f32.mrf.mxu2 }
 0x4a3   : > { %v2638_v5 = vmul.f32 %v2630_v39, %v2622_v18  ;;  %v2593_v62 = vadd.f32 %v2585_v47, %v2391_v10  ;;  %v2440_v23 = vpop.f32.mrf.mxu3  ;;  %v2588_v18 = vmul.f32 %v8225_v27, %v7331_v9 }
 0x4a4   : > { %v2594_v43 = vadd.f32 %v2586_v36, %v2440_v23  ;;  %v2632_v23 = vmax.f32 %v8200_v48, 0.0 }
 0x4a5   : > { %v6740_v11 = vpop.eup %6739  ;;  %v2653_v28 = vpack.c.bf16 %v2638_v5, %v2637_v57  ;;  %v2669_v50 = vrot.slane %v2638_v5, 7  ;;  %v2601_v16 = vmul.f32 0.5, %v2593_v62 }
 0x4a6   : > { %v2615_v21 = vmul.f32 0.5, %v6740_v11  ;;  %v2602_v41 = vmul.f32 0.5, %v2594_v43  ;;  %v6742_v7 = vpop.eup %6741 }
 0x4a7   : > { %v2673_v37 = vsel %vm751_vm3, %v2637_v57, %v2669_v50  ;;  %v2674_v2 = vsel %vm753_vm4, %v2637_v57, %v2669_v50  ;;  %v2676_v34 = vsel %vm756_vm5, %v2637_v57, %v2669_v50  ;;  %v2678_v17 = vsel %vm759_vm6, %v2637_v57, %v2669_v50  ;;  %2657 = vst [vmem:[#allocation2 + $0x10] sm:$0xff] %v2653_v28 }
 0x4a8   : > { %v2675_v0 = vrot.slane %v2674_v2, 1  ;;  %v2677_v52 = vrot.slane %v2676_v34, 2  ;;  %v2679_v58 = vrot.slane %v2678_v17, 3  ;;  %v2680_v60 = vsel %vm762_vm7, %v2637_v57, %v2669_v50  ;;  %5916 = vst.msk [vmem:[%s7353_s19 + $0x3] ss:$8 sm:$0x3] %vm7317_vm2, %v2673_v37 }
 0x4a9   : > { %v2681_v44 = vrot.slane %v2680_v60, 4  ;;  %v2682_v22 = vsel %vm765_vm8, %v2637_v57, %v2669_v50  ;;  %v2684_v29 = vsel %vm768_vm9, %v2637_v57, %v2669_v50  ;;  %v2686_v15 = vsel %vm771_vm10, %v2669_v50, %v2637_v57 }
 0x4aa   : > { %v2683_v59 = vrot.slane %v2682_v22, 5  ;;  %v2685_v30 = vrot.slane %v2684_v29, 6  ;;  %5917 = vst.msk [vmem:[%s7353_s19 + $0x13] ss:$8 sm:$0x3] %vm7317_vm2, %v2675_v0  ;;  %6743 = vtanh.f32 %v2601_v16  ;;  %v2393_v63 = vpop.f32.mrf.mxu2  ;;  %v2623_v39 = vadd.f32 0.5, %v2615_v21 }
 0x4ab   : > { %5918 = vst.msk [vmem:[%s7353_s19 + $0x23] ss:$8 sm:$0x3] %vm7317_vm2, %v2677_v52  ;;  %v2616_v47 = vmul.f32 0.5, %v6742_v7  ;;  %6745 = vtanh.f32 %v2602_v41  ;;  %v2595_v57 = vadd.f32 %v2587_v49, %v2393_v63  ;;  %v2442_v10 = vpop.f32.mrf.mxu3  ;;  %v2687_v36 = vrot.slane %v2686_v15, 7 }
 0x4ac   : > { %5919 = vst.msk [vmem:[%s7353_s19 + $0x33] ss:$8 sm:$0x3] %vm7317_vm2, %v2679_v58  ;;  %v2596_v20 = vadd.f32 %v2588_v18, %v2442_v10  ;;  %v2639_v5 = vmul.f32 %v2631_v26, %v2623_v39  ;;  %v2633_v63 = vmax.f32 %v8210_v42, 0.0  ;;  %v2634_v18 = vmax.f32 %v8213_v40, 0.0 }
 0x4ad   : > { %5920 = vst.msk [vmem:[%s7353_s19 + $0x43] ss:$8 sm:$0x3] %vm7317_vm2, %v2681_v44  ;;  %v2624_v62 = vadd.f32 0.5, %v2616_v47  ;;  %v2603_v43 = vmul.f32 0.5, %v2595_v57 }
 0x4ae   : > { %5921 = vst.msk [vmem:[%s7353_s19 + $0x53] ss:$8 sm:$0x3] %vm7317_vm2, %v2683_v59  ;;  %v2604_v11 = vmul.f32 0.5, %v2596_v20 }
 0x4af   : > { %5922 = vst.msk [vmem:[%s7353_s19 + $0x63] ss:$8 sm:$0x3] %vm7317_vm2, %v2685_v30  ;;  %v2640_v28 = vmul.f32 %v2632_v23, %v2624_v62  ;;  %6747 = vtanh.f32 %v2603_v43  ;;  %v2636_v43 = vmax.f32 %v8225_v27, 0.0 }
 0x4b0   : > { %v6744_v50 = vpop.eup %6743  ;;  %5923 = vst.msk [vmem:[%s7353_s19 + $0x73] ss:$8 sm:$0x3] %vm7317_vm2, %v2687_v36  ;;  %6749 = vtanh.f32 %v2604_v11 }
 0x4b1   : > { %v6746_v26 = vpop.eup %6745  ;;  %v2654_v21 = vpack.c.bf16 %v2640_v28, %v2639_v5  ;;  %v2670_v16 = vrot.slane %v2640_v28, 7  ;;  %v2617_v41 = vmul.f32 0.5, %v6744_v50 }
 0x4b2   : > { %v2618_v49 = vmul.f32 0.5, %v6746_v26  ;;  %v2635_v26 = vmax.f32 %v8220_v45, 0.0 }
 0x4b3   : > { %v2688_v37 = vsel %vm751_vm3, %v2639_v5, %v2670_v16  ;;  %v2689_v2 = vsel %vm753_vm4, %v2639_v5, %v2670_v16  ;;  %v2691_v34 = vsel %vm756_vm5, %v2639_v5, %v2670_v16  ;;  %v2693_v17 = vsel %vm759_vm6, %v2639_v5, %v2670_v16  ;;  %2658 = vst [vmem:[#allocation2 + $0x18] sm:$0xff] %v2654_v21 }
 0x4b4   : > { %v2690_v7 = vrot.slane %v2689_v2, 1  ;;  %v2692_v0 = vrot.slane %v2691_v34, 2  ;;  %v2694_v52 = vrot.slane %v2693_v17, 3  ;;  %v2695_v58 = vsel %vm762_vm7, %v2639_v5, %v2670_v16  ;;  %5924 = vst.msk [vmem:[%s7353_s19 + $0x83] ss:$8 sm:$0x3] %vm7317_vm2, %v2688_v37 }
 0x4b5   : > { %v6748_v60 = vpop.eup %6747  ;;  %v2696_v44 = vrot.slane %v2695_v58, 4  ;;  %v2697_v22 = vsel %vm765_vm8, %v2639_v5, %v2670_v16  ;;  %v2699_v29 = vsel %vm768_vm9, %v2639_v5, %v2670_v16  ;;  %v2701_v15 = vsel %vm771_vm10, %v2670_v16, %v2639_v5 }
 0x4b6   : > { %v6750_v59 = vpop.eup %6749  ;;  %v2698_v30 = vrot.slane %v2697_v22, 5  ;;  %5925 = vst.msk [vmem:[%s7353_s19 + $0x93] ss:$8 sm:$0x3] %vm7317_vm2, %v2690_v7  ;;  %v2700_v39 = vrot.slane %v2699_v29, 6  ;;  %v2625_v47 = vadd.f32 0.5, %v2617_v41 }
 0x4b7   : > { %5926 = vst.msk [vmem:[%s7353_s19 + $0xa3] ss:$8 sm:$0x3] %vm7317_vm2, %v2692_v0  ;;  %v2626_v57 = vadd.f32 0.5, %v2618_v49  ;;  %v2702_v10 = vrot.slane %v2701_v15, 7  ;;  %v2619_v36 = vmul.f32 0.5, %v6748_v60 }
 0x4b8   : > { %5927 = vst.msk [vmem:[%s7353_s19 + $0xb3] ss:$8 sm:$0x3] %vm7317_vm2, %v2694_v52  ;;  %v2620_v20 = vmul.f32 0.5, %v6750_v59  ;;  %v2641_v5 = vmul.f32 %v2633_v63, %v2625_v47 }
 0x4b9   : > { %5928 = vst.msk [vmem:[%s7353_s19 + $0xc3] ss:$8 sm:$0x3] %vm7317_vm2, %v2696_v44  ;;  %v2642_v62 = vmul.f32 %v2634_v18, %v2626_v57  ;;  %v2627_v50 = vadd.f32 0.5, %v2619_v36 }
 0x4ba   : > { %5929 = vst.msk [vmem:[%s7353_s19 + $0xd3] ss:$8 sm:$0x3] %vm7317_vm2, %v2698_v30  ;;  %v2628_v23 = vadd.f32 0.5, %v2620_v20 }
 0x4bb   : > { %5930 = vst.msk [vmem:[%s7353_s19 + $0xe3] ss:$8 sm:$0x3] %vm7317_vm2, %v2700_v39  ;;  %v2655_v11 = vpack.c.bf16 %v2642_v62, %v2641_v5  ;;  %v2671_v28 = vrot.slane %v2642_v62, 7  ;;  %v2643_v29 = vmul.f32 %v2635_v26, %v2627_v50  ;;  %v5983_v26 = vld [vmem:[#allocation2] sm:$0xf] }
 0x4bc   : > { %5931 = vst.msk [vmem:[%s7353_s19 + $0xf3] ss:$8 sm:$0x3] %vm7317_vm2, %v2702_v10  ;;  %v2644_v21 = vmul.f32 %v2636_v43, %v2628_v23 }
 0x4bd   : > { %2659 = vst [vmem:[#allocation2 + $0x20] sm:$0xff] %v2655_v11  ;;  %v2703_v16 = vsel %vm751_vm3, %v2641_v5, %v2671_v28  ;;  %v2704_v41 = vsel %vm753_vm4, %v2641_v5, %v2671_v28  ;;  %v2706_v49 = vsel %vm756_vm5, %v2641_v5, %v2671_v28  ;;  %v2708_v37 = vsel %vm759_vm6, %v2641_v5, %v2671_v28 }
 0x4be   : > { %v2705_v2 = vrot.slane %v2704_v41, 1  ;;  %v2707_v34 = vrot.slane %v2706_v49, 2  ;;  %v2709_v17 = vrot.slane %v2708_v37, 3  ;;  %v2710_v7 = vsel %vm762_vm7, %v2641_v5, %v2671_v28  ;;  %5932 = vst.msk [vmem:[%s7353_s19 + $0x103] ss:$8 sm:$0x3] %vm7317_vm2, %v2703_v16 }
 0x4bf   : > { %v2711_v0 = vrot.slane %v2710_v7, 4  ;;  %v2712_v52 = vsel %vm765_vm8, %v2641_v5, %v2671_v28  ;;  %v2714_v58 = vsel %vm768_vm9, %v2641_v5, %v2671_v28  ;;  %v2716_v60 = vsel %vm771_vm10, %v2671_v28, %v2641_v5  ;;  %v6438_v16 = vld [vmem:[#allocation2 + $0x4] sm:$0xf]  ;;  %v9588_v41 = vld [vmem:[#allocation19_spill] sm:$0xff] }
 0x4c0   : > { %v2713_v44 = vrot.slane %v2712_v52, 5  ;;  %5933 = vst.msk [vmem:[%s7353_s19 + $0x113] ss:$8 sm:$0x3] %vm7317_vm2, %v2705_v2  ;;  %v2715_v22 = vrot.slane %v2714_v58, 6  ;;  %v2672_v15 = vrot.slane %v2644_v21, 7  ;;  %v2656_v50 = vpack.c.bf16 %v2644_v21, %v2643_v29 }
 0x4c1   : > { %5934 = vst.msk [vmem:[%s7353_s19 + $0x123] ss:$8 sm:$0x3] %vm7317_vm2, %v2707_v34  ;;  %v2717_v59 = vrot.slane %v2716_v60, 7  ;;  %v6441_v7 = vld [vmem:[#allocation2 + $0x14] sm:$0xf0] }
 0x4c2   : > { %5935 = vst.msk [vmem:[%s7353_s19 + $0x133] ss:$8 sm:$0x3] %vm7317_vm2, %v2709_v17  ;;  %v2719_v30 = vsel %vm753_vm4, %v2643_v29, %v2672_v15  ;;  %v2721_v63 = vsel %vm756_vm5, %v2643_v29, %v2672_v15  ;;  %v2723_v18 = vsel %vm759_vm6, %v2643_v29, %v2672_v15  ;;  %v2718_v39 = vsel %vm751_vm3, %v2643_v29, %v2672_v15  ;;  %v5991_v52 = vld [vmem:[#allocation2 + $0x10] sm:$0xf] }
 0x4c3   : > { %5936 = vst.msk [vmem:[%s7353_s19 + $0x143] ss:$8 sm:$0x3] %vm7317_vm2, %v2711_v0  ;;  %v2720_v47 = vrot.slane %v2719_v30, 1  ;;  %v2725_v57 = vsel %vm762_vm7, %v2643_v29, %v2672_v15  ;;  %v2722_v10 = vrot.slane %v2721_v63, 2  ;;  %v2727_v36 = vsel %vm765_vm8, %v2643_v29, %v2672_v15  ;;  %v6430_v30 = vld [vmem:[%s9543_s1] sm:$0xff] }
 0x4c4   : > { %5937 = vst.msk [vmem:[%s7353_s19 + $0x153] ss:$8 sm:$0x3] %vm7317_vm2, %v2713_v44  ;;  %v2724_v20 = vrot.slane %v2723_v18, 3  ;;  %v2729_v5 = vsel %vm768_vm9, %v2643_v29, %v2672_v15  ;;  %v2726_v62 = vrot.slane %v2725_v57, 4  ;;  %v2731_v23 = vsel %vm771_vm10, %v2672_v15, %v2643_v29  ;;  %v6431_v63 = vld [vmem:[%s9543_s1 + $0x8] sm:$0xff] }
 0x4c5   : > { %5938 = vst.msk [vmem:[%s7353_s19 + $0x163] ss:$8 sm:$0x3] %vm7317_vm2, %v2715_v22  ;;  %v2728_v43 = vrot.slane %v2727_v36, 5  ;;  %v2730_v11 = vrot.slane %v2729_v5, 6  ;;  %v2732_v28 = vrot.slane %v2731_v23, 7  ;;  %v5992_v22 = vor.u32 %v6441_v7, %v5991_v52 }
 0x4c6   : > { %5939 = vst.msk [vmem:[%s7353_s19 + $0x173] ss:$8 sm:$0x3] %vm7317_vm2, %v2717_v59  ;;  %v5999_v49 = vld [vmem:[#allocation2 + $0x20] sm:$0xf]  ;;  %v6432_v18 = vld [vmem:[%s9543_s1 + $0x10] sm:$0xff]  ;;  %v3091_v7 = vmul.f32 %v8188_v12, %v7206_v54  ;;  %v3138_v52 = vmul.f32 %v8185_v35, %v7208_v55 }
 0x4c7   : > { %5940 = vst.msk [vmem:[%s7353_s19 + $0x183] ss:$8 sm:$0x3] %vm7317_vm2, %v2718_v39  ;;  %v6442_v21 = vld [vmem:[#allocation2 + $0x24] sm:$0xf]  ;;  %v6433_v39 = vld [vmem:[%s9543_s1 + $0x18] sm:$0xff] }
 0x4c8   : > { %5941 = vst.msk [vmem:[%s7353_s19 + $0x193] ss:$8 sm:$0x3] %vm7317_vm2, %v2720_v47  ;;  %v5993_v0 = vld [vmem:[#allocation2 + $0x18] sm:$0xf0]  ;;  %v6435_v57 = vld [vmem:[%s9543_s1 + $0x28] sm:$0xff] }
 0x4c9   : > { %5942 = vst.msk [vmem:[%s7353_s19 + $0x1a3] ss:$8 sm:$0x3] %vm7317_vm2, %v2722_v10  ;;  %v6440_v58 = vld [vmem:[#allocation2 + $0x14] sm:$0xf]  ;;  %v6434_v47 = vld [vmem:[%s9543_s1 + $0x20] sm:$0xff] }
 0x4ca   : > { %5943 = vst.msk [vmem:[%s7353_s19 + $0x1b3] ss:$8 sm:$0x3] %vm7317_vm2, %v2724_v20  ;;  %v6439_v60 = vld [vmem:[#allocation2 + $0x4] sm:$0xf0]  ;;  %v5996_v29 = vor.u32 %v6440_v58, %v5993_v0  ;;  %v6437_v36 = vld [vmem:[%s9543_s1 + $0x38] sm:$0xff] }
 0x4cb   : > { %5944 = vst.msk [vmem:[%s7353_s19 + $0x1c3] ss:$8 sm:$0x3] %vm7317_vm2, %v2726_v62  ;;  %v5985_v44 = vld [vmem:[#allocation2 + $0x8] sm:$0xf0]  ;;  %v5984_v15 = vor.u32 %v6439_v60, %v5983_v26  ;;  %v3139_v60 = vmul.f32 %v8188_v12, %v7210_v56 }
 0x4cc   : > { %5945 = vst.msk [vmem:[%s7353_s19 + $0x1d3] ss:$8 sm:$0x3] %vm7317_vm2, %v2728_v43  ;;  %v5988_v59 = vor.u32 %v6438_v16, %v5985_v44  ;;  %v6436_v10 = vld [vmem:[%s9543_s1 + $0x30] sm:$0xff] }
 0x4cd   : > { %5946 = vst.msk [vmem:[%s7353_s19 + $0x1e3] ss:$8 sm:$0x3] %vm7317_vm2, %v2730_v11 }
 0x4ce   : > { %5947 = vst.msk [vmem:[%s7353_s19 + $0x1f3] ss:$8 sm:$0x3] %vm7317_vm2, %v2732_v28 }
 0x4cf   : > { %2660 = vst [vmem:[#allocation2 + $0x28] sm:$0xff] %v2656_v50 }
 0x4d0   : > { %3504 = vst [vmem:[#allocation2] sm:$0x33] %v9588_v41 }
 0x4d6   : > { %v6443_v37 = vld [vmem:[#allocation2 + $0x24] sm:$0xf0]  ;;  %v6001_v2 = vld [vmem:[#allocation2 + $0x28] sm:$0xf0] }
 0x4d7   : > { %v6000_v34 = vor.u32 %v6443_v37, %v5999_v49  ;;  %v6004_v17 = vor.u32 %v6442_v21, %v6001_v2 }
 0x4d9   : > { %2989 = vmatpush.bf16.msra.mxu0 %v6000_v34  ;;  %3038 = vmatpush.bf16.msra.mxu1 %v6004_v17  ;;  %v3090_v17 = vmul.f32 %v8185_v35, %v7204_v53 }
 0x4dd   : > { %2990 = vmatpush.bf16.msra.mxu0 %v5992_v22  ;;  %3039 = vmatpush.bf16.msra.mxu1 %v5996_v29 }
 0x4e1   : > { %2991 = vmatpush.bf16.msra.mxu0 %v5984_v15  ;;  %3040 = vmatpush.bf16.msra.mxu1 %v5988_v59 }
 0x4e4   : > { %6005 = vmatmul.msk.bf16.vlgmr.msra.gmra.mxu0 %vm400_vm1, %v6430_v30  ;;  %6013 = vmatmul.msk.bf16.vlgmr.msra.gmra.mxu1 %vm400_vm1, %v6430_v30 }
 0x4f4   : > { %6006 = vmatmul.msk.bf16.gmra.mxu0 %vm400_vm1, %v6431_v63  ;;  %6014 = vmatmul.msk.bf16.gmra.mxu1 %vm400_vm1, %v6431_v63  ;;  %v3092_v63 = vmul.f32 %v8197_v25, %v7219_v1 }
 0x504   : > { %6007 = vmatmul.msk.bf16.gmra.mxu0 %vm400_vm1, %v6432_v18  ;;  %6015 = vmatmul.msk.bf16.gmra.mxu1 %vm400_vm1, %v6432_v18  ;;  %v3093_v18 = vmul.f32 %v8200_v48, %v7222_v4 }
 0x514   : > { %6008 = vmatmul.msk.bf16.gmra.mxu0 %vm400_vm1, %v6433_v39  ;;  %6016 = vmatmul.msk.bf16.gmra.mxu1 %vm400_vm1, %v6433_v39 }
 0x524   : > { %6009 = vmatmul.msk.bf16.gmra.mxu0 %vm400_vm1, %v6434_v47  ;;  %6017 = vmatmul.msk.bf16.gmra.mxu1 %vm400_vm1, %v6434_v47 }
 0x534   : > { %6010 = vmatmul.msk.bf16.gmra.mxu0 %vm400_vm1, %v6435_v57  ;;  %6018 = vmatmul.msk.bf16.gmra.mxu1 %vm400_vm1, %v6435_v57 }
 0x544   : > { %6011 = vmatmul.msk.bf16.gmra.mxu0 %vm400_vm1, %v6436_v10  ;;  %6019 = vmatmul.msk.bf16.gmra.mxu1 %vm400_vm1, %v6436_v10  ;;  %v3140_v10 = vmul.f32 %v8197_v25, %v7224_v6 }
 0x554   : > { %6012 = vmatmul.msk.bf16.gmra.mxu0 %vm400_vm1, %v6437_v36  ;;  %6020 = vmatmul.msk.bf16.gmra.mxu1 %vm400_vm1, %v6437_v36 }
 0x561   : > { %v2993_v20 = vpop.f32.mrf.mxu0  ;;  %v3042_v5 = vpop.f32.mrf.mxu1 }
 0x562   : > { %v3098_v0 = vadd.f32 %v3090_v17, %v2993_v20  ;;  %v3099_v58 = vadd.f32 %v3091_v7, %v3042_v5  ;;  %v3141_v20 = vmul.f32 %v8200_v48, %v7226_v8 }
 0x564   : > { %v3106_v59 = vmul.f32 0.5, %v3098_v0  ;;  %v3107_v30 = vmul.f32 0.5, %v3099_v58  ;;  %v3094_v58 = vmul.f32 %v8210_v42, %v9578_v24 }
 0x566   : > { %6751 = vtanh.f32 %v3106_v59 }
 0x567   : > { %6753 = vtanh.f32 %v3107_v30 }
 0x569   : > { %v2995_v62 = vpop.f32.mrf.mxu0  ;;  %v3044_v23 = vpop.f32.mrf.mxu1 }
 0x56a   : > { %v3100_v47 = vadd.f32 %v3092_v63, %v2995_v62  ;;  %v3101_v36 = vadd.f32 %v3093_v18, %v3044_v23  ;;  %v9589_v63 = vld [vmem:[#allocation14_spill] sm:$0xff] }
 0x56b   : > { %v3143_v18 = vmul.f32 %v8213_v40, %v9589_v63 }
 0x56c   : > { %v3109_v62 = vmul.f32 0.5, %v3101_v36 }
 0x571   : > { %v2998_v43 = vpop.f32.mrf.mxu0  ;;  %v3047_v11 = vpop.f32.mrf.mxu1 }
 0x579   : > { %v8406_v28 = vpop.f32.mrf.mxu0  ;;  %v8408_v50 = vpop.f32.mrf.mxu1 }
 0x581   : > { %v3003_v26 = vpop.f32.mrf.mxu0  ;;  %v3052_v16 = vpop.f32.mrf.mxu1 }
 0x582   : > { %v3146_v44 = vadd.f32 %v3138_v52, %v3003_v26  ;;  %v3147_v22 = vadd.f32 %v3139_v60, %v3052_v16  ;;  %v3108_v16 = vmul.f32 0.5, %v3100_v47  ;;  %v6752_v52 = vpop.eup %6751 }
 0x583   : > { %v6754_v60 = vpop.eup %6753  ;;  %v3122_v47 = vmul.f32 0.5, %v6752_v52 }
 0x584   : > { %v3154_v39 = vmul.f32 0.5, %v3146_v44  ;;  %v3155_v57 = vmul.f32 0.5, %v3147_v22  ;;  %v3142_v22 = vmul.f32 %v8210_v42, %v7242_v31 }
 0x586   : > { %6755 = vtanh.f32 %v3154_v39 }
 0x587   : > { %6757 = vtanh.f32 %v3155_v57  ;;  %v3123_v57 = vmul.f32 0.5, %v6754_v60 }
 0x588   : > { %6759 = vtanh.f32 %v3108_v16 }
 0x589   : > { %v3005_v41 = vpop.f32.mrf.mxu0  ;;  %v3054_v49 = vpop.f32.mrf.mxu1  ;;  %6761 = vtanh.f32 %v3109_v62 }
 0x58a   : > { %v3148_v5 = vadd.f32 %v3140_v10, %v3005_v41  ;;  %v3149_v26 = vadd.f32 %v3141_v20, %v3054_v49  ;;  %v3095_v41 = vmul.f32 %v8213_v40, %v9579_v19  ;;  %v3102_v49 = vadd.f32 %v3094_v58, %v2998_v43  ;;  %v9590_v43 = vld [vmem:[#allocation12_spill] sm:$0xff] }
 0x58b   : > { %v9591_v58 = vld [vmem:[#allocation16_spill] sm:$0xff] }
 0x58c   : > { %v3156_v0 = vmul.f32 0.5, %v3148_v5  ;;  %v3157_v23 = vmul.f32 0.5, %v3149_v26  ;;  %v6756_v44 = vpop.eup %6755  ;;  %v3103_v30 = vadd.f32 %v3095_v41, %v3047_v11  ;;  %v3110_v5 = vmul.f32 0.5, %v3102_v49 }
 0x58d   : > { %v6758_v59 = vpop.eup %6757  ;;  %v3096_v26 = vmul.f32 %v8220_v45, %v9590_v43  ;;  %v3170_v16 = vmul.f32 0.5, %v6756_v44  ;;  %v3097_v41 = vmul.f32 %v8225_v27, %v9591_v58  ;;  %v3130_v43 = vadd.f32 0.5, %v3122_v47 }
 0x58e   : > { %6763 = vtanh.f32 %v3156_v0  ;;  %v3171_v62 = vmul.f32 0.5, %v6758_v59  ;;  %v6760_v11 = vpop.eup %6759  ;;  %v3111_v0 = vmul.f32 0.5, %v3103_v30  ;;  %v3131_v44 = vadd.f32 0.5, %v3123_v57 }
 0x58f   : > { %6765 = vtanh.f32 %v3157_v23  ;;  %v9592_v23 = vld [vmem:[#allocation15_spill] sm:$0xff]  ;;  %v6762_v52 = vpop.eup %6761  ;;  %v3145_v30 = vmul.f32 %v8225_v27, %v7260_v61  ;;  %v3178_v58 = vadd.f32 0.5, %v3170_v16  ;;  %v3124_v19 = vmul.f32 0.5, %v6760_v11 }
 0x590   : > { %6767 = vtanh.f32 %v3110_v5  ;;  %v3179_v31 = vadd.f32 0.5, %v3171_v62 }
 0x591   : > { %v3008_v37 = vpop.f32.mrf.mxu0  ;;  %v3057_v21 = vpop.f32.mrf.mxu1  ;;  %6769 = vtanh.f32 %v3111_v0  ;;  %v3132_v11 = vadd.f32 0.5, %v3124_v19 }
 0x592   : > { %v3150_v39 = vadd.f32 %v3142_v22, %v3008_v37  ;;  %v3151_v10 = vadd.f32 %v3143_v18, %v3057_v21  ;;  %v3144_v37 = vmul.f32 %v8220_v45, %v9592_v23  ;;  %v3104_v21 = vadd.f32 %v3096_v26, %v8406_v28 }
 0x593   : > { %v3125_v28 = vmul.f32 0.5, %v6762_v52  ;;  %v3187_v16 = vmul.f32 %v3179_v31, %v8188_v12 }
 0x594   : > { %v3158_v60 = vmul.f32 0.5, %v3150_v39  ;;  %v6764_v18 = vpop.eup %6763  ;;  %v3159_v59 = vmul.f32 0.5, %v3151_v10  ;;  %v3112_v39 = vmul.f32 0.5, %v3104_v21 }
 0x595   : > { %v6766_v63 = vpop.eup %6765  ;;  %v3172_v57 = vmul.f32 0.5, %v6764_v18 }
 0x596   : > { %6771 = vtanh.f32 %v3158_v60  ;;  %v3173_v10 = vmul.f32 0.5, %v6766_v63  ;;  %v6768_v0 = vpop.eup %6767 }
 0x597   : > { %6773 = vtanh.f32 %v3159_v59  ;;  %v6770_v52 = vpop.eup %6769  ;;  %v3180_v21 = vadd.f32 0.5, %v3172_v57 }
 0x598   : > { %6775 = vtanh.f32 %v3112_v39  ;;  %v3181_v60 = vadd.f32 0.5, %v3173_v10 }
 0x599   : > { %v8410_v2 = vpop.f32.mrf.mxu0  ;;  %v8412_v34 = vpop.f32.mrf.mxu1 }
 0x59a   : > { %v3152_v23 = vadd.f32 %v3144_v37, %v8410_v2  ;;  %v3153_v26 = vadd.f32 %v3145_v30, %v8412_v34  ;;  %v3186_v2 = vmul.f32 %v3178_v58, %v8185_v35  ;;  %v3133_v34 = vadd.f32 0.5, %v3125_v28 }
 0x59b   : > { %v3189_v18 = vmul.f32 %v3181_v60, %v8200_v48  ;;  %v3127_v30 = vmul.f32 0.5, %v6770_v52 }
 0x59c   : > { %v3160_v62 = vmul.f32 0.5, %v3152_v23  ;;  %v3161_v35 = vmul.f32 0.5, %v3153_v26  ;;  %v6772_v58 = vpop.eup %6771 }
 0x59d   : > { %v6774_v31 = vpop.eup %6773 }
 0x59e   : > { %6777 = vtanh.f32 %v3160_v62  ;;  %v3175_v28 = vmul.f32 0.5, %v6774_v31 }
 0x5a1   : > { %v8422_v29 = vpop.f32.mrf.mxu0  ;;  %v8424_v15 = vpop.f32.mrf.mxu1 }
 0x5a2   : > { %v3194_v22 = vmax.f32 %v8422_v29, 0.0  ;;  %v3195_v49 = vmax.f32 %v8424_v15, 0.0  ;;  %v3105_v29 = vadd.f32 %v3097_v41, %v8408_v50 }
 0x5a4   : > { %v3202_v15 = vmul.f32 %v3194_v22, %v3130_v43  ;;  %v3203_v47 = vmul.f32 %v3195_v49, %v3131_v44  ;;  %v3113_v41 = vmul.f32 0.5, %v3105_v29  ;;  %v3174_v22 = vmul.f32 0.5, %v6772_v58 }
 0x5a5   : > { %v3188_v49 = vmul.f32 %v3180_v21, %v8197_v25 }
 0x5a6   : > { %v8472_v63 = vadd.f32 %v3202_v15, %v3186_v2  ;;  %v8474_v37 = vadd.f32 %v3203_v47, %v3187_v16  ;;  %6779 = vtanh.f32 %v3113_v41  ;;  %v6776_v15 = vpop.eup %6775  ;;  %v3182_v62 = vadd.f32 0.5, %v3174_v22 }
 0x5a7   : > { %6781 = vtanh.f32 %v3161_v35  ;;  %v6778_v10 = vpop.eup %6777  ;;  %v3128_v41 = vmul.f32 0.5, %v6776_v15 }
 0x5a8   : > { %v3219_v23 = vmul.f32 %v8474_v37, %v7290_v14  ;;  %v3190_v35 = vmul.f32 %v3182_v62, %v8210_v42 }
 0x5a9   : > { %v8434_v17 = vpop.f32.mrf.mxu0  ;;  %v8436_v7 = vpop.f32.mrf.mxu1 }
 0x5aa   : > { %v3196_v50 = vmax.f32 %v8434_v17, 0.0  ;;  %v3197_v43 = vmax.f32 %v8436_v7, 0.0  ;;  %v3126_v17 = vmul.f32 0.5, %v6768_v0  ;;  %v3218_v7 = vmul.f32 %v8472_v63, %v7288_v13 }
 0x5ac   : > { %v3204_v19 = vmul.f32 %v3196_v50, %v3132_v11  ;;  %v3205_v12 = vmul.f32 %v3197_v43, %v3133_v34  ;;  %v6780_v48 = vpop.eup %6779  ;;  %v3134_v11 = vadd.f32 0.5, %v3126_v17  ;;  %v3135_v50 = vadd.f32 0.5, %v3127_v30 }
 0x5ad   : > { %v3183_v43 = vadd.f32 0.5, %v3175_v28  ;;  %v6782_v0 = vpop.eup %6781  ;;  %v3176_v34 = vmul.f32 0.5, %v6778_v10 }
 0x5ae   : > { %v8482_v47 = vadd.f32 %v3204_v19, %v3188_v49  ;;  %v8484_v57 = vadd.f32 %v3205_v12, %v3189_v18  ;;  %v3177_v17 = vmul.f32 0.5, %v6782_v0  ;;  %v3136_v49 = vadd.f32 0.5, %v3128_v41 }
 0x5af   : > { %v3191_v12 = vmul.f32 %v3183_v43, %v8213_v40  ;;  %v3184_v22 = vadd.f32 0.5, %v3176_v34 }
 0x5b0   : > { %v3220_v60 = vmul.f32 %v8482_v47, %v7296_v46  ;;  %v3185_v15 = vadd.f32 0.5, %v3177_v17 }
 0x5b1   : > { %v8446_v36 = vpop.f32.mrf.mxu0  ;;  %v8448_v20 = vpop.f32.mrf.mxu1 }
 0x5b2   : > { %v3198_v26 = vmax.f32 %v8446_v36, 0.0  ;;  %v3199_v2 = vmax.f32 %v8448_v20, 0.0  ;;  %v3221_v36 = vmul.f32 %v8484_v57, %v7302_v51  ;;  %v3129_v20 = vmul.f32 0.5, %v6780_v48 }
 0x5b4   : > { %v3206_v52 = vmul.f32 %v3198_v26, %v3134_v11  ;;  %v3207_v21 = vmul.f32 %v3199_v2, %v3135_v50  ;;  %v3137_v10 = vadd.f32 0.5, %v3129_v20  ;;  %v3192_v26 = vmul.f32 %v3184_v22, %v8220_v45 }
 0x5b5   : > { %v3193_v45 = vmul.f32 %v3185_v15, %v8225_v27 }
 0x5b9   : > { %v8464_v61 = vpop.f32.mrf.mxu0  ;;  %v8466_v5 = vpop.f32.mrf.mxu1 }
 0x5ba   : > { %v3200_v58 = vmax.f32 %v8464_v61, 0.0  ;;  %v3201_v30 = vmax.f32 %v8466_v5, 0.0 }
 0x5bc   : > { %v3209_v62 = vmul.f32 %v3201_v30, %v3137_v10 }
 0x5c1   : > { %v3023_v44 = vpop.f32.mrf.mxu0  ;;  %v3072_v59 = vpop.f32.mrf.mxu1 }
 0x5c2   : > { %v3226_v29 = vadd.f32 %v3218_v7, %v3023_v44  ;;  %v3227_v39 = vadd.f32 %v3219_v23, %v3072_v59  ;;  %v8495_v44 = vadd.f32 %v3206_v52, %v3190_v35  ;;  %v8497_v59 = vadd.f32 %v3207_v21, %v3191_v12 }
 0x5c4   : > { %v3234_v16 = vmul.f32 0.5, %v3226_v29  ;;  %v3235_v25 = vmul.f32 0.5, %v3227_v39  ;;  %v3208_v29 = vmul.f32 %v3200_v58, %v3136_v49  ;;  %v3222_v5 = vmul.f32 %v8495_v44, %v7312_v32 }
 0x5c5   : > { %v3223_v11 = vmul.f32 %v8497_v59, %v7314_v33  ;;  %v3268_v58 = vmax.f32 %v8482_v47, 0.0 }
 0x5c6   : > { %6783 = vtanh.f32 %v3234_v16  ;;  %v3266_v16 = vmax.f32 %v8472_v63, 0.0  ;;  %v8507_v50 = vadd.f32 %v3208_v29, %v3192_v26 }
 0x5c7   : > { %6785 = vtanh.f32 %v3235_v25  ;;  %v3267_v25 = vmax.f32 %v8474_v37, 0.0 }
 0x5c8   : > { %v3224_v17 = vmul.f32 %v8507_v50, %v7328_v3 }
 0x5c9   : > { %v3025_v31 = vpop.f32.mrf.mxu0  ;;  %v3074_v19 = vpop.f32.mrf.mxu1 }
 0x5ca   : > { %v3228_v7 = vadd.f32 %v3220_v60, %v3025_v31  ;;  %v3229_v23 = vadd.f32 %v3221_v36, %v3074_v19  ;;  %v8510_v36 = vadd.f32 %v3209_v62, %v3193_v45 }
 0x5cc   : > { %v6784_v18 = vpop.eup %6783  ;;  %v3236_v28 = vmul.f32 0.5, %v3228_v7  ;;  %v3237_v39 = vmul.f32 0.5, %v3229_v23 }
 0x5cd   : > { %v6786_v42 = vpop.eup %6785  ;;  %v3250_v61 = vmul.f32 0.5, %v6784_v18 }
 0x5ce   : > { %v3251_v40 = vmul.f32 0.5, %v6786_v42  ;;  %6787 = vtanh.f32 %v3236_v28 }
 0x5cf   : > { %v3258_v2 = vadd.f32 0.5, %v3250_v61  ;;  %6789 = vtanh.f32 %v3237_v39 }
 0x5d0   : > { %v3259_v48 = vadd.f32 0.5, %v3251_v40 }
 0x5d1   : > { %v3274_v43 = vmul.f32 %v3266_v16, %v3258_v2  ;;  %v3028_v0 = vpop.f32.mrf.mxu0  ;;  %v3077_v41 = vpop.f32.mrf.mxu1  ;;  %v3225_v16 = vmul.f32 %v8510_v36, %v7331_v9 }
 0x5d2   : > { %v3275_v34 = vmul.f32 %v3267_v25, %v3259_v48  ;;  %v3230_v52 = vadd.f32 %v3222_v5, %v3028_v0  ;;  %v3231_v21 = vadd.f32 %v3223_v11, %v3077_v41  ;;  %v3269_v41 = vmax.f32 %v8484_v57, 0.0 }
 0x5d4   : > { %v6788_v60 = vpop.eup %6787  ;;  %v3290_v20 = vpack.c.bf16 %v3275_v34, %v3274_v43  ;;  %v3306_v35 = vrot.slane %v3275_v34, 7  ;;  %v3238_v19 = vmul.f32 0.5, %v3230_v52  ;;  %v3239_v12 = vmul.f32 0.5, %v3231_v21 }
 0x5d5   : > { %v3252_v31 = vmul.f32 0.5, %v6788_v60  ;;  %v6790_v49 = vpop.eup %6789 }
 0x5d6   : > { %v3310_v7 = vsel %vm751_vm3, %v3274_v43, %v3306_v35  ;;  %v3311_v27 = vsel %vm753_vm4, %v3274_v43, %v3306_v35  ;;  %v3313_v23 = vsel %vm756_vm5, %v3274_v43, %v3306_v35  ;;  %v3315_v22 = vsel %vm759_vm6, %v3274_v43, %v3306_v35  ;;  %3294 = vst [vmem:[#allocation2 + $0x10] sm:$0xff] %v3290_v20 }
 0x5d7   : > { %v3312_v18 = vrot.slane %v3311_v27, 1  ;;  %v3314_v30 = vrot.slane %v3313_v23, 2  ;;  %v3316_v28 = vrot.slane %v3315_v22, 3  ;;  %v3317_v42 = vsel %vm762_vm7, %v3274_v43, %v3306_v35  ;;  %6021 = vst.msk [vmem:[%s7353_s19 + $0x4] ss:$8 sm:$0x3] %vm7317_vm2, %v3310_v7 }
 0x5d8   : > { %v3318_v29 = vrot.slane %v3317_v42, 4  ;;  %v3319_v61 = vsel %vm765_vm8, %v3274_v43, %v3306_v35  ;;  %v3321_v39 = vsel %vm768_vm9, %v3274_v43, %v3306_v35  ;;  %v3323_v15 = vsel %vm771_vm10, %v3306_v35, %v3274_v43 }
 0x5d9   : > { %v3320_v10 = vrot.slane %v3319_v61, 5  ;;  %v3322_v40 = vrot.slane %v3321_v39, 6  ;;  %6022 = vst.msk [vmem:[%s7353_s19 + $0x14] ss:$8 sm:$0x3] %vm7317_vm2, %v3312_v18  ;;  %6791 = vtanh.f32 %v3238_v19  ;;  %v3030_v26 = vpop.f32.mrf.mxu0  ;;  %v3079_v2 = vpop.f32.mrf.mxu1  ;;  %v3260_v25 = vadd.f32 0.5, %v3252_v31 }
 0x5da   : > { %6023 = vst.msk [vmem:[%s7353_s19 + $0x24] ss:$8 sm:$0x3] %vm7317_vm2, %v3314_v30  ;;  %v3253_v62 = vmul.f32 0.5, %v6790_v49  ;;  %6793 = vtanh.f32 %v3239_v12  ;;  %v3232_v48 = vadd.f32 %v3224_v17, %v3030_v26  ;;  %v3324_v5 = vrot.slane %v3323_v15, 7 }
 0x5db   : > { %6024 = vst.msk [vmem:[%s7353_s19 + $0x34] ss:$8 sm:$0x3] %vm7317_vm2, %v3316_v28  ;;  %v3233_v11 = vadd.f32 %v3225_v16, %v3079_v2  ;;  %v3276_v43 = vmul.f32 %v3268_v58, %v3260_v25  ;;  %v3270_v15 = vmax.f32 %v8495_v44, 0.0 }
 0x5dc   : > { %6025 = vst.msk [vmem:[%s7353_s19 + $0x44] ss:$8 sm:$0x3] %vm7317_vm2, %v3318_v29  ;;  %v3261_v0 = vadd.f32 0.5, %v3253_v62  ;;  %v3240_v45 = vmul.f32 0.5, %v3232_v48 }
 0x5dd   : > { %6026 = vst.msk [vmem:[%s7353_s19 + $0x54] ss:$8 sm:$0x3] %vm7317_vm2, %v3320_v10  ;;  %v3241_v34 = vmul.f32 0.5, %v3233_v11  ;;  %v3271_v10 = vmax.f32 %v8497_v59, 0.0 }
 0x5de   : > { %6027 = vst.msk [vmem:[%s7353_s19 + $0x64] ss:$8 sm:$0x3] %vm7317_vm2, %v3322_v40  ;;  %v3277_v52 = vmul.f32 %v3269_v41, %v3261_v0  ;;  %6795 = vtanh.f32 %v3240_v45 }
 0x5df   : > { %v6792_v21 = vpop.eup %6791  ;;  %6028 = vst.msk [vmem:[%s7353_s19 + $0x74] ss:$8 sm:$0x3] %vm7317_vm2, %v3324_v5  ;;  %6797 = vtanh.f32 %v3241_v34  ;;  %v3272_v34 = vmax.f32 %v8507_v50, 0.0 }
 0x5e0   : > { %v6794_v60 = vpop.eup %6793  ;;  %v3291_v20 = vpack.c.bf16 %v3277_v52, %v3276_v43  ;;  %v3307_v35 = vrot.slane %v3277_v52, 7  ;;  %v3254_v58 = vmul.f32 0.5, %v6792_v21 }
 0x5e1   : > { %v3255_v31 = vmul.f32 0.5, %v6794_v60 }
 0x5e2   : > { %v3325_v19 = vsel %vm751_vm3, %v3276_v43, %v3307_v35  ;;  %v3326_v12 = vsel %vm753_vm4, %v3276_v43, %v3307_v35  ;;  %v3328_v17 = vsel %vm756_vm5, %v3276_v43, %v3307_v35  ;;  %v3330_v7 = vsel %vm759_vm6, %v3276_v43, %v3307_v35  ;;  %3295 = vst [vmem:[#allocation2 + $0x18] sm:$0xff] %v3291_v20 }
 0x5e3   : > { %v3327_v27 = vrot.slane %v3326_v12, 1  ;;  %v3329_v23 = vrot.slane %v3328_v17, 2  ;;  %v3331_v22 = vrot.slane %v3330_v7, 3  ;;  %v3332_v49 = vsel %vm762_vm7, %v3276_v43, %v3307_v35  ;;  %6029 = vst.msk [vmem:[%s7353_s19 + $0x84] ss:$8 sm:$0x3] %vm7317_vm2, %v3325_v19 }
 0x5e4   : > { %v6796_v18 = vpop.eup %6795  ;;  %v3333_v30 = vrot.slane %v3332_v49, 4  ;;  %v3334_v28 = vsel %vm765_vm8, %v3276_v43, %v3307_v35  ;;  %v3336_v42 = vsel %vm768_vm9, %v3276_v43, %v3307_v35  ;;  %v3338_v29 = vsel %vm771_vm10, %v3307_v35, %v3276_v43 }
 0x5e5   : > { %v6798_v61 = vpop.eup %6797  ;;  %v3335_v39 = vrot.slane %v3334_v28, 5  ;;  %6030 = vst.msk [vmem:[%s7353_s19 + $0x94] ss:$8 sm:$0x3] %vm7317_vm2, %v3327_v27  ;;  %v3337_v40 = vrot.slane %v3336_v42, 6  ;;  %v3262_v26 = vadd.f32 0.5, %v3254_v58 }
 0x5e6   : > { %6031 = vst.msk [vmem:[%s7353_s19 + $0xa4] ss:$8 sm:$0x3] %vm7317_vm2, %v3329_v23  ;;  %v3263_v2 = vadd.f32 0.5, %v3255_v31  ;;  %v3339_v16 = vrot.slane %v3338_v29, 7  ;;  %v3256_v25 = vmul.f32 0.5, %v6796_v18 }
 0x5e7   : > { %6032 = vst.msk [vmem:[%s7353_s19 + $0xb4] ss:$8 sm:$0x3] %vm7317_vm2, %v3331_v22  ;;  %v3257_v62 = vmul.f32 0.5, %v6798_v61  ;;  %v3278_v48 = vmul.f32 %v3270_v15, %v3262_v26  ;;  %v3273_v43 = vmax.f32 %v8510_v36, 0.0 }
 0x5e8   : > { %6033 = vst.msk [vmem:[%s7353_s19 + $0xc4] ss:$8 sm:$0x3] %vm7317_vm2, %v3333_v30  ;;  %v3279_v5 = vmul.f32 %v3271_v10, %v3263_v2  ;;  %v3264_v45 = vadd.f32 0.5, %v3256_v25 }
 0x5e9   : > { %6034 = vst.msk [vmem:[%s7353_s19 + $0xd4] ss:$8 sm:$0x3] %vm7317_vm2, %v3335_v39  ;;  %v3265_v11 = vadd.f32 0.5, %v3257_v62 }
 0x5ea   : > { %6035 = vst.msk [vmem:[%s7353_s19 + $0xe4] ss:$8 sm:$0x3] %vm7317_vm2, %v3337_v40  ;;  %v3292_v0 = vpack.c.bf16 %v3279_v5, %v3278_v48  ;;  %v3308_v41 = vrot.slane %v3279_v5, 7  ;;  %v3280_v18 = vmul.f32 %v3272_v34, %v3264_v45  ;;  %v9593_v45 = vld [vmem:[#allocation20_spill] sm:$0xff] }
 0x5eb   : > { %6036 = vst.msk [vmem:[%s7353_s19 + $0xf4] ss:$8 sm:$0x3] %vm7317_vm2, %v3339_v16  ;;  %v3281_v52 = vmul.f32 %v3273_v43, %v3265_v11 }
 0x5ec   : > { %v3340_v21 = vsel %vm751_vm3, %v3278_v48, %v3308_v41  ;;  %v3341_v60 = vsel %vm753_vm4, %v3278_v48, %v3308_v41  ;;  %v3343_v20 = vsel %vm756_vm5, %v3278_v48, %v3308_v41  ;;  %v3345_v35 = vsel %vm759_vm6, %v3278_v48, %v3308_v41  ;;  %3296 = vst [vmem:[#allocation2 + $0x20] sm:$0xff] %v3292_v0  ;;  %v6088_v0 = vld [vmem:[#allocation2] sm:$0xf] }
 0x5ed   : > { %v3342_v58 = vrot.slane %v3341_v60, 1  ;;  %v3344_v31 = vrot.slane %v3343_v20, 2  ;;  %v3346_v19 = vrot.slane %v3345_v35, 3  ;;  %v3347_v12 = vsel %vm762_vm7, %v3278_v48, %v3308_v41  ;;  %6037 = vst.msk [vmem:[%s7353_s19 + $0x104] ss:$8 sm:$0x3] %vm7317_vm2, %v3340_v21 }
 0x5ee   : > { %v3348_v17 = vrot.slane %v3347_v12, 4  ;;  %v3349_v7 = vsel %vm765_vm8, %v3278_v48, %v3308_v41  ;;  %v3351_v27 = vsel %vm768_vm9, %v3278_v48, %v3308_v41  ;;  %v3353_v23 = vsel %vm771_vm10, %v3308_v41, %v3278_v48  ;;  %v6452_v41 = vld [vmem:[#allocation2 + $0x4] sm:$0xf]  ;;  %v6454_v12 = vld [vmem:[#allocation2 + $0x14] sm:$0xf] }
 0x5ef   : > { %v3350_v22 = vrot.slane %v3349_v7, 5  ;;  %6038 = vst.msk [vmem:[%s7353_s19 + $0x114] ss:$8 sm:$0x3] %vm7317_vm2, %v3342_v58  ;;  %v3352_v49 = vrot.slane %v3351_v27, 6  ;;  %v3309_v30 = vrot.slane %v3281_v52, 7  ;;  %v3293_v43 = vpack.c.bf16 %v3281_v52, %v3280_v18 }
 0x5f0   : > { %6039 = vst.msk [vmem:[%s7353_s19 + $0x124] ss:$8 sm:$0x3] %vm7317_vm2, %v3344_v31  ;;  %v3354_v28 = vrot.slane %v3353_v23, 7  ;;  %v6455_v58 = vld [vmem:[#allocation2 + $0x14] sm:$0xf0] }
 0x5f1   : > { %6040 = vst.msk [vmem:[%s7353_s19 + $0x134] ss:$8 sm:$0x3] %vm7317_vm2, %v3346_v19  ;;  %v3356_v42 = vsel %vm753_vm4, %v3280_v18, %v3309_v30  ;;  %v3358_v29 = vsel %vm756_vm5, %v3280_v18, %v3309_v30  ;;  %v3360_v61 = vsel %vm759_vm6, %v3280_v18, %v3309_v30  ;;  %v3355_v39 = vsel %vm751_vm3, %v3280_v18, %v3309_v30  ;;  %v6098_v31 = vld [vmem:[#allocation2 + $0x18] sm:$0xf0] }
 0x5f2   : > { %6041 = vst.msk [vmem:[%s7353_s19 + $0x144] ss:$8 sm:$0x3] %vm7317_vm2, %v3348_v17  ;;  %v3357_v15 = vrot.slane %v3356_v42, 1  ;;  %v3362_v10 = vsel %vm762_vm7, %v3280_v18, %v3309_v30  ;;  %v3359_v40 = vrot.slane %v3358_v29, 2  ;;  %v3364_v26 = vsel %vm765_vm8, %v3280_v18, %v3309_v30  ;;  %v6447_v42 = vld [vmem:[%s9543_s1 + $0x18] sm:$0xff] }
 0x5f3   : > { %6042 = vst.msk [vmem:[%s7353_s19 + $0x154] ss:$8 sm:$0x3] %vm7317_vm2, %v3350_v22  ;;  %v3361_v2 = vrot.slane %v3360_v61, 3  ;;  %v3366_v16 = vsel %vm768_vm9, %v3280_v18, %v3309_v30  ;;  %v3363_v25 = vrot.slane %v3362_v10, 4  ;;  %v3368_v62 = vsel %vm771_vm10, %v3309_v30, %v3280_v18  ;;  %v6444_v18 = vld [vmem:[%s9543_s1] sm:$0xff] }
 0x5f4   : > { %6043 = vst.msk [vmem:[%s7353_s19 + $0x164] ss:$8 sm:$0x3] %vm7317_vm2, %v3352_v49  ;;  %v3365_v48 = vrot.slane %v3364_v26, 5  ;;  %v3367_v5 = vrot.slane %v3366_v16, 6  ;;  %v3369_v11 = vrot.slane %v3368_v62, 7  ;;  %v6101_v23 = vor.u32 %v6454_v12, %v6098_v31 }
 0x5f5   : > { %6044 = vst.msk [vmem:[%s7353_s19 + $0x174] ss:$8 sm:$0x3] %vm7317_vm2, %v3354_v28  ;;  %v6104_v34 = vld [vmem:[#allocation2 + $0x20] sm:$0xf]  ;;  %v6446_v28 = vld [vmem:[%s9543_s1 + $0x10] sm:$0xff]  ;;  %v3776_v31 = vmul.f32 %v8474_v37, %v7210_v56 }
 0x5f6   : > { %6045 = vst.msk [vmem:[%s7353_s19 + $0x184] ss:$8 sm:$0x3] %vm7317_vm2, %v3355_v39  ;;  %v6456_v52 = vld [vmem:[#allocation2 + $0x24] sm:$0xf]  ;;  %v6448_v29 = vld [vmem:[%s9543_s1 + $0x20] sm:$0xff] }
 0x5f7   : > { %6046 = vst.msk [vmem:[%s7353_s19 + $0x194] ss:$8 sm:$0x3] %vm7317_vm2, %v3357_v15  ;;  %v6096_v19 = vld [vmem:[#allocation2 + $0x10] sm:$0xf]  ;;  %v6445_v30 = vld [vmem:[%s9543_s1 + $0x8] sm:$0xff] }
 0x5f8   : > { %6047 = vst.msk [vmem:[%s7353_s19 + $0x1a4] ss:$8 sm:$0x3] %vm7317_vm2, %v3359_v40  ;;  %v6453_v17 = vld [vmem:[#allocation2 + $0x4] sm:$0xf0]  ;;  %v6097_v27 = vor.u32 %v6455_v58, %v6096_v19  ;;  %v6449_v61 = vld [vmem:[%s9543_s1 + $0x28] sm:$0xff] }
 0x5f9   : > { %6048 = vst.msk [vmem:[%s7353_s19 + $0x1b4] ss:$8 sm:$0x3] %vm7317_vm2, %v3361_v2  ;;  %v6090_v7 = vld [vmem:[#allocation2 + $0x8] sm:$0xf0]  ;;  %v6089_v22 = vor.u32 %v6453_v17, %v6088_v0  ;;  %v6451_v15 = vld [vmem:[%s9543_s1 + $0x38] sm:$0xff] }
 0x5fa   : > { %6049 = vst.msk [vmem:[%s7353_s19 + $0x1c4] ss:$8 sm:$0x3] %vm7317_vm2, %v3363_v25  ;;  %v6093_v49 = vor.u32 %v6452_v41, %v6090_v7  ;;  %v6450_v39 = vld [vmem:[%s9543_s1 + $0x30] sm:$0xff] }
 0x5fb   : > { %6050 = vst.msk [vmem:[%s7353_s19 + $0x1d4] ss:$8 sm:$0x3] %vm7317_vm2, %v3365_v48 }
 0x5fc   : > { %6051 = vst.msk [vmem:[%s7353_s19 + $0x1e4] ss:$8 sm:$0x3] %vm7317_vm2, %v3367_v5 }
 0x5fd   : > { %6052 = vst.msk [vmem:[%s7353_s19 + $0x1f4] ss:$8 sm:$0x3] %vm7317_vm2, %v3369_v11 }
 0x5fe   : > { %3297 = vst [vmem:[#allocation2 + $0x28] sm:$0xff] %v3293_v43 }
 0x5ff   : > { %4141 = vst [vmem:[#allocation2] sm:$0x33] %v9593_v45 }
 0x605   : > { %v6457_v21 = vld [vmem:[#allocation2 + $0x24] sm:$0xf0]  ;;  %v6106_v60 = vld [vmem:[#allocation2 + $0x28] sm:$0xf0] }
 0x606   : > { %v6105_v20 = vor.u32 %v6457_v21, %v6104_v34  ;;  %v6109_v35 = vor.u32 %v6456_v52, %v6106_v60  ;;  %v3727_v52 = vmul.f32 %v8472_v63, %v7204_v53  ;;  %v3728_v60 = vmul.f32 %v8474_v37, %v7206_v54 }
 0x608   : > { %3626 = vmatpush.bf16.msra.mxu2 %v6105_v20  ;;  %3675 = vmatpush.bf16.msra.mxu3 %v6109_v35  ;;  %v3775_v35 = vmul.f32 %v8472_v63, %v7208_v55 }
 0x60c   : > { %3627 = vmatpush.bf16.msra.mxu2 %v6097_v27  ;;  %3676 = vmatpush.bf16.msra.mxu3 %v6101_v23 }
 0x610   : > { %3628 = vmatpush.bf16.msra.mxu2 %v6089_v22  ;;  %3677 = vmatpush.bf16.msra.mxu3 %v6093_v49  ;;  %v3729_v22 = vmul.f32 %v8482_v47, %v7219_v1  ;;  %v3730_v49 = vmul.f32 %v8484_v57, %v7222_v4 }
 0x613   : > { %6110 = vmatmul.msk.bf16.vlgmr.msra.gmra.mxu2 %vm400_vm1, %v6444_v18  ;;  %6118 = vmatmul.msk.bf16.vlgmr.msra.gmra.mxu3 %vm400_vm1, %v6444_v18 }
 0x623   : > { %6111 = vmatmul.msk.bf16.gmra.mxu2 %vm400_vm1, %v6445_v30  ;;  %6119 = vmatmul.msk.bf16.gmra.mxu3 %vm400_vm1, %v6445_v30 }
 0x633   : > { %6112 = vmatmul.msk.bf16.gmra.mxu2 %vm400_vm1, %v6446_v28  ;;  %6120 = vmatmul.msk.bf16.gmra.mxu3 %vm400_vm1, %v6446_v28 }
 0x643   : > { %6113 = vmatmul.msk.bf16.gmra.mxu2 %vm400_vm1, %v6447_v42  ;;  %6121 = vmatmul.msk.bf16.gmra.mxu3 %vm400_vm1, %v6447_v42  ;;  %v3777_v42 = vmul.f32 %v8482_v47, %v7224_v6 }
 0x653   : > { %6114 = vmatmul.msk.bf16.gmra.mxu2 %vm400_vm1, %v6448_v29  ;;  %6122 = vmatmul.msk.bf16.gmra.mxu3 %vm400_vm1, %v6448_v29 }
 0x663   : > { %6115 = vmatmul.msk.bf16.gmra.mxu2 %vm400_vm1, %v6449_v61  ;;  %6123 = vmatmul.msk.bf16.gmra.mxu3 %vm400_vm1, %v6449_v61  ;;  %v3778_v61 = vmul.f32 %v8484_v57, %v7226_v8 }
 0x673   : > { %6116 = vmatmul.msk.bf16.gmra.mxu2 %vm400_vm1, %v6450_v39  ;;  %6124 = vmatmul.msk.bf16.gmra.mxu3 %vm400_vm1, %v6450_v39 }
 0x683   : > { %6117 = vmatmul.msk.bf16.gmra.mxu2 %vm400_vm1, %v6451_v15  ;;  %6125 = vmatmul.msk.bf16.gmra.mxu3 %vm400_vm1, %v6451_v15 }
 0x696   : > { %v3630_v10 = vpop.f32.mrf.mxu2  ;;  %v3679_v40 = vpop.f32.mrf.mxu3 }
 0x697   : > { %v3735_v20 = vadd.f32 %v3727_v52, %v3630_v10  ;;  %v3736_v58 = vadd.f32 %v3728_v60, %v3679_v40  ;;  %v3731_v60 = vmul.f32 %v8495_v44, %v9578_v24 }
 0x699   : > { %v3743_v27 = vmul.f32 0.5, %v3735_v20  ;;  %v3744_v23 = vmul.f32 0.5, %v3736_v58 }
 0x69b   : > { %6799 = vtanh.f32 %v3743_v27 }
 0x69c   : > { %6801 = vtanh.f32 %v3744_v23  ;;  %v9596_v23 = vld [vmem:[#allocation14_spill] sm:$0xff] }
 0x69e   : > { %v3632_v26 = vpop.f32.mrf.mxu2  ;;  %v3681_v2 = vpop.f32.mrf.mxu3 }
 0x69f   : > { %v3737_v30 = vadd.f32 %v3729_v22, %v3632_v26  ;;  %v3738_v29 = vadd.f32 %v3730_v49, %v3681_v2  ;;  %v3780_v22 = vmul.f32 %v8497_v59, %v9596_v23 }
 0x6a1   : > { %v3745_v10 = vmul.f32 0.5, %v3737_v30  ;;  %v3746_v26 = vmul.f32 0.5, %v3738_v29  ;;  %v6800_v52 = vpop.eup %6799 }
 0x6a2   : > { %v6802_v20 = vpop.eup %6801 }
 0x6a3   : > { %v3760_v30 = vmul.f32 0.5, %v6802_v20 }
 0x6a6   : > { %v3635_v16 = vpop.f32.mrf.mxu2  ;;  %v3684_v25 = vpop.f32.mrf.mxu3 }
 0x6ae   : > { %v8691_v62 = vpop.f32.mrf.mxu2  ;;  %v8693_v48 = vpop.f32.mrf.mxu3 }
 0x6b6   : > { %v3640_v5 = vpop.f32.mrf.mxu2  ;;  %v3689_v11 = vpop.f32.mrf.mxu3 }
 0x6b7   : > { %v3783_v19 = vadd.f32 %v3775_v35, %v3640_v5  ;;  %v3784_v12 = vadd.f32 %v3776_v31, %v3689_v11  ;;  %v9594_v35 = vld [vmem:[#allocation11_spill] sm:$0xff]  ;;  %v9595_v31 = vld [vmem:[#allocation13_spill] sm:$0xff] }
 0x6b9   : > { %v3791_v18 = vmul.f32 0.5, %v3783_v19  ;;  %v3792_v28 = vmul.f32 0.5, %v3784_v12  ;;  %v3779_v19 = vmul.f32 %v8495_v44, %v9595_v31 }
 0x6bb   : > { %6803 = vtanh.f32 %v3791_v18  ;;  %v3759_v18 = vmul.f32 0.5, %v6800_v52 }
 0x6bc   : > { %6805 = vtanh.f32 %v3792_v28 }
 0x6bd   : > { %6807 = vtanh.f32 %v3745_v10 }
 0x6be   : > { %v3642_v43 = vpop.f32.mrf.mxu2  ;;  %v3691_v0 = vpop.f32.mrf.mxu3  ;;  %6809 = vtanh.f32 %v3746_v26 }
 0x6bf   : > { %v3785_v39 = vadd.f32 %v3777_v42, %v3642_v43  ;;  %v3786_v15 = vadd.f32 %v3778_v61, %v3691_v0  ;;  %v3732_v43 = vmul.f32 %v8497_v59, %v9594_v35  ;;  %v3739_v0 = vadd.f32 %v3731_v60, %v3635_v16  ;;  %v9597_v16 = vld [vmem:[#allocation12_spill] sm:$0xff] }
 0x6c1   : > { %v3793_v11 = vmul.f32 0.5, %v3785_v39  ;;  %v3794_v2 = vmul.f32 0.5, %v3786_v15  ;;  %v6804_v58 = vpop.eup %6803  ;;  %v3740_v27 = vadd.f32 %v3732_v43, %v3684_v25  ;;  %v3747_v61 = vmul.f32 0.5, %v3739_v0 }
 0x6c2   : > { %v6806_v12 = vpop.eup %6805  ;;  %v3733_v39 = vmul.f32 %v8507_v50, %v9597_v16  ;;  %v3807_v15 = vmul.f32 0.5, %v6804_v58  ;;  %v3768_v58 = vadd.f32 0.5, %v3760_v30  ;;  %v9600_v16 = vld [vmem:[#allocation17_spill] sm:$0xff] }
 0x6c3   : > { %6811 = vtanh.f32 %v3793_v11  ;;  %v3808_v10 = vmul.f32 0.5, %v6806_v12  ;;  %v6808_v25 = vpop.eup %6807  ;;  %v3748_v26 = vmul.f32 0.5, %v3740_v27  ;;  %v9598_v11 = vld [vmem:[#allocation16_spill] sm:$0xff]  ;;  %v3782_v27 = vmul.f32 %v8510_v36, %v9600_v16 }
 0x6c4   : > { %6813 = vtanh.f32 %v3794_v2  ;;  %v3734_v60 = vmul.f32 %v8510_v36, %v9598_v11  ;;  %v9599_v2 = vld [vmem:[#allocation15_spill] sm:$0xff]  ;;  %v6810_v52 = vpop.eup %6809  ;;  %v3815_v11 = vadd.f32 0.5, %v3807_v15  ;;  %v3761_v35 = vmul.f32 0.5, %v6808_v25 }
 0x6c5   : > { %6815 = vtanh.f32 %v3747_v61  ;;  %v3816_v31 = vadd.f32 0.5, %v3808_v10 }
 0x6c6   : > { %v3645_v41 = vpop.f32.mrf.mxu2  ;;  %v3694_v45 = vpop.f32.mrf.mxu3  ;;  %6817 = vtanh.f32 %v3748_v26  ;;  %v3769_v25 = vadd.f32 0.5, %v3761_v35 }
 0x6c7   : > { %v3787_v49 = vadd.f32 %v3779_v19, %v3645_v41  ;;  %v3788_v28 = vadd.f32 %v3780_v22, %v3694_v45  ;;  %v3781_v41 = vmul.f32 %v8507_v50, %v9599_v2  ;;  %v3741_v45 = vadd.f32 %v3733_v39, %v8691_v62 }
 0x6c8   : > { %v3767_v22 = vadd.f32 0.5, %v3759_v18  ;;  %v3762_v62 = vmul.f32 0.5, %v6810_v52  ;;  %v3824_v15 = vmul.f32 %v3816_v31, %v8474_v37 }
 0x6c9   : > { %v3795_v20 = vmul.f32 0.5, %v3787_v49  ;;  %v6812_v19 = vpop.eup %6811  ;;  %v3796_v12 = vmul.f32 0.5, %v3788_v28  ;;  %v3749_v49 = vmul.f32 0.5, %v3741_v45 }
 0x6ca   : > { %v6814_v23 = vpop.eup %6813  ;;  %v3809_v30 = vmul.f32 0.5, %v6812_v19 }
 0x6cb   : > { %6819 = vtanh.f32 %v3795_v20  ;;  %v3810_v28 = vmul.f32 0.5, %v6814_v23 }
 0x6cc   : > { %6821 = vtanh.f32 %v3796_v12  ;;  %v3817_v20 = vadd.f32 0.5, %v3809_v30 }
 0x6cd   : > { %6823 = vtanh.f32 %v3749_v49 }
 0x6ce   : > { %v8695_v34 = vpop.f32.mrf.mxu2  ;;  %v8697_v21 = vpop.f32.mrf.mxu3  ;;  %v3825_v19 = vmul.f32 %v3817_v20, %v8482_v47 }
 0x6cf   : > { %v3789_v2 = vadd.f32 %v3781_v41, %v8695_v34  ;;  %v3790_v39 = vadd.f32 %v3782_v27, %v8697_v21  ;;  %v3823_v34 = vmul.f32 %v3815_v11, %v8472_v63  ;;  %v3770_v21 = vadd.f32 0.5, %v3762_v62 }
 0x6d1   : > { %v3797_v10 = vmul.f32 0.5, %v3789_v2  ;;  %v3798_v63 = vmul.f32 0.5, %v3790_v39 }
 0x6d3   : > { %6825 = vtanh.f32 %v3797_v10 }
 0x6d6   : > { %v8707_v17 = vpop.f32.mrf.mxu2  ;;  %v8709_v7 = vpop.f32.mrf.mxu3 }
 0x6d7   : > { %v3831_v43 = vmax.f32 %v8707_v17, 0.0  ;;  %v3832_v0 = vmax.f32 %v8709_v7, 0.0  ;;  %v3742_v17 = vadd.f32 %v3734_v60, %v8693_v48  ;;  %v6816_v60 = vpop.eup %6815 }
 0x6d8   : > { %v6818_v45 = vpop.eup %6817 }
 0x6d9   : > { %v3839_v7 = vmul.f32 %v3831_v43, %v3767_v22  ;;  %v3840_v18 = vmul.f32 %v3832_v0, %v3768_v58  ;;  %v3750_v41 = vmul.f32 0.5, %v3742_v17  ;;  %v3818_v43 = vadd.f32 0.5, %v3810_v28  ;;  %v6820_v11 = vpop.eup %6819 }
 0x6da   : > { %v6822_v37 = vpop.eup %6821  ;;  %v3811_v0 = vmul.f32 0.5, %v6820_v11  ;;  %v3764_v27 = vmul.f32 0.5, %v6818_v45 }
 0x6db   : > { %v8757_v23 = vadd.f32 %v3839_v7, %v3823_v34  ;;  %v8759_v52 = vadd.f32 %v3840_v18, %v3824_v15  ;;  %6827 = vtanh.f32 %v3750_v41  ;;  %v3826_v22 = vmul.f32 %v3818_v43, %v8484_v57  ;;  %v6824_v7 = vpop.eup %6823 }
 0x6dc   : > { %6829 = vtanh.f32 %v3798_v63  ;;  %v3812_v62 = vmul.f32 0.5, %v6822_v37  ;;  %v6826_v28 = vpop.eup %6825  ;;  %v3819_v10 = vadd.f32 0.5, %v3811_v0  ;;  %v3765_v41 = vmul.f32 0.5, %v6824_v7 }
 0x6dd   : > { %v3856_v2 = vmul.f32 %v8759_v52, %v7290_v14 }
 0x6de   : > { %v8719_v40 = vpop.f32.mrf.mxu2  ;;  %v8721_v5 = vpop.f32.mrf.mxu3  ;;  %v3827_v63 = vmul.f32 %v3819_v10, %v8495_v44 }
 0x6df   : > { %v3833_v48 = vmax.f32 %v8719_v40, 0.0  ;;  %v3834_v26 = vmax.f32 %v8721_v5, 0.0  ;;  %v3763_v40 = vmul.f32 0.5, %v6816_v60  ;;  %v3855_v5 = vmul.f32 %v8757_v23, %v7288_v13 }
 0x6e1   : > { %v3841_v35 = vmul.f32 %v3833_v48, %v3769_v25  ;;  %v3842_v31 = vmul.f32 %v3834_v26, %v3770_v21  ;;  %v6828_v57 = vpop.eup %6827  ;;  %v3771_v25 = vadd.f32 0.5, %v3763_v40  ;;  %v3772_v48 = vadd.f32 0.5, %v3764_v27 }
 0x6e2   : > { %v3820_v26 = vadd.f32 0.5, %v3812_v62  ;;  %v6830_v60 = vpop.eup %6829  ;;  %v3813_v21 = vmul.f32 0.5, %v6826_v28 }
 0x6e3   : > { %v8767_v18 = vadd.f32 %v3841_v35, %v3825_v19  ;;  %v8769_v30 = vadd.f32 %v3842_v31, %v3826_v22  ;;  %v3814_v40 = vmul.f32 0.5, %v6830_v60  ;;  %v3773_v19 = vadd.f32 0.5, %v3765_v41 }
 0x6e4   : > { %v3828_v31 = vmul.f32 %v3820_v26, %v8497_v59  ;;  %v3821_v0 = vadd.f32 0.5, %v3813_v21 }
 0x6e5   : > { %v3857_v43 = vmul.f32 %v8767_v18, %v7296_v46  ;;  %v3822_v7 = vadd.f32 0.5, %v3814_v40 }
 0x6e6   : > { %v8731_v42 = vpop.f32.mrf.mxu2  ;;  %v8733_v29 = vpop.f32.mrf.mxu3 }
 0x6e7   : > { %v3835_v39 = vmax.f32 %v8731_v42, 0.0  ;;  %v3836_v34 = vmax.f32 %v8733_v29, 0.0  ;;  %v3858_v42 = vmul.f32 %v8769_v30, %v7302_v51  ;;  %v3766_v29 = vmul.f32 0.5, %v6828_v57 }
 0x6e9   : > { %v3843_v45 = vmul.f32 %v3835_v39, %v3771_v25  ;;  %v3844_v20 = vmul.f32 %v3836_v34, %v3772_v48  ;;  %v3774_v28 = vadd.f32 0.5, %v3766_v29  ;;  %v3829_v39 = vmul.f32 %v3821_v0, %v8507_v50 }
 0x6ea   : > { %v3830_v50 = vmul.f32 %v3822_v7, %v8510_v36 }
 0x6ee   : > { %v8749_v16 = vpop.f32.mrf.mxu2  ;;  %v8751_v61 = vpop.f32.mrf.mxu3 }
 0x6ef   : > { %v3837_v11 = vmax.f32 %v8749_v16, 0.0  ;;  %v3838_v27 = vmax.f32 %v8751_v61, 0.0 }
 0x6f1   : > { %v3846_v10 = vmul.f32 %v3838_v27, %v3774_v28 }
 0x6f6   : > { %v3660_v58 = vpop.f32.mrf.mxu2  ;;  %v3709_v12 = vpop.f32.mrf.mxu3 }
 0x6f7   : > { %v3863_v17 = vadd.f32 %v3855_v5, %v3660_v58  ;;  %v3864_v49 = vadd.f32 %v3856_v2, %v3709_v12  ;;  %v8780_v58 = vadd.f32 %v3843_v45, %v3827_v63  ;;  %v8782_v12 = vadd.f32 %v3844_v20, %v3828_v31 }
 0x6f9   : > { %v3871_v15 = vmul.f32 0.5, %v3863_v17  ;;  %v3872_v47 = vmul.f32 0.5, %v3864_v49  ;;  %v3845_v17 = vmul.f32 %v3837_v11, %v3773_v19  ;;  %v3859_v61 = vmul.f32 %v8780_v58, %v7312_v32 }
 0x6fa   : > { %v3860_v25 = vmul.f32 %v8782_v12, %v7314_v33  ;;  %v3905_v11 = vmax.f32 %v8767_v18, 0.0 }
 0x6fb   : > { %6831 = vtanh.f32 %v3871_v15  ;;  %v3903_v15 = vmax.f32 %v8757_v23, 0.0  ;;  %v8792_v48 = vadd.f32 %v3845_v17, %v3829_v39 }
 0x6fc   : > { %6833 = vtanh.f32 %v3872_v47  ;;  %v3904_v47 = vmax.f32 %v8759_v52, 0.0 }
 0x6fd   : > { %v3861_v40 = vmul.f32 %v8792_v48, %v7328_v3 }
 0x6fe   : > { %v3662_v37 = vpop.f32.mrf.mxu2  ;;  %v3711_v35 = vpop.f32.mrf.mxu3 }
 0x6ff   : > { %v3865_v5 = vadd.f32 %v3857_v43, %v3662_v37  ;;  %v3866_v2 = vadd.f32 %v3858_v42, %v3711_v35  ;;  %v8795_v42 = vadd.f32 %v3846_v10, %v3830_v50 }
 0x701   : > { %v6832_v22 = vpop.eup %6831  ;;  %v3873_v62 = vmul.f32 0.5, %v3865_v5  ;;  %v3874_v49 = vmul.f32 0.5, %v3866_v2 }
 0x702   : > { %v6834_v44 = vpop.eup %6833  ;;  %v3887_v16 = vmul.f32 0.5, %v6832_v22 }
 0x703   : > { %v3888_v59 = vmul.f32 0.5, %v6834_v44  ;;  %6835 = vtanh.f32 %v3873_v62 }
 0x704   : > { %v3895_v34 = vadd.f32 0.5, %v3887_v16  ;;  %6837 = vtanh.f32 %v3874_v49 }
 0x705   : > { %v3896_v57 = vadd.f32 0.5, %v3888_v59 }
 0x706   : > { %v3911_v26 = vmul.f32 %v3903_v15, %v3895_v34  ;;  %v3665_v60 = vpop.f32.mrf.mxu2  ;;  %v3714_v41 = vpop.f32.mrf.mxu3  ;;  %v3862_v15 = vmul.f32 %v8795_v42, %v7331_v9 }
 0x707   : > { %v3912_v21 = vmul.f32 %v3904_v47, %v3896_v57  ;;  %v3867_v45 = vadd.f32 %v3859_v61, %v3665_v60  ;;  %v3868_v20 = vadd.f32 %v3860_v25, %v3714_v41  ;;  %v3906_v41 = vmax.f32 %v8769_v30, 0.0 }
 0x709   : > { %v6836_v43 = vpop.eup %6835  ;;  %v3927_v29 = vpack.c.bf16 %v3912_v21, %v3911_v26  ;;  %v3943_v63 = vrot.slane %v3912_v21, 7  ;;  %v3875_v35 = vmul.f32 0.5, %v3867_v45  ;;  %v3876_v31 = vmul.f32 0.5, %v3868_v20 }
 0x70a   : > { %v3889_v37 = vmul.f32 0.5, %v6836_v43  ;;  %v6838_v19 = vpop.eup %6837 }
 0x70b   : > { %v3947_v5 = vsel %vm751_vm3, %v3911_v26, %v3943_v63  ;;  %v3948_v36 = vsel %vm753_vm4, %v3911_v26, %v3943_v63  ;;  %v3950_v2 = vsel %vm756_vm5, %v3911_v26, %v3943_v63  ;;  %v3952_v0 = vsel %vm759_vm6, %v3911_v26, %v3943_v63  ;;  %3931 = vst [vmem:[#allocation2 + $0x10] sm:$0xff] %v3927_v29 }
 0x70c   : > { %v3949_v22 = vrot.slane %v3948_v36, 1  ;;  %v3951_v27 = vrot.slane %v3950_v2, 2  ;;  %v3953_v62 = vrot.slane %v3952_v0, 3  ;;  %v3954_v44 = vsel %vm762_vm7, %v3911_v26, %v3943_v63  ;;  %6126 = vst.msk [vmem:[%s7353_s19 + $0x5] ss:$8 sm:$0x3] %vm7317_vm2, %v3947_v5 }
 0x70d   : > { %v3955_v17 = vrot.slane %v3954_v44, 4  ;;  %v3956_v16 = vsel %vm765_vm8, %v3911_v26, %v3943_v63  ;;  %v3958_v49 = vsel %vm768_vm9, %v3911_v26, %v3943_v63  ;;  %v3960_v7 = vsel %vm771_vm10, %v3943_v63, %v3911_v26 }
 0x70e   : > { %v3957_v28 = vrot.slane %v3956_v16, 5  ;;  %v3959_v59 = vrot.slane %v3958_v49, 6  ;;  %6127 = vst.msk [vmem:[%s7353_s19 + $0x15] ss:$8 sm:$0x3] %vm7317_vm2, %v3949_v22  ;;  %6839 = vtanh.f32 %v3875_v35  ;;  %v3667_v39 = vpop.f32.mrf.mxu2  ;;  %v3716_v34 = vpop.f32.mrf.mxu3  ;;  %v3897_v47 = vadd.f32 0.5, %v3889_v37 }
 0x70f   : > { %6128 = vst.msk [vmem:[%s7353_s19 + $0x25] ss:$8 sm:$0x3] %vm7317_vm2, %v3951_v27  ;;  %v3890_v10 = vmul.f32 0.5, %v6838_v19  ;;  %6841 = vtanh.f32 %v3876_v31  ;;  %v3869_v57 = vadd.f32 %v3861_v40, %v3667_v39  ;;  %v3961_v61 = vrot.slane %v3960_v7, 7 }
 0x710   : > { %6129 = vst.msk [vmem:[%s7353_s19 + $0x35] ss:$8 sm:$0x3] %vm7317_vm2, %v3953_v62  ;;  %v3870_v25 = vadd.f32 %v3862_v15, %v3716_v34  ;;  %v3913_v26 = vmul.f32 %v3905_v11, %v3897_v47  ;;  %v3907_v7 = vmax.f32 %v8780_v58, 0.0 }
 0x711   : > { %6130 = vst.msk [vmem:[%s7353_s19 + $0x45] ss:$8 sm:$0x3] %vm7317_vm2, %v3955_v17  ;;  %v3898_v60 = vadd.f32 0.5, %v3890_v10  ;;  %v3877_v50 = vmul.f32 0.5, %v3869_v57 }
 0x712   : > { %6131 = vst.msk [vmem:[%s7353_s19 + $0x55] ss:$8 sm:$0x3] %vm7317_vm2, %v3957_v28  ;;  %v3878_v21 = vmul.f32 0.5, %v3870_v25  ;;  %v3908_v28 = vmax.f32 %v8782_v12, 0.0 }
 0x713   : > { %6132 = vst.msk [vmem:[%s7353_s19 + $0x65] ss:$8 sm:$0x3] %vm7317_vm2, %v3959_v59  ;;  %v3914_v45 = vmul.f32 %v3906_v41, %v3898_v60  ;;  %6843 = vtanh.f32 %v3877_v50 }
 0x714   : > { %v6840_v20 = vpop.eup %6839  ;;  %6133 = vst.msk [vmem:[%s7353_s19 + $0x75] ss:$8 sm:$0x3] %vm7317_vm2, %v3961_v61  ;;  %6845 = vtanh.f32 %v3878_v21  ;;  %v3909_v21 = vmax.f32 %v8792_v48, 0.0 }
 0x715   : > { %v6842_v43 = vpop.eup %6841  ;;  %v3928_v29 = vpack.c.bf16 %v3914_v45, %v3913_v26  ;;  %v3944_v63 = vrot.slane %v3914_v45, 7  ;;  %v3891_v11 = vmul.f32 0.5, %v6840_v20 }
 0x716   : > { %v3892_v37 = vmul.f32 0.5, %v6842_v43 }
 0x717   : > { %v3962_v35 = vsel %vm751_vm3, %v3913_v26, %v3944_v63  ;;  %v3963_v31 = vsel %vm753_vm4, %v3913_v26, %v3944_v63  ;;  %v3965_v40 = vsel %vm756_vm5, %v3913_v26, %v3944_v63  ;;  %v3967_v5 = vsel %vm759_vm6, %v3913_v26, %v3944_v63  ;;  %3932 = vst [vmem:[#allocation2 + $0x18] sm:$0xff] %v3928_v29 }
 0x718   : > { %v3964_v36 = vrot.slane %v3963_v31, 1  ;;  %v3966_v2 = vrot.slane %v3965_v40, 2  ;;  %v3968_v0 = vrot.slane %v3967_v5, 3  ;;  %v3969_v19 = vsel %vm762_vm7, %v3913_v26, %v3944_v63  ;;  %6134 = vst.msk [vmem:[%s7353_s19 + $0x85] ss:$8 sm:$0x3] %vm7317_vm2, %v3962_v35 }
 0x719   : > { %v6844_v22 = vpop.eup %6843  ;;  %v3970_v27 = vrot.slane %v3969_v19, 4  ;;  %v3971_v62 = vsel %vm765_vm8, %v3913_v26, %v3944_v63  ;;  %v3973_v44 = vsel %vm768_vm9, %v3913_v26, %v3944_v63  ;;  %v3975_v17 = vsel %vm771_vm10, %v3944_v63, %v3913_v26 }
 0x71a   : > { %v6846_v16 = vpop.eup %6845  ;;  %v3972_v49 = vrot.slane %v3971_v62, 5  ;;  %6135 = vst.msk [vmem:[%s7353_s19 + $0x95] ss:$8 sm:$0x3] %vm7317_vm2, %v3964_v36  ;;  %v3974_v59 = vrot.slane %v3973_v44, 6  ;;  %v3899_v39 = vadd.f32 0.5, %v3891_v11 }
 0x71b   : > { %6136 = vst.msk [vmem:[%s7353_s19 + $0xa5] ss:$8 sm:$0x3] %vm7317_vm2, %v3966_v2  ;;  %v3900_v34 = vadd.f32 0.5, %v3892_v37  ;;  %v3976_v15 = vrot.slane %v3975_v17, 7  ;;  %v3893_v47 = vmul.f32 0.5, %v6844_v22 }
 0x71c   : > { %6137 = vst.msk [vmem:[%s7353_s19 + $0xb5] ss:$8 sm:$0x3] %vm7317_vm2, %v3968_v0  ;;  %v3894_v10 = vmul.f32 0.5, %v6846_v16  ;;  %v3915_v57 = vmul.f32 %v3907_v7, %v3899_v39  ;;  %v3910_v26 = vmax.f32 %v8795_v42, 0.0 }
 0x71d   : > { %6138 = vst.msk [vmem:[%s7353_s19 + $0xc5] ss:$8 sm:$0x3] %vm7317_vm2, %v3970_v27  ;;  %v3916_v61 = vmul.f32 %v3908_v28, %v3900_v34  ;;  %v3901_v50 = vadd.f32 0.5, %v3893_v47 }
 0x71e   : > { %6139 = vst.msk [vmem:[%s7353_s19 + $0xd5] ss:$8 sm:$0x3] %vm7317_vm2, %v3972_v49  ;;  %v3902_v25 = vadd.f32 0.5, %v3894_v10 }
 0x71f   : > { %6140 = vst.msk [vmem:[%s7353_s19 + $0xe5] ss:$8 sm:$0x3] %vm7317_vm2, %v3974_v59  ;;  %v3929_v60 = vpack.c.bf16 %v3916_v61, %v3915_v57  ;;  %v3945_v41 = vrot.slane %v3916_v61, 7  ;;  %v3917_v22 = vmul.f32 %v3909_v21, %v3901_v50  ;;  %v6466_v50 = vld [vmem:[#allocation2 + $0x4] sm:$0xf] }
 0x720   : > { %6141 = vst.msk [vmem:[%s7353_s19 + $0xf5] ss:$8 sm:$0x3] %vm7317_vm2, %v3976_v15  ;;  %v3918_v45 = vmul.f32 %v3910_v26, %v3902_v25 }
 0x721   : > { %v3977_v20 = vsel %vm751_vm3, %v3915_v57, %v3945_v41  ;;  %v3978_v43 = vsel %vm753_vm4, %v3915_v57, %v3945_v41  ;;  %v3980_v29 = vsel %vm756_vm5, %v3915_v57, %v3945_v41  ;;  %v3982_v63 = vsel %vm759_vm6, %v3915_v57, %v3945_v41  ;;  %3933 = vst [vmem:[#allocation2 + $0x20] sm:$0xff] %v3929_v60  ;;  %v4776_v60 = vld.sshfl [vmem:[#allocation1] sm:$0xff pattern:$0x75643120] }
 0x722   : > { %v3979_v11 = vrot.slane %v3978_v43, 1  ;;  %v3981_v37 = vrot.slane %v3980_v29, 2  ;;  %v3983_v35 = vrot.slane %v3982_v63, 3  ;;  %v3984_v31 = vsel %vm762_vm7, %v3915_v57, %v3945_v41  ;;  %6142 = vst.msk [vmem:[%s7353_s19 + $0x105] ss:$8 sm:$0x3] %vm7317_vm2, %v3977_v20 }
 0x723   : > { %v3985_v40 = vrot.slane %v3984_v31, 4  ;;  %v3986_v5 = vsel %vm765_vm8, %v3915_v57, %v3945_v41  ;;  %v3988_v36 = vsel %vm768_vm9, %v3915_v57, %v3945_v41  ;;  %v3990_v2 = vsel %vm771_vm10, %v3945_v41, %v3915_v57  ;;  %v6193_v41 = vld [vmem:[#allocation2] sm:$0xf]  ;;  %v6468_v31 = vld [vmem:[#allocation2 + $0x14] sm:$0xf] }
 0x724   : > { %v3987_v0 = vrot.slane %v3986_v5, 5  ;;  %6143 = vst.msk [vmem:[%s7353_s19 + $0x115] ss:$8 sm:$0x3] %vm7317_vm2, %v3979_v11  ;;  %v3989_v19 = vrot.slane %v3988_v36, 6  ;;  %v3946_v27 = vrot.slane %v3918_v45, 7  ;;  %v3930_v26 = vpack.c.bf16 %v3918_v45, %v3917_v22 }
 0x725   : > { %6144 = vst.msk [vmem:[%s7353_s19 + $0x125] ss:$8 sm:$0x3] %vm7317_vm2, %v3981_v37  ;;  %v3991_v62 = vrot.slane %v3990_v2, 7  ;;  %v6469_v11 = vld [vmem:[#allocation2 + $0x14] sm:$0xf0] }
 0x726   : > { %6145 = vst.msk [vmem:[%s7353_s19 + $0x135] ss:$8 sm:$0x3] %vm7317_vm2, %v3983_v35  ;;  %v3993_v44 = vsel %vm753_vm4, %v3917_v22, %v3946_v27  ;;  %v3995_v17 = vsel %vm756_vm5, %v3917_v22, %v3946_v27  ;;  %v3997_v16 = vsel %vm759_vm6, %v3917_v22, %v3946_v27  ;;  %v3992_v49 = vsel %vm751_vm3, %v3917_v22, %v3946_v27  ;;  %v6203_v37 = vld [vmem:[#allocation2 + $0x18] sm:$0xf0] }
 0x727   : > { %6146 = vst.msk [vmem:[%s7353_s19 + $0x145] ss:$8 sm:$0x3] %vm7317_vm2, %v3985_v40  ;;  %v3994_v7 = vrot.slane %v3993_v44, 1  ;;  %v3999_v28 = vsel %vm762_vm7, %v3917_v22, %v3946_v27  ;;  %v3996_v59 = vrot.slane %v3995_v17, 2  ;;  %v4001_v39 = vsel %vm765_vm8, %v3917_v22, %v3946_v27  ;;  %v6461_v44 = vld [vmem:[%s9543_s1 + $0x18] sm:$0xff] }
 0x728   : > { %6147 = vst.msk [vmem:[%s7353_s19 + $0x155] ss:$8 sm:$0x3] %vm7317_vm2, %v3987_v0  ;;  %v3998_v34 = vrot.slane %v3997_v16, 3  ;;  %v4003_v15 = vsel %vm768_vm9, %v3917_v22, %v3946_v27  ;;  %v4000_v47 = vrot.slane %v3999_v28, 4  ;;  %v4005_v10 = vsel %vm771_vm10, %v3946_v27, %v3917_v22  ;;  %v6458_v22 = vld [vmem:[%s9543_s1] sm:$0xff] }
 0x729   : > { %6148 = vst.msk [vmem:[%s7353_s19 + $0x165] ss:$8 sm:$0x3] %vm7317_vm2, %v3989_v19  ;;  %v4002_v57 = vrot.slane %v4001_v39, 5  ;;  %v4004_v61 = vrot.slane %v4003_v15, 6  ;;  %v4006_v25 = vrot.slane %v4005_v10, 7  ;;  %v6206_v2 = vor.u32 %v6468_v31, %v6203_v37 }
 0x72a   : > { %6149 = vst.msk [vmem:[%s7353_s19 + $0x175] ss:$8 sm:$0x3] %vm7317_vm2, %v3991_v62  ;;  %v6209_v21 = vld [vmem:[#allocation2 + $0x20] sm:$0xf]  ;;  %v6460_v62 = vld [vmem:[%s9543_s1 + $0x10] sm:$0xff]  ;;  %v4413_v37 = vmul.f32 %v8759_v52, %v7210_v56 }
 0x72b   : > { %6150 = vst.msk [vmem:[%s7353_s19 + $0x185] ss:$8 sm:$0x3] %vm7317_vm2, %v3992_v49  ;;  %v6470_v45 = vld [vmem:[#allocation2 + $0x24] sm:$0xf]  ;;  %v6462_v17 = vld [vmem:[%s9543_s1 + $0x20] sm:$0xff] }
 0x72c   : > { %6151 = vst.msk [vmem:[%s7353_s19 + $0x195] ss:$8 sm:$0x3] %vm7317_vm2, %v3994_v7  ;;  %v6201_v35 = vld [vmem:[#allocation2 + $0x10] sm:$0xf]  ;;  %v6459_v27 = vld [vmem:[%s9543_s1 + $0x8] sm:$0xff] }
 0x72d   : > { %6152 = vst.msk [vmem:[%s7353_s19 + $0x1a5] ss:$8 sm:$0x3] %vm7317_vm2, %v3996_v59  ;;  %v6467_v40 = vld [vmem:[#allocation2 + $0x4] sm:$0xf0]  ;;  %v6202_v36 = vor.u32 %v6469_v11, %v6201_v35  ;;  %v6463_v16 = vld [vmem:[%s9543_s1 + $0x28] sm:$0xff] }
 0x72e   : > { %6153 = vst.msk [vmem:[%s7353_s19 + $0x1b5] ss:$8 sm:$0x3] %vm7317_vm2, %v3998_v34  ;;  %v6195_v5 = vld [vmem:[#allocation2 + $0x8] sm:$0xf0]  ;;  %v6194_v0 = vor.u32 %v6467_v40, %v6193_v41  ;;  %v6465_v7 = vld [vmem:[%s9543_s1 + $0x38] sm:$0xff] }
 0x72f   : > { %6154 = vst.msk [vmem:[%s7353_s19 + $0x1c5] ss:$8 sm:$0x3] %vm7317_vm2, %v4000_v47  ;;  %v6198_v19 = vor.u32 %v6466_v50, %v6195_v5  ;;  %v6464_v49 = vld [vmem:[%s9543_s1 + $0x30] sm:$0xff] }
 0x730   : > { %6155 = vst.msk [vmem:[%s7353_s19 + $0x1d5] ss:$8 sm:$0x3] %vm7317_vm2, %v4002_v57 }
 0x731   : > { %6156 = vst.msk [vmem:[%s7353_s19 + $0x1e5] ss:$8 sm:$0x3] %vm7317_vm2, %v4004_v61 }
 0x732   : > { %6157 = vst.msk [vmem:[%s7353_s19 + $0x1f5] ss:$8 sm:$0x3] %vm7317_vm2, %v4006_v25 }
 0x733   : > { %3934 = vst [vmem:[#allocation2 + $0x28] sm:$0xff] %v3930_v26 }
 0x734   : > { %4778 = vst [vmem:[#allocation2] sm:$0x33] %v4776_v60 }
 0x73a   : > { %v6471_v20 = vld [vmem:[#allocation2 + $0x24] sm:$0xf0]  ;;  %v6211_v43 = vld [vmem:[#allocation2 + $0x28] sm:$0xf0] }
 0x73b   : > { %v6210_v29 = vor.u32 %v6471_v20, %v6209_v21  ;;  %v6214_v63 = vor.u32 %v6470_v45, %v6211_v43  ;;  %v4364_v45 = vmul.f32 %v8757_v23, %v7204_v53  ;;  %v4365_v43 = vmul.f32 %v8759_v52, %v7206_v54 }
 0x73d   : > { %4263 = vmatpush.bf16.msrb.mxu0 %v6210_v29  ;;  %4312 = vmatpush.bf16.msrb.mxu1 %v6214_v63  ;;  %v4412_v63 = vmul.f32 %v8757_v23, %v7208_v55 }
 0x741   : > { %4264 = vmatpush.bf16.msrb.mxu0 %v6202_v36  ;;  %4313 = vmatpush.bf16.msrb.mxu1 %v6206_v2 }
 0x745   : > { %4265 = vmatpush.bf16.msrb.mxu0 %v6194_v0  ;;  %4314 = vmatpush.bf16.msrb.mxu1 %v6198_v19  ;;  %v4366_v0 = vmul.f32 %v8767_v18, %v7219_v1  ;;  %v4367_v19 = vmul.f32 %v8769_v30, %v7222_v4 }
 0x748   : > { %6215 = vmatmul.msk.bf16.vlgmr.msrb.gmra.mxu0 %vm400_vm1, %v6458_v22  ;;  %6223 = vmatmul.msk.bf16.vlgmr.msrb.gmra.mxu1 %vm400_vm1, %v6458_v22 }
 0x758   : > { %6216 = vmatmul.msk.bf16.gmra.mxu0 %vm400_vm1, %v6459_v27  ;;  %6224 = vmatmul.msk.bf16.gmra.mxu1 %vm400_vm1, %v6459_v27 }
 0x768   : > { %6217 = vmatmul.msk.bf16.gmra.mxu0 %vm400_vm1, %v6460_v62  ;;  %6225 = vmatmul.msk.bf16.gmra.mxu1 %vm400_vm1, %v6460_v62 }
 0x778   : > { %6218 = vmatmul.msk.bf16.gmra.mxu0 %vm400_vm1, %v6461_v44  ;;  %6226 = vmatmul.msk.bf16.gmra.mxu1 %vm400_vm1, %v6461_v44  ;;  %v4414_v44 = vmul.f32 %v8767_v18, %v7224_v6 }
 0x788   : > { %6219 = vmatmul.msk.bf16.gmra.mxu0 %vm400_vm1, %v6462_v17  ;;  %6227 = vmatmul.msk.bf16.gmra.mxu1 %vm400_vm1, %v6462_v17 }
 0x798   : > { %6220 = vmatmul.msk.bf16.gmra.mxu0 %vm400_vm1, %v6463_v16  ;;  %6228 = vmatmul.msk.bf16.gmra.mxu1 %vm400_vm1, %v6463_v16  ;;  %v4415_v16 = vmul.f32 %v8769_v30, %v7226_v8 }
 0x7a8   : > { %6221 = vmatmul.msk.bf16.gmra.mxu0 %vm400_vm1, %v6464_v49  ;;  %6229 = vmatmul.msk.bf16.gmra.mxu1 %vm400_vm1, %v6464_v49 }
 0x7b8   : > { %6222 = vmatmul.msk.bf16.gmra.mxu0 %vm400_vm1, %v6465_v7  ;;  %6230 = vmatmul.msk.bf16.gmra.mxu1 %vm400_vm1, %v6465_v7 }
 0x7c5   : > { %v4267_v28 = vpop.f32.mrf.mxu0  ;;  %v4316_v59 = vpop.f32.mrf.mxu1 }
 0x7c6   : > { %v4372_v29 = vadd.f32 %v4364_v45, %v4267_v28  ;;  %v4373_v11 = vadd.f32 %v4365_v43, %v4316_v59  ;;  %v4368_v43 = vmul.f32 %v8780_v58, %v9578_v24 }
 0x7c8   : > { %v4380_v36 = vmul.f32 0.5, %v4372_v29  ;;  %v4381_v2 = vmul.f32 0.5, %v4373_v11 }
 0x7ca   : > { %6847 = vtanh.f32 %v4380_v36 }
 0x7cb   : > { %6849 = vtanh.f32 %v4381_v2  ;;  %v9603_v2 = vld [vmem:[#allocation14_spill] sm:$0xff] }
 0x7cd   : > { %v4269_v39 = vpop.f32.mrf.mxu0  ;;  %v4318_v34 = vpop.f32.mrf.mxu1 }
 0x7ce   : > { %v4374_v27 = vadd.f32 %v4366_v0, %v4269_v39  ;;  %v4375_v17 = vadd.f32 %v4367_v19, %v4318_v34  ;;  %v4417_v0 = vmul.f32 %v8782_v12, %v9603_v2 }
 0x7d0   : > { %v4382_v28 = vmul.f32 0.5, %v4374_v27  ;;  %v4383_v39 = vmul.f32 0.5, %v4375_v17  ;;  %v6848_v45 = vpop.eup %6847 }
 0x7d1   : > { %v6850_v29 = vpop.eup %6849 }
 0x7d2   : > { %v4397_v27 = vmul.f32 0.5, %v6850_v29 }
 0x7d5   : > { %v4272_v15 = vpop.f32.mrf.mxu0  ;;  %v4321_v47 = vpop.f32.mrf.mxu1 }
 0x7dd   : > { %v8975_v10 = vpop.f32.mrf.mxu0  ;;  %v8977_v57 = vpop.f32.mrf.mxu1 }
 0x7e5   : > { %v4277_v61 = vpop.f32.mrf.mxu0  ;;  %v4326_v25 = vpop.f32.mrf.mxu1 }
 0x7e6   : > { %v4420_v35 = vadd.f32 %v4412_v63, %v4277_v61  ;;  %v4421_v31 = vadd.f32 %v4413_v37, %v4326_v25  ;;  %v9601_v63 = vld [vmem:[#allocation11_spill] sm:$0xff]  ;;  %v9602_v37 = vld [vmem:[#allocation13_spill] sm:$0xff] }
 0x7e8   : > { %v4428_v22 = vmul.f32 0.5, %v4420_v35  ;;  %v4429_v62 = vmul.f32 0.5, %v4421_v31  ;;  %v4416_v35 = vmul.f32 %v8780_v58, %v9602_v37 }
 0x7ea   : > { %6851 = vtanh.f32 %v4428_v22  ;;  %v4396_v22 = vmul.f32 0.5, %v6848_v45 }
 0x7eb   : > { %6853 = vtanh.f32 %v4429_v62 }
 0x7ec   : > { %6855 = vtanh.f32 %v4382_v28 }
 0x7ed   : > { %v4279_v26 = vpop.f32.mrf.mxu0  ;;  %v4328_v60 = vpop.f32.mrf.mxu1  ;;  %6857 = vtanh.f32 %v4383_v39 }
 0x7ee   : > { %v4422_v49 = vadd.f32 %v4414_v44, %v4279_v26  ;;  %v4423_v7 = vadd.f32 %v4415_v16, %v4328_v60  ;;  %v4369_v26 = vmul.f32 %v8782_v12, %v9601_v63  ;;  %v4376_v60 = vadd.f32 %v4368_v43, %v4272_v15  ;;  %v9604_v15 = vld [vmem:[#allocation12_spill] sm:$0xff] }
 0x7f0   : > { %v4430_v25 = vmul.f32 0.5, %v4422_v49  ;;  %v4431_v34 = vmul.f32 0.5, %v4423_v7  ;;  %v6852_v11 = vpop.eup %6851  ;;  %v4377_v36 = vadd.f32 %v4369_v26, %v4321_v47  ;;  %v4384_v16 = vmul.f32 0.5, %v4376_v60 }
 0x7f1   : > { %v6854_v31 = vpop.eup %6853  ;;  %v4370_v49 = vmul.f32 %v8792_v48, %v9604_v15  ;;  %v4444_v7 = vmul.f32 0.5, %v6852_v11  ;;  %v4405_v11 = vadd.f32 0.5, %v4397_v27  ;;  %v9607_v15 = vld [vmem:[#allocation17_spill] sm:$0xff] }
 0x7f2   : > { %6859 = vtanh.f32 %v4430_v25  ;;  %v4445_v28 = vmul.f32 0.5, %v6854_v31  ;;  %v6856_v47 = vpop.eup %6855  ;;  %v4385_v39 = vmul.f32 0.5, %v4377_v36  ;;  %v9605_v25 = vld [vmem:[#allocation16_spill] sm:$0xff]  ;;  %v4419_v36 = vmul.f32 %v8795_v42, %v9607_v15 }
 0x7f3   : > { %6861 = vtanh.f32 %v4431_v34  ;;  %v4371_v43 = vmul.f32 %v8795_v42, %v9605_v25  ;;  %v9606_v34 = vld [vmem:[#allocation15_spill] sm:$0xff]  ;;  %v6858_v45 = vpop.eup %6857  ;;  %v4452_v25 = vadd.f32 0.5, %v4444_v7  ;;  %v4398_v63 = vmul.f32 0.5, %v6856_v47 }
 0x7f4   : > { %6863 = vtanh.f32 %v4384_v16  ;;  %v4453_v37 = vadd.f32 0.5, %v4445_v28 }
 0x7f5   : > { %v4282_v41 = vpop.f32.mrf.mxu0  ;;  %v4331_v50 = vpop.f32.mrf.mxu1  ;;  %6865 = vtanh.f32 %v4385_v39  ;;  %v4406_v47 = vadd.f32 0.5, %v4398_v63 }
 0x7f6   : > { %v4424_v19 = vadd.f32 %v4416_v35, %v4282_v41  ;;  %v4425_v62 = vadd.f32 %v4417_v0, %v4331_v50  ;;  %v4418_v41 = vmul.f32 %v8792_v48, %v9606_v34  ;;  %v4378_v50 = vadd.f32 %v4370_v49, %v8975_v10 }
 0x7f7   : > { %v4404_v0 = vadd.f32 0.5, %v4396_v22  ;;  %v4399_v10 = vmul.f32 0.5, %v6858_v45  ;;  %v4461_v7 = vmul.f32 %v4453_v37, %v8759_v52 }
 0x7f8   : > { %v4432_v29 = vmul.f32 0.5, %v4424_v19  ;;  %v6860_v35 = vpop.eup %6859  ;;  %v4433_v31 = vmul.f32 0.5, %v4425_v62  ;;  %v4386_v19 = vmul.f32 0.5, %v4378_v50 }
 0x7f9   : > { %v6862_v2 = vpop.eup %6861  ;;  %v4446_v27 = vmul.f32 0.5, %v6860_v35 }
 0x7fa   : > { %6867 = vtanh.f32 %v4432_v29  ;;  %v4447_v62 = vmul.f32 0.5, %v6862_v2 }
 0x7fb   : > { %6869 = vtanh.f32 %v4433_v31  ;;  %v4454_v29 = vadd.f32 0.5, %v4446_v27 }
 0x7fc   : > { %6871 = vtanh.f32 %v4386_v19 }
 0x7fd   : > { %v8979_v21 = vpop.f32.mrf.mxu0  ;;  %v8981_v20 = vpop.f32.mrf.mxu1 }
 0x7fe   : > { %v4426_v34 = vadd.f32 %v4418_v41, %v8979_v21  ;;  %v4427_v49 = vadd.f32 %v4419_v36, %v8981_v20  ;;  %v4460_v21 = vmul.f32 %v4452_v25, %v8757_v23  ;;  %v4407_v41 = vadd.f32 0.5, %v4399_v10 }
 0x800   : > { %v4434_v28 = vmul.f32 0.5, %v4426_v34  ;;  %v4435_v23 = vmul.f32 0.5, %v4427_v49 }
 0x802   : > { %6873 = vtanh.f32 %v4434_v28 }
 0x805   : > { %v8991_v40 = vpop.f32.mrf.mxu0  ;;  %v8993_v5 = vpop.f32.mrf.mxu1 }
 0x806   : > { %v4468_v26 = vmax.f32 %v8991_v40, 0.0  ;;  %v4469_v60 = vmax.f32 %v8993_v5, 0.0  ;;  %v4379_v40 = vadd.f32 %v4371_v43, %v8977_v57  ;;  %v6864_v43 = vpop.eup %6863 }
 0x807   : > { %v6866_v50 = vpop.eup %6865 }
 0x808   : > { %v4476_v5 = vmul.f32 %v4468_v26, %v4404_v0  ;;  %v4477_v22 = vmul.f32 %v4469_v60, %v4405_v11  ;;  %v4387_v2 = vmul.f32 0.5, %v4379_v40  ;;  %v4455_v26 = vadd.f32 0.5, %v4447_v62  ;;  %v6868_v25 = vpop.eup %6867 }
 0x809   : > { %v6870_v52 = vpop.eup %6869  ;;  %v4462_v60 = vmul.f32 %v4454_v29, %v8767_v18  ;;  %v4448_v0 = vmul.f32 0.5, %v6868_v25  ;;  %v4401_v36 = vmul.f32 0.5, %v6866_v50 }
 0x80a   : > { %v9041_v45 = vadd.f32 %v4476_v5, %v4460_v21  ;;  %v9043_v20 = vadd.f32 %v4477_v22, %v4461_v7  ;;  %6875 = vtanh.f32 %v4387_v2  ;;  %v4463_v35 = vmul.f32 %v4455_v26, %v8769_v30  ;;  %v6872_v5 = vpop.eup %6871 }
 0x80b   : > { %6877 = vtanh.f32 %v4435_v23  ;;  %v4449_v10 = vmul.f32 0.5, %v6870_v52  ;;  %v6874_v62 = vpop.eup %6873  ;;  %v4456_v7 = vadd.f32 0.5, %v4448_v0 }
 0x80c   : > { %v4493_v34 = vmul.f32 %v9043_v20, %v7290_v14  ;;  %v4450_v2 = vmul.f32 0.5, %v6874_v62 }
 0x80d   : > { %v9003_v59 = vpop.f32.mrf.mxu0  ;;  %v9005_v61 = vpop.f32.mrf.mxu1  ;;  %v4464_v23 = vmul.f32 %v4456_v7, %v8780_v58 }
 0x80e   : > { %v4470_v57 = vmax.f32 %v9003_v59, 0.0  ;;  %v4471_v39 = vmax.f32 %v9005_v61, 0.0  ;;  %v4400_v59 = vmul.f32 0.5, %v6864_v43  ;;  %v4492_v61 = vmul.f32 %v9041_v45, %v7288_v13 }
 0x810   : > { %v4478_v63 = vmul.f32 %v4470_v57, %v4406_v47  ;;  %v4479_v37 = vmul.f32 %v4471_v39, %v4407_v41  ;;  %v6876_v28 = vpop.eup %6875  ;;  %v4408_v47 = vadd.f32 0.5, %v4400_v59  ;;  %v4409_v57 = vadd.f32 0.5, %v4401_v36 }
 0x811   : > { %v4457_v39 = vadd.f32 0.5, %v4449_v10  ;;  %v6878_v43 = vpop.eup %6877  ;;  %v4402_v41 = vmul.f32 0.5, %v6872_v5 }
 0x812   : > { %v9051_v22 = vadd.f32 %v4478_v63, %v4462_v60  ;;  %v9053_v27 = vadd.f32 %v4479_v37, %v4463_v35  ;;  %v4451_v59 = vmul.f32 0.5, %v6878_v43  ;;  %v4458_v35 = vadd.f32 0.5, %v4450_v2 }
 0x813   : > { %v4465_v37 = vmul.f32 %v4457_v39, %v8782_v12  ;;  %v4410_v60 = vadd.f32 0.5, %v4402_v41 }
 0x814   : > { %v4494_v26 = vmul.f32 %v9051_v22, %v7296_v46  ;;  %v4459_v62 = vadd.f32 0.5, %v4451_v59 }
 0x815   : > { %v9015_v44 = vpop.f32.mrf.mxu0  ;;  %v9017_v17 = vpop.f32.mrf.mxu1 }
 0x816   : > { %v4472_v49 = vmax.f32 %v9015_v44, 0.0  ;;  %v4473_v18 = vmax.f32 %v9017_v17, 0.0  ;;  %v4495_v44 = vmul.f32 %v9053_v27, %v7302_v51  ;;  %v4403_v17 = vmul.f32 0.5, %v6876_v28 }
 0x818   : > { %v4480_v50 = vmul.f32 %v4472_v49, %v4408_v47  ;;  %v4481_v29 = vmul.f32 %v4473_v18, %v4409_v57  ;;  %v4411_v5 = vadd.f32 0.5, %v4403_v17  ;;  %v4466_v49 = vmul.f32 %v4458_v35, %v8792_v48 }
 0x819   : > { %v4467_v48 = vmul.f32 %v4459_v62, %v8795_v42 }
 0x81d   : > { %v9033_v15 = vpop.f32.mrf.mxu0  ;;  %v9035_v16 = vpop.f32.mrf.mxu1 }
 0x81e   : > { %v4474_v25 = vmax.f32 %v9033_v15, 0.0  ;;  %v4475_v36 = vmax.f32 %v9035_v16, 0.0 }
 0x820   : > { %v4483_v7 = vmul.f32 %v4475_v36, %v4411_v5 }
 0x825   : > { %v4297_v11 = vpop.f32.mrf.mxu0  ;;  %v4346_v31 = vpop.f32.mrf.mxu1 }
 0x826   : > { %v4500_v40 = vadd.f32 %v4492_v61, %v4297_v11  ;;  %v4501_v19 = vadd.f32 %v4493_v34, %v4346_v31  ;;  %v9064_v11 = vadd.f32 %v4480_v50, %v4464_v23  ;;  %v9066_v31 = vadd.f32 %v4481_v29, %v4465_v37 }
 0x828   : > { %v4508_v21 = vmul.f32 0.5, %v4500_v40  ;;  %v4509_v30 = vmul.f32 0.5, %v4501_v19  ;;  %v4482_v40 = vmul.f32 %v4474_v25, %v4410_v60  ;;  %v4496_v16 = vmul.f32 %v9064_v11, %v7312_v32 }
 0x829   : > { %v4497_v47 = vmul.f32 %v9066_v31, %v7314_v33  ;;  %v4542_v25 = vmax.f32 %v9051_v22, 0.0 }
 0x82a   : > { %6879 = vtanh.f32 %v4508_v21  ;;  %v4540_v21 = vmax.f32 %v9041_v45, 0.0  ;;  %v9076_v57 = vadd.f32 %v4482_v40, %v4466_v49 }
 0x82b   : > { %6881 = vtanh.f32 %v4509_v30  ;;  %v4541_v30 = vmax.f32 %v9043_v20, 0.0 }
 0x82c   : > { %v4498_v59 = vmul.f32 %v9076_v57, %v7328_v3 }
 0x82d   : > { %v4299_v52 = vpop.f32.mrf.mxu0  ;;  %v4348_v63 = vpop.f32.mrf.mxu1 }
 0x82e   : > { %v4502_v61 = vadd.f32 %v4494_v26, %v4299_v52  ;;  %v4503_v34 = vadd.f32 %v4495_v44, %v4348_v63  ;;  %v9079_v44 = vadd.f32 %v4483_v7, %v4467_v48 }
 0x830   : > { %v6880_v0 = vpop.eup %6879  ;;  %v4510_v10 = vmul.f32 0.5, %v4502_v61  ;;  %v4511_v19 = vmul.f32 0.5, %v4503_v34 }
 0x831   : > { %v6882_v58 = vpop.eup %6881  ;;  %v4524_v15 = vmul.f32 0.5, %v6880_v0 }
 0x832   : > { %v4525_v12 = vmul.f32 0.5, %v6882_v58  ;;  %6883 = vtanh.f32 %v4510_v10 }
 0x833   : > { %v4532_v18 = vadd.f32 0.5, %v4524_v15  ;;  %6885 = vtanh.f32 %v4511_v19 }
 0x834   : > { %v4533_v28 = vadd.f32 0.5, %v4525_v12 }
 0x835   : > { %v4548_v39 = vmul.f32 %v4540_v21, %v4532_v18  ;;  %v4302_v43 = vpop.f32.mrf.mxu0  ;;  %v4351_v41 = vpop.f32.mrf.mxu1  ;;  %v4499_v21 = vmul.f32 %v9079_v44, %v7331_v9 }
 0x836   : > { %v4549_v2 = vmul.f32 %v4541_v30, %v4533_v28  ;;  %v4504_v50 = vadd.f32 %v4496_v16, %v4302_v43  ;;  %v4505_v29 = vadd.f32 %v4497_v47, %v4351_v41  ;;  %v4543_v41 = vmax.f32 %v9053_v27, 0.0 }
 0x838   : > { %v6884_v26 = vpop.eup %6883  ;;  %v4564_v17 = vpack.c.bf16 %v4549_v2, %v4548_v39  ;;  %v4580_v23 = vrot.slane %v4549_v2, 7  ;;  %v4512_v63 = vmul.f32 0.5, %v4504_v50  ;;  %v4513_v37 = vmul.f32 0.5, %v4505_v29 }
 0x839   : > { %v4526_v52 = vmul.f32 0.5, %v6884_v26  ;;  %v6886_v35 = vpop.eup %6885 }
 0x83a   : > { %v4584_v61 = vsel %vm751_vm3, %v4548_v39, %v4580_v23  ;;  %v4585_v42 = vsel %vm753_vm4, %v4548_v39, %v4580_v23  ;;  %v4587_v34 = vsel %vm756_vm5, %v4548_v39, %v4580_v23  ;;  %v4589_v60 = vsel %vm759_vm6, %v4548_v39, %v4580_v23  ;;  %4568 = vst [vmem:[#allocation2 + $0x10] sm:$0xff] %v4564_v17 }
 0x83b   : > { %v4586_v0 = vrot.slane %v4585_v42, 1  ;;  %v4588_v36 = vrot.slane %v4587_v34, 2  ;;  %v4590_v10 = vrot.slane %v4589_v60, 3  ;;  %v4591_v58 = vsel %vm762_vm7, %v4548_v39, %v4580_v23  ;;  %6231 = vst.msk [vmem:[%s7353_s19 + $0x6] ss:$8 sm:$0x3] %vm7317_vm2, %v4584_v61 }
 0x83c   : > { %v4592_v40 = vrot.slane %v4591_v58, 4  ;;  %v4593_v15 = vsel %vm765_vm8, %v4548_v39, %v4580_v23  ;;  %v4595_v19 = vsel %vm768_vm9, %v4548_v39, %v4580_v23  ;;  %v4597_v5 = vsel %vm771_vm10, %v4580_v23, %v4548_v39 }
 0x83d   : > { %v4594_v62 = vrot.slane %v4593_v15, 5  ;;  %v4596_v12 = vrot.slane %v4595_v19, 6  ;;  %6232 = vst.msk [vmem:[%s7353_s19 + $0x16] ss:$8 sm:$0x3] %vm7317_vm2, %v4586_v0  ;;  %6887 = vtanh.f32 %v4512_v63  ;;  %v4304_v49 = vpop.f32.mrf.mxu0  ;;  %v4353_v18 = vpop.f32.mrf.mxu1  ;;  %v4534_v30 = vadd.f32 0.5, %v4526_v52 }
 0x83e   : > { %6233 = vst.msk [vmem:[%s7353_s19 + $0x26] ss:$8 sm:$0x3] %vm7317_vm2, %v4588_v36  ;;  %v4527_v7 = vmul.f32 0.5, %v6886_v35  ;;  %6889 = vtanh.f32 %v4513_v37  ;;  %v4506_v28 = vadd.f32 %v4498_v59, %v4304_v49  ;;  %v4598_v16 = vrot.slane %v4597_v5, 7 }
 0x83f   : > { %6234 = vst.msk [vmem:[%s7353_s19 + $0x36] ss:$8 sm:$0x3] %vm7317_vm2, %v4590_v10  ;;  %v4507_v47 = vadd.f32 %v4499_v21, %v4353_v18  ;;  %v4550_v39 = vmul.f32 %v4542_v25, %v4534_v30  ;;  %v4544_v5 = vmax.f32 %v9064_v11, 0.0 }
 0x840   : > { %6235 = vst.msk [vmem:[%s7353_s19 + $0x46] ss:$8 sm:$0x3] %vm7317_vm2, %v4592_v40  ;;  %v4535_v43 = vadd.f32 0.5, %v4527_v7  ;;  %v4514_v48 = vmul.f32 0.5, %v4506_v28 }
 0x841   : > { %6236 = vst.msk [vmem:[%s7353_s19 + $0x56] ss:$8 sm:$0x3] %vm7317_vm2, %v4594_v62  ;;  %v4515_v2 = vmul.f32 0.5, %v4507_v47  ;;  %v4545_v62 = vmax.f32 %v9066_v31, 0.0 }
 0x842   : > { %6237 = vst.msk [vmem:[%s7353_s19 + $0x66] ss:$8 sm:$0x3] %vm7317_vm2, %v4596_v12  ;;  %v4551_v50 = vmul.f32 %v4543_v41, %v4535_v43  ;;  %6891 = vtanh.f32 %v4514_v48 }
 0x843   : > { %v6888_v29 = vpop.eup %6887  ;;  %6238 = vst.msk [vmem:[%s7353_s19 + $0x76] ss:$8 sm:$0x3] %vm7317_vm2, %v4598_v16  ;;  %6893 = vtanh.f32 %v4515_v2  ;;  %v4546_v2 = vmax.f32 %v9076_v57, 0.0 }
 0x844   : > { %v6890_v26 = vpop.eup %6889  ;;  %v4565_v17 = vpack.c.bf16 %v4551_v50, %v4550_v39  ;;  %v4581_v23 = vrot.slane %v4551_v50, 7  ;;  %v4528_v25 = vmul.f32 0.5, %v6888_v29 }
 0x845   : > { %v4529_v52 = vmul.f32 0.5, %v6890_v26 }
 0x846   : > { %v4599_v63 = vsel %vm751_vm3, %v4550_v39, %v4581_v23  ;;  %v4600_v37 = vsel %vm753_vm4, %v4550_v39, %v4581_v23  ;;  %v4602_v59 = vsel %vm756_vm5, %v4550_v39, %v4581_v23  ;;  %v4604_v61 = vsel %vm759_vm6, %v4550_v39, %v4581_v23  ;;  %4569 = vst [vmem:[#allocation2 + $0x18] sm:$0xff] %v4565_v17 }
 0x847   : > { %v4601_v42 = vrot.slane %v4600_v37, 1  ;;  %v4603_v34 = vrot.slane %v4602_v59, 2  ;;  %v4605_v60 = vrot.slane %v4604_v61, 3  ;;  %v4606_v35 = vsel %vm762_vm7, %v4550_v39, %v4581_v23  ;;  %6239 = vst.msk [vmem:[%s7353_s19 + $0x86] ss:$8 sm:$0x3] %vm7317_vm2, %v4599_v63 }
 0x848   : > { %v6892_v0 = vpop.eup %6891  ;;  %v4607_v36 = vrot.slane %v4606_v35, 4  ;;  %v4608_v10 = vsel %vm765_vm8, %v4550_v39, %v4581_v23  ;;  %v4610_v58 = vsel %vm768_vm9, %v4550_v39, %v4581_v23  ;;  %v4612_v40 = vsel %vm771_vm10, %v4581_v23, %v4550_v39 }
 0x849   : > { %v6894_v15 = vpop.eup %6893  ;;  %v4609_v19 = vrot.slane %v4608_v10, 5  ;;  %6240 = vst.msk [vmem:[%s7353_s19 + $0x96] ss:$8 sm:$0x3] %vm7317_vm2, %v4601_v42  ;;  %v4611_v12 = vrot.slane %v4610_v58, 6  ;;  %v4536_v49 = vadd.f32 0.5, %v4528_v25 }
 0x84a   : > { %6241 = vst.msk [vmem:[%s7353_s19 + $0xa6] ss:$8 sm:$0x3] %vm7317_vm2, %v4603_v34  ;;  %v4537_v18 = vadd.f32 0.5, %v4529_v52  ;;  %v4613_v21 = vrot.slane %v4612_v40, 7  ;;  %v4530_v30 = vmul.f32 0.5, %v6892_v0 }
 0x84b   : > { %6242 = vst.msk [vmem:[%s7353_s19 + $0xb6] ss:$8 sm:$0x3] %vm7317_vm2, %v4605_v60  ;;  %v4531_v7 = vmul.f32 0.5, %v6894_v15  ;;  %v4552_v28 = vmul.f32 %v4544_v5, %v4536_v49  ;;  %v4547_v39 = vmax.f32 %v9079_v44, 0.0 }
 0x84c   : > { %6243 = vst.msk [vmem:[%s7353_s19 + $0xc6] ss:$8 sm:$0x3] %vm7317_vm2, %v4607_v36  ;;  %v4553_v16 = vmul.f32 %v4545_v62, %v4537_v18  ;;  %v4538_v48 = vadd.f32 0.5, %v4530_v30 }
 0x84d   : > { %6244 = vst.msk [vmem:[%s7353_s19 + $0xd6] ss:$8 sm:$0x3] %vm7317_vm2, %v4609_v19  ;;  %v4539_v47 = vadd.f32 0.5, %v4531_v7 }
 0x84e   : > { %6245 = vst.msk [vmem:[%s7353_s19 + $0xe6] ss:$8 sm:$0x3] %vm7317_vm2, %v4611_v12  ;;  %v4566_v43 = vpack.c.bf16 %v4553_v16, %v4552_v28  ;;  %v4582_v41 = vrot.slane %v4553_v16, 7  ;;  %v4554_v0 = vmul.f32 %v4546_v2, %v4538_v48 }
 0x84f   : > { %6246 = vst.msk [vmem:[%s7353_s19 + $0xf6] ss:$8 sm:$0x3] %vm7317_vm2, %v4613_v21  ;;  %v4555_v50 = vmul.f32 %v4547_v39, %v4539_v47 }
 0x850   : > { %v4614_v29 = vsel %vm751_vm3, %v4552_v28, %v4582_v41  ;;  %v4615_v26 = vsel %vm753_vm4, %v4552_v28, %v4582_v41  ;;  %v4617_v17 = vsel %vm756_vm5, %v4552_v28, %v4582_v41  ;;  %v4619_v23 = vsel %vm759_vm6, %v4552_v28, %v4582_v41  ;;  %4570 = vst [vmem:[#allocation2 + $0x20] sm:$0xff] %v4566_v43 }
 0x851   : > { %v4616_v25 = vrot.slane %v4615_v26, 1  ;;  %v4618_v52 = vrot.slane %v4617_v17, 2  ;;  %v4620_v63 = vrot.slane %v4619_v23, 3  ;;  %v4621_v37 = vsel %vm762_vm7, %v4552_v28, %v4582_v41  ;;  %6247 = vst.msk [vmem:[%s7353_s19 + $0x106] ss:$8 sm:$0x3] %vm7317_vm2, %v4614_v29 }
 0x852   : > { %v4622_v59 = vrot.slane %v4621_v37, 4  ;;  %v4623_v61 = vsel %vm765_vm8, %v4552_v28, %v4582_v41  ;;  %v4625_v42 = vsel %vm768_vm9, %v4552_v28, %v4582_v41  ;;  %v4627_v34 = vsel %vm771_vm10, %v4582_v41, %v4552_v28  ;;  %v6308_v17 = vld [vmem:[#allocation2 + $0x18] sm:$0xf0]  ;;  %v6306_v23 = vld [vmem:[#allocation2 + $0x10] sm:$0xf] }
 0x853   : > { %v4624_v60 = vrot.slane %v4623_v61, 5  ;;  %6248 = vst.msk [vmem:[%s7353_s19 + $0x116] ss:$8 sm:$0x3] %vm7317_vm2, %v4616_v25  ;;  %v4626_v35 = vrot.slane %v4625_v42, 6  ;;  %v4583_v36 = vrot.slane %v4555_v50, 7  ;;  %v4567_v39 = vpack.c.bf16 %v4555_v50, %v4554_v0 }
 0x854   : > { %6249 = vst.msk [vmem:[%s7353_s19 + $0x126] ss:$8 sm:$0x3] %vm7317_vm2, %v4618_v52  ;;  %v4628_v10 = vrot.slane %v4627_v34, 7  ;;  %v6483_v50 = vld [vmem:[#allocation2 + $0x14] sm:$0xf0] }
 0x855   : > { %6250 = vst.msk [vmem:[%s7353_s19 + $0x136] ss:$8 sm:$0x3] %vm7317_vm2, %v4620_v63  ;;  %v4630_v58 = vsel %vm753_vm4, %v4554_v0, %v4583_v36  ;;  %v4632_v40 = vsel %vm756_vm5, %v4554_v0, %v4583_v36  ;;  %v4634_v15 = vsel %vm759_vm6, %v4554_v0, %v4583_v36  ;;  %v4629_v19 = vsel %vm751_vm3, %v4554_v0, %v4583_v36  ;;  %v6482_v25 = vld [vmem:[#allocation2 + $0x14] sm:$0xf] }
 0x856   : > { %6251 = vst.msk [vmem:[%s7353_s19 + $0x146] ss:$8 sm:$0x3] %vm7317_vm2, %v4622_v59  ;;  %v4631_v5 = vrot.slane %v4630_v58, 1  ;;  %v4636_v62 = vsel %vm762_vm7, %v4554_v0, %v4583_v36  ;;  %v4633_v12 = vrot.slane %v4632_v40, 2  ;;  %v4638_v49 = vsel %vm765_vm8, %v4554_v0, %v4583_v36  ;;  %v6476_v58 = vld [vmem:[%s9543_s1 + $0x20] sm:$0xff] }
 0x857   : > { %6252 = vst.msk [vmem:[%s7353_s19 + $0x156] ss:$8 sm:$0x3] %vm7317_vm2, %v4624_v60  ;;  %v4635_v18 = vrot.slane %v4634_v15, 3  ;;  %v4640_v21 = vsel %vm768_vm9, %v4554_v0, %v4583_v36  ;;  %v4637_v30 = vrot.slane %v4636_v62, 4  ;;  %v4642_v7 = vsel %vm771_vm10, %v4583_v36, %v4554_v0  ;;  %v6473_v0 = vld [vmem:[%s9543_s1 + $0x8] sm:$0xff] }
 0x858   : > { %6253 = vst.msk [vmem:[%s7353_s19 + $0x166] ss:$8 sm:$0x3] %vm7317_vm2, %v4626_v35  ;;  %v4639_v28 = vrot.slane %v4638_v49, 5  ;;  %v4641_v16 = vrot.slane %v4640_v21, 6  ;;  %v4643_v47 = vrot.slane %v4642_v7, 7  ;;  %v6307_v61 = vor.u32 %v6483_v50, %v6306_v23 }
 0x859   : > { %6254 = vst.msk [vmem:[%s7353_s19 + $0x176] ss:$8 sm:$0x3] %vm7317_vm2, %v4628_v10  ;;  %v6314_v43 = vld [vmem:[#allocation2 + $0x20] sm:$0xf]  ;;  %v6311_v42 = vor.u32 %v6482_v25, %v6308_v17  ;;  %v6472_v35 = vld [vmem:[%s9543_s1] sm:$0xff]  ;;  %v5049_v17 = vmul.f32 %v9041_v45, %v7208_v55  ;;  %v5050_v25 = vmul.f32 %v9043_v20, %v7210_v56  ;;  %v5051_v56 = vmul.f32 %v9051_v22, %v7224_v6 }
 0x85a   : > { %6255 = vst.msk [vmem:[%s7353_s19 + $0x186] ss:$8 sm:$0x3] %vm7317_vm2, %v4629_v19  ;;  %v6484_v48 = vld [vmem:[#allocation2 + $0x24] sm:$0xf]  ;;  %v6474_v36 = vld [vmem:[%s9543_s1 + $0x10] sm:$0xff]  ;;  %v5005_v6 = vmul.f32 %v9064_v11, %v9578_v24 }
 0x85b   : > { %6256 = vst.msk [vmem:[%s7353_s19 + $0x196] ss:$8 sm:$0x3] %vm7317_vm2, %v4631_v5  ;;  %v6298_v52 = vld [vmem:[#allocation2] sm:$0xf]  ;;  %v6475_v10 = vld [vmem:[%s9543_s1 + $0x18] sm:$0xff] }
 0x85c   : > { %6257 = vst.msk [vmem:[%s7353_s19 + $0x1a6] ss:$8 sm:$0x3] %vm7317_vm2, %v4633_v12  ;;  %v6481_v63 = vld [vmem:[#allocation2 + $0x4] sm:$0xf0]  ;;  %v6477_v40 = vld [vmem:[%s9543_s1 + $0x28] sm:$0xff] }
 0x85d   : > { %6258 = vst.msk [vmem:[%s7353_s19 + $0x1b6] ss:$8 sm:$0x3] %vm7317_vm2, %v4635_v18  ;;  %v6480_v37 = vld [vmem:[#allocation2 + $0x4] sm:$0xf]  ;;  %v6299_v34 = vor.u32 %v6481_v63, %v6298_v52  ;;  %v6478_v15 = vld [vmem:[%s9543_s1 + $0x30] sm:$0xff] }
 0x85e   : > { %6259 = vst.msk [vmem:[%s7353_s19 + $0x1c6] ss:$8 sm:$0x3] %vm7317_vm2, %v4637_v30  ;;  %v6300_v59 = vld [vmem:[#allocation2 + $0x8] sm:$0xf0]  ;;  %v6479_v19 = vld [vmem:[%s9543_s1 + $0x38] sm:$0xff] }
 0x85f   : > { %6260 = vst.msk [vmem:[%s7353_s19 + $0x1d6] ss:$8 sm:$0x3] %vm7317_vm2, %v4639_v28  ;;  %v6303_v60 = vor.u32 %v6480_v37, %v6300_v59 }
 0x860   : > { %6261 = vst.msk [vmem:[%s7353_s19 + $0x1e6] ss:$8 sm:$0x3] %vm7317_vm2, %v4641_v16 }
 0x861   : > { %6262 = vst.msk [vmem:[%s7353_s19 + $0x1f6] ss:$8 sm:$0x3] %vm7317_vm2, %v4643_v47 }
 0x862   : > { %4571 = vst [vmem:[#allocation2 + $0x28] sm:$0xff] %v4567_v39 }
 0x869   : > { %v6485_v41 = vld [vmem:[#allocation2 + $0x24] sm:$0xf0]  ;;  %v6316_v2 = vld [vmem:[#allocation2 + $0x28] sm:$0xf0] }
 0x86a   : > { %v6315_v29 = vor.u32 %v6485_v41, %v6314_v43  ;;  %v6319_v26 = vor.u32 %v6484_v48, %v6316_v2 }
 0x86c   : > { %4900 = vmatpush.bf16.msrb.mxu2 %v6315_v29  ;;  %4949 = vmatpush.bf16.msrb.mxu3 %v6319_v26  ;;  %v5001_v29 = vmul.f32 %v9041_v45, %v7204_v53  ;;  %v5002_v26 = vmul.f32 %v9043_v20, %v7206_v54  ;;  %v5003_v53 = vmul.f32 %v9051_v22, %v7219_v1 }
 0x86d   : > { %v5004_v54 = vmul.f32 %v9053_v27, %v7222_v4 }
 0x870   : > { %4901 = vmatpush.bf16.msrb.mxu2 %v6307_v61  ;;  %4950 = vmatpush.bf16.msrb.mxu3 %v6311_v42 }
 0x874   : > { %4902 = vmatpush.bf16.msrb.mxu2 %v6299_v34  ;;  %4951 = vmatpush.bf16.msrb.mxu3 %v6303_v60 }
 0x877   : > { %6320 = vmatmul.msk.bf16.vlgmr.msrb.gmra.mxu2 %vm400_vm1, %v6472_v35  ;;  %6328 = vmatmul.msk.bf16.vlgmr.msrb.gmra.mxu3 %vm400_vm1, %v6472_v35 }
 0x887   : > { %6321 = vmatmul.msk.bf16.gmra.mxu2 %vm400_vm1, %v6473_v0  ;;  %6329 = vmatmul.msk.bf16.gmra.mxu3 %vm400_vm1, %v6473_v0  ;;  %v5052_v0 = vmul.f32 %v9053_v27, %v7226_v8  ;;  %v9608_v8 = vld [vmem:[#allocation11_spill] sm:$0xff] }
 0x897   : > { %6322 = vmatmul.msk.bf16.gmra.mxu2 %vm400_vm1, %v6474_v36  ;;  %6330 = vmatmul.msk.bf16.gmra.mxu3 %vm400_vm1, %v6474_v36 }
 0x8a7   : > { %6323 = vmatmul.msk.bf16.gmra.mxu2 %vm400_vm1, %v6475_v10  ;;  %6331 = vmatmul.msk.bf16.gmra.mxu3 %vm400_vm1, %v6475_v10 }
 0x8b7   : > { %6324 = vmatmul.msk.bf16.gmra.mxu2 %vm400_vm1, %v6476_v58  ;;  %6332 = vmatmul.msk.bf16.gmra.mxu3 %vm400_vm1, %v6476_v58 }
 0x8c7   : > { %6325 = vmatmul.msk.bf16.gmra.mxu2 %vm400_vm1, %v6477_v40  ;;  %6333 = vmatmul.msk.bf16.gmra.mxu3 %vm400_vm1, %v6477_v40 }
 0x8d7   : > { %6326 = vmatmul.msk.bf16.gmra.mxu2 %vm400_vm1, %v6478_v15  ;;  %6334 = vmatmul.msk.bf16.gmra.mxu3 %vm400_vm1, %v6478_v15 }
 0x8e7   : > { %6327 = vmatmul.msk.bf16.gmra.mxu2 %vm400_vm1, %v6479_v19  ;;  %6335 = vmatmul.msk.bf16.gmra.mxu3 %vm400_vm1, %v6479_v19 }
 0x8fa   : > { %v4904_v5 = vpop.f32.mrf.mxu2  ;;  %v4953_v62 = vpop.f32.mrf.mxu3 }
 0x8fb   : > { %v5009_v50 = vadd.f32 %v5001_v29, %v4904_v5  ;;  %v5010_v23 = vadd.f32 %v5002_v26, %v4953_v62  ;;  %v9610_v26 = vld [vmem:[#allocation14_spill] sm:$0xff] }
 0x8fd   : > { %v5017_v61 = vmul.f32 0.5, %v5009_v50  ;;  %v5018_v42 = vmul.f32 0.5, %v5010_v23  ;;  %v5054_v50 = vmul.f32 %v9066_v31, %v9610_v26 }
 0x8ff   : > { %6895 = vtanh.f32 %v5017_v61 }
 0x900   : > { %6897 = vtanh.f32 %v5018_v42 }
 0x902   : > { %v4906_v12 = vpop.f32.mrf.mxu2  ;;  %v4955_v49 = vpop.f32.mrf.mxu3 }
 0x903   : > { %v5011_v55 = vadd.f32 %v5003_v53, %v4906_v12  ;;  %v5012_v35 = vadd.f32 %v5004_v54, %v4955_v49  ;;  %v5006_v12 = vmul.f32 %v9066_v31, %v9608_v8 }
 0x905   : > { %v5019_v58 = vmul.f32 0.5, %v5011_v55  ;;  %v5020_v40 = vmul.f32 0.5, %v5012_v35  ;;  %v6896_v19 = vpop.eup %6895  ;;  %v9612_v55 = vld [vmem:[#allocation16_spill] sm:$0xff] }
 0x906   : > { %v6898_v62 = vpop.eup %6897 }
 0x907   : > { %v5034_v23 = vmul.f32 0.5, %v6898_v62 }
 0x90a   : > { %v4909_v18 = vpop.f32.mrf.mxu2  ;;  %v4958_v21 = vpop.f32.mrf.mxu3 }
 0x90b   : > { %v5014_v29 = vadd.f32 %v5006_v12, %v4958_v21 }
 0x912   : > { %v9259_v30 = vpop.f32.mrf.mxu2  ;;  %v9261_v7 = vpop.f32.mrf.mxu3 }
 0x91a   : > { %v4914_v28 = vpop.f32.mrf.mxu2  ;;  %v4963_v16 = vpop.f32.mrf.mxu3 }
 0x91b   : > { %v5057_v52 = vadd.f32 %v5049_v17, %v4914_v28  ;;  %v5058_v63 = vadd.f32 %v5050_v25, %v4963_v16  ;;  %v5013_v28 = vadd.f32 %v5005_v6, %v4909_v18  ;;  %v9609_v16 = vld [vmem:[#allocation13_spill] sm:$0xff]  ;;  %v5033_v17 = vmul.f32 0.5, %v6896_v19  ;;  %v9611_v18 = vld [vmem:[#allocation12_spill] sm:$0xff] }
 0x91c   : > { %v5007_v42 = vmul.f32 %v9076_v57, %v9611_v18  ;;  %v9614_v6 = vld [vmem:[#allocation17_spill] sm:$0xff] }
 0x91d   : > { %v5065_v34 = vmul.f32 0.5, %v5057_v52  ;;  %v5066_v60 = vmul.f32 0.5, %v5058_v63  ;;  %v5021_v61 = vmul.f32 0.5, %v5013_v28 }
 0x91f   : > { %6899 = vtanh.f32 %v5065_v34  ;;  %v5022_v34 = vmul.f32 0.5, %v5014_v29 }
 0x920   : > { %6901 = vtanh.f32 %v5066_v60  ;;  %v5008_v60 = vmul.f32 %v9079_v44, %v9612_v55 }
 0x921   : > { %6903 = vtanh.f32 %v5019_v58 }
 0x922   : > { %v4916_v47 = vpop.f32.mrf.mxu2  ;;  %v4965_v39 = vpop.f32.mrf.mxu3  ;;  %6905 = vtanh.f32 %v5020_v40  ;;  %v5041_v40 = vadd.f32 0.5, %v5033_v17 }
 0x923   : > { %v5059_v36 = vadd.f32 %v5051_v56, %v4916_v47  ;;  %v5060_v10 = vadd.f32 %v5052_v0, %v4965_v39  ;;  %v5053_v47 = vmul.f32 %v9064_v11, %v9609_v16  ;;  %v9613_v56 = vld [vmem:[#allocation15_spill] sm:$0xff] }
 0x925   : > { %v5067_v15 = vmul.f32 0.5, %v5059_v36  ;;  %v5068_v5 = vmul.f32 0.5, %v5060_v10  ;;  %v6900_v49 = vpop.eup %6899 }
 0x926   : > { %v6902_v39 = vpop.eup %6901  ;;  %v5081_v53 = vmul.f32 0.5, %v6900_v49 }
 0x927   : > { %6907 = vtanh.f32 %v5067_v15  ;;  %v5082_v54 = vmul.f32 0.5, %v6902_v39  ;;  %v6904_v21 = vpop.eup %6903  ;;  %v5042_v15 = vadd.f32 0.5, %v5034_v23 }
 0x928   : > { %6909 = vtanh.f32 %v5068_v5  ;;  %v6906_v35 = vpop.eup %6905  ;;  %v5056_v5 = vmul.f32 %v9079_v44, %v9614_v6  ;;  %v5089_v8 = vadd.f32 0.5, %v5081_v53  ;;  %v5035_v28 = vmul.f32 0.5, %v6904_v21 }
 0x929   : > { %6911 = vtanh.f32 %v5021_v61  ;;  %v5090_v12 = vadd.f32 0.5, %v5082_v54 }
 0x92a   : > { %v4919_v43 = vpop.f32.mrf.mxu2  ;;  %v4968_v41 = vpop.f32.mrf.mxu3  ;;  %6913 = vtanh.f32 %v5022_v34 }
 0x92b   : > { %v5061_v24 = vadd.f32 %v5053_v47, %v4919_v43  ;;  %v5062_v25 = vadd.f32 %v5054_v50, %v4968_v41  ;;  %v5055_v43 = vmul.f32 %v9076_v57, %v9613_v56  ;;  %v5015_v41 = vadd.f32 %v5007_v42, %v9259_v30 }
 0x92c   : > { %v5036_v30 = vmul.f32 0.5, %v6906_v35  ;;  %v5098_v17 = vmul.f32 %v5090_v12, %v9043_v20 }
 0x92d   : > { %v5069_v0 = vmul.f32 0.5, %v5061_v24  ;;  %v6908_v58 = vpop.eup %6907  ;;  %v5070_v19 = vmul.f32 0.5, %v5062_v25  ;;  %v5023_v16 = vmul.f32 0.5, %v5015_v41  ;;  %v5043_v25 = vadd.f32 0.5, %v5035_v28 }
 0x92e   : > { %v6910_v62 = vpop.eup %6909  ;;  %v5083_v39 = vmul.f32 0.5, %v6908_v58  ;;  %v5044_v42 = vadd.f32 0.5, %v5036_v30 }
 0x92f   : > { %6915 = vtanh.f32 %v5069_v0  ;;  %v5084_v29 = vmul.f32 0.5, %v6910_v62  ;;  %v6912_v18 = vpop.eup %6911 }
 0x930   : > { %6917 = vtanh.f32 %v5070_v19  ;;  %v6914_v21 = vpop.eup %6913  ;;  %v5091_v34 = vadd.f32 0.5, %v5083_v39 }
 0x931   : > { %6919 = vtanh.f32 %v5023_v16  ;;  %v5092_v55 = vadd.f32 0.5, %v5084_v29 }
 0x932   : > { %v9263_v48 = vpop.f32.mrf.mxu2  ;;  %v9265_v2 = vpop.f32.mrf.mxu3  ;;  %v5099_v41 = vmul.f32 %v5091_v34, %v9051_v22 }
 0x933   : > { %v5063_v49 = vadd.f32 %v5055_v43, %v9263_v48  ;;  %v5064_v26 = vadd.f32 %v5056_v5, %v9265_v2  ;;  %v5097_v48 = vmul.f32 %v5089_v8, %v9041_v45  ;;  %v5100_v0 = vmul.f32 %v5092_v55, %v9053_v27 }
 0x935   : > { %v5071_v23 = vmul.f32 0.5, %v5063_v49  ;;  %v5072_v45 = vmul.f32 0.5, %v5064_v26 }
 0x937   : > { %6921 = vtanh.f32 %v5071_v23 }
 0x93a   : > { %v9275_v37 = vpop.f32.mrf.mxu2  ;;  %v9277_v59 = vpop.f32.mrf.mxu3 }
 0x93b   : > { %v5105_v36 = vmax.f32 %v9275_v37, 0.0  ;;  %v5106_v10 = vmax.f32 %v9277_v59, 0.0  ;;  %v5016_v37 = vadd.f32 %v5008_v60, %v9261_v7  ;;  %v6916_v60 = vpop.eup %6915 }
 0x93c   : > { %v6918_v20 = vpop.eup %6917 }
 0x93d   : > { %v5113_v59 = vmul.f32 %v5105_v36, %v5041_v40  ;;  %v5114_v47 = vmul.f32 %v5106_v10, %v5042_v15  ;;  %v5024_v53 = vmul.f32 0.5, %v5016_v37  ;;  %v5085_v36 = vmul.f32 0.5, %v6916_v60  ;;  %v6920_v5 = vpop.eup %6919 }
 0x93e   : > { %v5038_v40 = vmul.f32 0.5, %v6914_v21  ;;  %v5086_v15 = vmul.f32 0.5, %v6918_v20 }
 0x93f   : > { %v9325_v54 = vadd.f32 %v5113_v59, %v5097_v48  ;;  %v9327_v2 = vadd.f32 %v5114_v47, %v5098_v17  ;;  %6923 = vtanh.f32 %v5024_v53  ;;  %v5093_v49 = vadd.f32 0.5, %v5085_v36 }
 0x940   : > { %6925 = vtanh.f32 %v5072_v45  ;;  %v5046_v37 = vadd.f32 0.5, %v5038_v40  ;;  %v5094_v16 = vadd.f32 0.5, %v5086_v15  ;;  %v5039_v47 = vmul.f32 0.5, %v6920_v5 }
 0x941   : > { %v5130_v35 = vmul.f32 %v9327_v2, %v7290_v14  ;;  %v5101_v17 = vmul.f32 %v5093_v49, %v9064_v11 }
 0x942   : > { %v9287_v1 = vpop.f32.mrf.mxu2  ;;  %v9289_v4 = vpop.f32.mrf.mxu3  ;;  %v5047_v21 = vadd.f32 0.5, %v5039_v47 }
 0x943   : > { %v5107_v7 = vmax.f32 %v9287_v1, 0.0  ;;  %v5108_v61 = vmax.f32 %v9289_v4, 0.0  ;;  %v5037_v1 = vmul.f32 0.5, %v6912_v18  ;;  %v5129_v4 = vmul.f32 %v9325_v54, %v7288_v13  ;;  %v6922_v13 = vpop.eup %6921 }
 0x944   : > { %v5087_v39 = vmul.f32 0.5, %v6922_v13 }
 0x945   : > { %v5115_v56 = vmul.f32 %v5107_v7, %v5043_v25  ;;  %v5116_v43 = vmul.f32 %v5108_v61, %v5044_v42  ;;  %v6924_v28 = vpop.eup %6923  ;;  %v5045_v30 = vadd.f32 0.5, %v5037_v1  ;;  %v5102_v61 = vmul.f32 %v5094_v16, %v9066_v31 }
 0x946   : > { %v6926_v59 = vpop.eup %6925  ;;  %v5095_v34 = vadd.f32 0.5, %v5087_v39 }
 0x947   : > { %v9335_v62 = vadd.f32 %v5115_v56, %v5099_v41  ;;  %v9337_v8 = vadd.f32 %v5116_v43, %v5100_v0  ;;  %v5088_v18 = vmul.f32 0.5, %v6926_v59  ;;  %v5177_v41 = vmax.f32 %v9325_v54, 0.0 }
 0x949   : > { %v5131_v48 = vmul.f32 %v9335_v62, %v7296_v46  ;;  %v5096_v1 = vadd.f32 0.5, %v5088_v18 }
 0x94a   : > { %v9299_v52 = vpop.f32.mrf.mxu2  ;;  %v9301_v63 = vpop.f32.mrf.mxu3 }
 0x94b   : > { %v5109_v14 = vmax.f32 %v9299_v52, 0.0  ;;  %v5110_v22 = vmax.f32 %v9301_v63, 0.0  ;;  %v5132_v52 = vmul.f32 %v9337_v8, %v7302_v51  ;;  %v5040_v63 = vmul.f32 0.5, %v6924_v28 }
 0x94d   : > { %v5117_v29 = vmul.f32 %v5109_v14, %v5045_v30  ;;  %v5118_v26 = vmul.f32 %v5110_v22, %v5046_v37  ;;  %v5048_v43 = vadd.f32 0.5, %v5040_v63 }
 0x94f   : > { %v9349_v60 = vadd.f32 %v5117_v29, %v5101_v17  ;;  %v9351_v51 = vadd.f32 %v5118_v26, %v5102_v61 }
 0x952   : > { %v9317_v50 = vpop.f32.mrf.mxu2  ;;  %v9319_v24 = vpop.f32.mrf.mxu3 }
 0x953   : > { %v5111_v23 = vmax.f32 %v9317_v50, 0.0  ;;  %v5112_v46 = vmax.f32 %v9319_v24, 0.0  ;;  %v5178_v24 = vmax.f32 %v9327_v2, 0.0 }
 0x955   : > { %v5119_v20 = vmul.f32 %v5111_v23, %v5047_v21  ;;  %v5120_v0 = vmul.f32 %v5112_v46, %v5048_v43 }
 0x95a   : > { %v4934_v10 = vpop.f32.mrf.mxu2  ;;  %v4983_v58 = vpop.f32.mrf.mxu3 }
 0x95b   : > { %v5137_v19 = vadd.f32 %v5129_v4, %v4934_v10  ;;  %v5138_v6 = vadd.f32 %v5130_v35, %v4983_v58  ;;  %v5103_v4 = vmul.f32 %v5095_v34, %v9076_v57  ;;  %v5133_v10 = vmul.f32 %v9349_v60, %v7312_v32 }
 0x95c   : > { %v5134_v58 = vmul.f32 %v9351_v51, %v7314_v33  ;;  %v5104_v57 = vmul.f32 %v5096_v1, %v9079_v44  ;;  %v5181_v1 = vmax.f32 %v9349_v60, 0.0 }
 0x95d   : > { %v5145_v12 = vmul.f32 0.5, %v5137_v19  ;;  %v5146_v27 = vmul.f32 0.5, %v5138_v6  ;;  %v9360_v6 = vadd.f32 %v5119_v20, %v5103_v4 }
 0x95e   : > { %v9364_v32 = vadd.f32 %v5120_v0, %v5104_v57 }
 0x95f   : > { %6927 = vtanh.f32 %v5145_v12  ;;  %v5179_v12 = vmax.f32 %v9335_v62, 0.0  ;;  %v5135_v28 = vmul.f32 %v9360_v6, %v7328_v3 }
 0x960   : > { %6929 = vtanh.f32 %v5146_v27 }
 0x962   : > { %v4936_v25 = vpop.f32.mrf.mxu2  ;;  %v4985_v7 = vpop.f32.mrf.mxu3 }
 0x963   : > { %v5139_v42 = vadd.f32 %v5131_v48, %v4936_v25  ;;  %v5140_v53 = vadd.f32 %v5132_v52, %v4985_v7  ;;  %v5136_v7 = vmul.f32 %v9364_v32, %v7331_v9  ;;  %v5180_v9 = vmax.f32 %v9337_v8, 0.0 }
 0x965   : > { %v6928_v55 = vpop.eup %6927  ;;  %v5147_v45 = vmul.f32 0.5, %v5139_v42  ;;  %v5148_v56 = vmul.f32 0.5, %v5140_v53 }
 0x966   : > { %v6930_v11 = vpop.eup %6929  ;;  %v5161_v50 = vmul.f32 0.5, %v6928_v55 }
 0x967   : > { %v5162_v31 = vmul.f32 0.5, %v6930_v11  ;;  %6931 = vtanh.f32 %v5147_v45 }
 0x968   : > { %v5169_v35 = vadd.f32 0.5, %v5161_v50  ;;  %6933 = vtanh.f32 %v5148_v56 }
 0x969   : > { %v5170_v36 = vadd.f32 0.5, %v5162_v31 }
 0x96a   : > { %v5185_v40 = vmul.f32 %v5177_v41, %v5169_v35  ;;  %v4939_v15 = vpop.f32.mrf.mxu2  ;;  %v4988_v19 = vpop.f32.mrf.mxu3 }
 0x96b   : > { %v5186_v5 = vmul.f32 %v5178_v24, %v5170_v36  ;;  %v5141_v54 = vadd.f32 %v5133_v10, %v4939_v15  ;;  %v5142_v13 = vadd.f32 %v5134_v58, %v4988_v19 }
 0x96d   : > { %v6932_v2 = vpop.eup %6931  ;;  %v5201_v14 = vpack.c.bf16 %v5186_v5, %v5185_v40  ;;  %v5217_v22 = vrot.slane %v5186_v5, 7  ;;  %v5149_v27 = vmul.f32 0.5, %v5141_v54  ;;  %v5150_v49 = vmul.f32 0.5, %v5142_v13 }
 0x96e   : > { %v5163_v33 = vmul.f32 0.5, %v6932_v2  ;;  %v6934_v62 = vpop.eup %6933  ;;  %v5182_v2 = vmax.f32 %v9351_v51, 0.0  ;;  %v5183_v51 = vmax.f32 %v9360_v6, 0.0 }
 0x96f   : > { %5205 = vst [vmem:[#allocation2 + $0x10] sm:$0xff] %v5201_v14  ;;  %v5221_v44 = vsel %vm751_vm3, %v5185_v40, %v5217_v22  ;;  %v5222_v30 = vsel %vm753_vm4, %v5185_v40, %v5217_v22  ;;  %v5224_v37 = vsel %vm756_vm5, %v5185_v40, %v5217_v22  ;;  %v5226_v16 = vsel %vm759_vm6, %v5185_v40, %v5217_v22 }
 0x970   : > { %v5223_v59 = vrot.slane %v5222_v30, 1  ;;  %v5225_v47 = vrot.slane %v5224_v37, 2  ;;  %v5227_v39 = vrot.slane %v5226_v16, 3  ;;  %v5228_v29 = vsel %vm762_vm7, %v5185_v40, %v5217_v22  ;;  %6336 = vst.msk [vmem:[%s7353_s19 + $0x7] ss:$8 sm:$0x3] %vm7317_vm2, %v5221_v44 }
 0x971   : > { %v5229_v3 = vrot.slane %v5228_v29, 4  ;;  %v5230_v26 = vsel %vm765_vm8, %v5185_v40, %v5217_v22  ;;  %v5232_v48 = vsel %vm768_vm9, %v5185_v40, %v5217_v22  ;;  %v5234_v52 = vsel %vm771_vm10, %v5217_v22, %v5185_v40 }
 0x972   : > { %v5231_v63 = vrot.slane %v5230_v26, 5  ;;  %v5233_v17 = vrot.slane %v5232_v48, 6  ;;  %6337 = vst.msk [vmem:[%s7353_s19 + $0x17] ss:$8 sm:$0x3] %vm7317_vm2, %v5223_v59  ;;  %6935 = vtanh.f32 %v5149_v27  ;;  %v4941_v23 = vpop.f32.mrf.mxu2  ;;  %v4990_v25 = vpop.f32.mrf.mxu3  ;;  %v5171_v61 = vadd.f32 0.5, %v5163_v33 }
 0x973   : > { %6338 = vst.msk [vmem:[%s7353_s19 + $0x27] ss:$8 sm:$0x3] %vm7317_vm2, %v5225_v47  ;;  %v5164_v18 = vmul.f32 0.5, %v6934_v62  ;;  %6937 = vtanh.f32 %v5150_v49  ;;  %v5143_v42 = vadd.f32 %v5135_v28, %v4941_v23  ;;  %v5235_v53 = vrot.slane %v5234_v52, 7 }
 0x974   : > { %6339 = vst.msk [vmem:[%s7353_s19 + $0x37] ss:$8 sm:$0x3] %vm7317_vm2, %v5227_v39  ;;  %v5144_v21 = vadd.f32 %v5136_v7, %v4990_v25  ;;  %v5187_v34 = vmul.f32 %v5179_v12, %v5171_v61  ;;  %v5184_v37 = vmax.f32 %v9364_v32, 0.0 }
 0x975   : > { %6340 = vst.msk [vmem:[%s7353_s19 + $0x47] ss:$8 sm:$0x3] %vm7317_vm2, %v5229_v3  ;;  %v5172_v55 = vadd.f32 0.5, %v5164_v18  ;;  %v5151_v46 = vmul.f32 0.5, %v5143_v42 }
 0x976   : > { %6341 = vst.msk [vmem:[%s7353_s19 + $0x57] ss:$8 sm:$0x3] %vm7317_vm2, %v5231_v63  ;;  %v5152_v45 = vmul.f32 0.5, %v5144_v21 }
 0x977   : > { %6342 = vst.msk [vmem:[%s7353_s19 + $0x67] ss:$8 sm:$0x3] %vm7317_vm2, %v5233_v17  ;;  %v5188_v11 = vmul.f32 %v5180_v9, %v5172_v55  ;;  %6939 = vtanh.f32 %v5151_v46 }
 0x978   : > { %v6936_v20 = vpop.eup %6935  ;;  %6343 = vst.msk [vmem:[%s7353_s19 + $0x77] ss:$8 sm:$0x3] %vm7317_vm2, %v5235_v53  ;;  %6941 = vtanh.f32 %v5152_v45 }
 0x979   : > { %v6938_v50 = vpop.eup %6937  ;;  %v5202_v56 = vpack.c.bf16 %v5188_v11, %v5187_v34  ;;  %v5218_v43 = vrot.slane %v5188_v11, 7  ;;  %v5165_v8 = vmul.f32 0.5, %v6936_v20 }
 0x97a   : > { %v5166_v31 = vmul.f32 0.5, %v6938_v50 }
 0x97b   : > { %5206 = vst [vmem:[#allocation2 + $0x18] sm:$0xff] %v5202_v56  ;;  %v5236_v4 = vsel %vm751_vm3, %v5187_v34, %v5218_v43  ;;  %v5237_v35 = vsel %vm753_vm4, %v5187_v34, %v5218_v43  ;;  %v5239_v41 = vsel %vm756_vm5, %v5187_v34, %v5218_v43  ;;  %v5241_v24 = vsel %vm759_vm6, %v5187_v34, %v5218_v43 }
 0x97c   : > { %v5238_v0 = vrot.slane %v5237_v35, 1  ;;  %v5240_v36 = vrot.slane %v5239_v41, 2  ;;  %v5242_v10 = vrot.slane %v5241_v24, 3  ;;  %v5243_v58 = vsel %vm762_vm7, %v5187_v34, %v5218_v43  ;;  %6344 = vst.msk [vmem:[%s7353_s19 + $0x87] ss:$8 sm:$0x3] %vm7317_vm2, %v5236_v4 }
 0x97d   : > { %v6940_v60 = vpop.eup %6939  ;;  %v5244_v40 = vrot.slane %v5243_v58, 4  ;;  %v5245_v15 = vsel %vm765_vm8, %v5187_v34, %v5218_v43  ;;  %v5247_v19 = vsel %vm768_vm9, %v5187_v34, %v5218_v43  ;;  %v5249_v57 = vsel %vm771_vm10, %v5218_v43, %v5187_v34 }
 0x97e   : > { %v6942_v5 = vpop.eup %6941  ;;  %v5246_v54 = vrot.slane %v5245_v15, 5  ;;  %v5248_v13 = vrot.slane %v5247_v19, 6  ;;  %6345 = vst.msk [vmem:[%s7353_s19 + $0x97] ss:$8 sm:$0x3] %vm7317_vm2, %v5238_v0  ;;  %v5173_v14 = vadd.f32 0.5, %v5165_v8 }
 0x97f   : > { %6346 = vst.msk [vmem:[%s7353_s19 + $0xa7] ss:$8 sm:$0x3] %vm7317_vm2, %v5240_v36  ;;  %v5174_v22 = vadd.f32 0.5, %v5166_v31  ;;  %v5167_v12 = vmul.f32 0.5, %v6940_v60  ;;  %v5250_v33 = vrot.slane %v5249_v57, 7 }
 0x980   : > { %6347 = vst.msk [vmem:[%s7353_s19 + $0xb7] ss:$8 sm:$0x3] %vm7317_vm2, %v5242_v10  ;;  %v5168_v27 = vmul.f32 0.5, %v6942_v5  ;;  %v5189_v49 = vmul.f32 %v5181_v1, %v5173_v14 }
 0x981   : > { %6348 = vst.msk [vmem:[%s7353_s19 + $0xc7] ss:$8 sm:$0x3] %vm7317_vm2, %v5244_v40  ;;  %v5190_v28 = vmul.f32 %v5182_v2, %v5174_v22  ;;  %v5175_v44 = vadd.f32 0.5, %v5167_v12 }
 0x982   : > { %6349 = vst.msk [vmem:[%s7353_s19 + $0xd7] ss:$8 sm:$0x3] %vm7317_vm2, %v5246_v54  ;;  %v5176_v30 = vadd.f32 0.5, %v5168_v27 }
 0x983   : > { %6350 = vst.msk [vmem:[%s7353_s19 + $0xe7] ss:$8 sm:$0x3] %vm7317_vm2, %v5248_v13  ;;  %v5203_v16 = vpack.c.bf16 %v5190_v28, %v5189_v49  ;;  %v5219_v62 = vrot.slane %v5190_v28, 7  ;;  %v5191_v59 = vmul.f32 %v5183_v51, %v5175_v44 }
 0x984   : > { %6351 = vst.msk [vmem:[%s7353_s19 + $0xf7] ss:$8 sm:$0x3] %vm7317_vm2, %v5250_v33  ;;  %v5192_v47 = vmul.f32 %v5184_v37, %v5176_v30 }
 0x985   : > { %5207 = vst [vmem:[#allocation2 + $0x20] sm:$0xff] %v5203_v16  ;;  %v5251_v39 = vsel %vm751_vm3, %v5189_v49, %v5219_v62  ;;  %v5252_v6 = vsel %vm753_vm4, %v5189_v49, %v5219_v62  ;;  %v5254_v32 = vsel %vm756_vm5, %v5189_v49, %v5219_v62  ;;  %v5256_v29 = vsel %vm759_vm6, %v5189_v49, %v5219_v62 }
 0x986   : > { %v5253_v3 = vrot.slane %v5252_v6, 1  ;;  %v5255_v26 = vrot.slane %v5254_v32, 2  ;;  %v5257_v48 = vrot.slane %v5256_v29, 3  ;;  %v5258_v52 = vsel %vm762_vm7, %v5189_v49, %v5219_v62  ;;  %6352 = vst.msk [vmem:[%s7353_s19 + $0x107] ss:$8 sm:$0x3] %vm7317_vm2, %v5251_v39 }
 0x987   : > { %v5259_v63 = vrot.slane %v5258_v52, 4  ;;  %v5260_v17 = vsel %vm765_vm8, %v5189_v49, %v5219_v62  ;;  %v5262_v23 = vsel %vm768_vm9, %v5189_v49, %v5219_v62  ;;  %v5264_v25 = vsel %vm771_vm10, %v5219_v62, %v5189_v49 }
 0x988   : > { %v5261_v7 = vrot.slane %v5260_v17, 5  ;;  %6353 = vst.msk [vmem:[%s7353_s19 + $0x117] ss:$8 sm:$0x3] %vm7317_vm2, %v5253_v3  ;;  %v5204_v61 = vpack.c.bf16 %v5192_v47, %v5191_v59  ;;  %v5263_v18 = vrot.slane %v5262_v23, 6  ;;  %v5220_v42 = vrot.slane %v5192_v47, 7 }
 0x989   : > { %6354 = vst.msk [vmem:[%s7353_s19 + $0x127] ss:$8 sm:$0x3] %vm7317_vm2, %v5255_v26  ;;  %v5265_v53 = vrot.slane %v5264_v25, 7 }
 0x98a   : > { %6355 = vst.msk [vmem:[%s7353_s19 + $0x137] ss:$8 sm:$0x3] %vm7317_vm2, %v5257_v48  ;;  %v5266_v21 = vsel %vm751_vm3, %v5191_v59, %v5220_v42  ;;  %v5267_v34 = vsel %vm753_vm4, %v5191_v59, %v5220_v42  ;;  %v5269_v55 = vsel %vm756_vm5, %v5191_v59, %v5220_v42  ;;  %v5271_v9 = vsel %vm759_vm6, %v5191_v59, %v5220_v42 }
 0x98b   : > { %6356 = vst.msk [vmem:[%s7353_s19 + $0x147] ss:$8 sm:$0x3] %vm7317_vm2, %v5259_v63  ;;  %v5273_v46 = vsel %vm762_vm7, %v5191_v59, %v5220_v42  ;;  %v5268_v45 = vrot.slane %v5267_v34, 1  ;;  %v5275_v11 = vsel %vm765_vm8, %v5191_v59, %v5220_v42  ;;  %v5277_v20 = vsel %vm768_vm9, %v5191_v59, %v5220_v42 }
 0x98c   : > { %6357 = vst.msk [vmem:[%s7353_s19 + $0x157] ss:$8 sm:$0x3] %vm7317_vm2, %v5261_v7  ;;  %v5279_v50 = vsel %vm771_vm10, %v5220_v42, %v5191_v59  ;;  %v5270_v56 = vrot.slane %v5269_v55, 2  ;;  %v5272_v43 = vrot.slane %v5271_v9, 3  ;;  %v5274_v8 = vrot.slane %v5273_v46, 4 }
 0x98d   : > { %6358 = vst.msk [vmem:[%s7353_s19 + $0x167] ss:$8 sm:$0x3] %vm7317_vm2, %v5263_v18  ;;  %v5276_v1 = vrot.slane %v5275_v11, 5  ;;  %v5278_v31 = vrot.slane %v5277_v20, 6  ;;  %v5280_v4 = vrot.slane %v5279_v50, 7 }
 0x98e   : > { %6359 = vst.msk [vmem:[%s7353_s19 + $0x177] ss:$8 sm:$0x3] %vm7317_vm2, %v5265_v53 }
 0x98f   : > { %5208 = vst [vmem:[#allocation2 + $0x28] sm:$0xff] %v5204_v61 }
 0x990   : > { %6360 = vst.msk [vmem:[%s7353_s19 + $0x187] ss:$8 sm:$0x3] %vm7317_vm2, %v5266_v21 }
 0x991   : > { %6361 = vst.msk [vmem:[%s7353_s19 + $0x197] ss:$8 sm:$0x3] %vm7317_vm2, %v5268_v45 }
 0x992   : > { %6362 = vst.msk [vmem:[%s7353_s19 + $0x1a7] ss:$8 sm:$0x3] %vm7317_vm2, %v5270_v56 }
 0x993   : > { %6363 = vst.msk [vmem:[%s7353_s19 + $0x1b7] ss:$8 sm:$0x3] %vm7317_vm2, %v5272_v43 }
 0x994   : > { %6364 = vst.msk [vmem:[%s7353_s19 + $0x1c7] ss:$8 sm:$0x3] %vm7317_vm2, %v5274_v8 }
 0x995   : > { %6365 = vst.msk [vmem:[%s7353_s19 + $0x1d7] ss:$8 sm:$0x3] %vm7317_vm2, %v5276_v1 }
 0x996   : > { %6366 = vst.msk [vmem:[%s7353_s19 + $0x1e7] ss:$8 sm:$0x3] %vm7317_vm2, %v5278_v31 }
 0x997   : > { %6367 = vst.msk [vmem:[%s7353_s19 + $0x1f7] ss:$8 sm:$0x3] %vm7317_vm2, %v5280_v4 }
 0x998   : > { %7000 = shalt.err (!%p6997_p9)
}
 0x999   : > { %s7062_s11 = smov 256   ;;  %s7063_s19 = smov 16  }
 0x99a   : > { %6491 = dma.vmem_to_hbm [thread:$0]  (%p7124_p4), %s5425_s6, 8192, %s5427_s7, %s5410_s8, %s7062_s11, %s7062_s11, %s7063_s19  }
 0x99b PF: > { %p6503_p10 = scmp.ge.s32.totalorder %s7055_s17, 2  ;;  %s5441_s29 = sand.u32 1, %s7035_s12  }
 0x99c   : > { %s5442_s30 = scalar_lea.sflag [#allocation6], %s5441_s29 }
 0x99d   : > { %p6498_p11 = pnand %p6503_p10, %p7131_p8 }
 0x99f   : > { %p6499_p12 = pneg %p6498_p11 }
 0x9a1   : > { %7030 = dma.done.wait (%p6499_p12), %s5442_s30, 8192  }
 0x9a2   : > { %7032 = vsyncadd (%p6499_p12), %s5442_s30, 4294959104  ;;  %s17_s17 = sadd.s32 1, %s7055_s17   ;;  %s9615_s12 = smov %s7039_s13 }
 0x9a3   : > { %p14_p13 = scmp.ge.s32.totalorder %s17_s17, 4   ;;  %s9616_s13 = smov %s7043_s14 }
 0x9a4   : > { %s9617_s14 = smov %s7137_s25  ;;  %s9618_s15 = smov %s7051_s16 }
 0x9a5   : > { %s9619_s16 = smov %s9621_s20  ;;  %16 = sbr.rel (!%p14_p13) target bundleno = 5 (0x5), region = 335 }
 0x9aa   :  { %5448 = vsyncpa [#allocation5], 1 }
 0x9ab   :  { %5450 = vsyncpa [#allocation5 + $0x1], 1 }
 0x9ac   :  { %5451 = vsyncpa [#allocation6], 1 }
 0x9ad   :  { %5453 = vsyncpa [#allocation6 + $0x1], 1 }

</bundles_post_ra>
